<compile_context>
chip_gen: v7x
topology: tpu7x:2x2x1
jax: 0.10.0
libtpu: 0.0.40
codegen_flags: <defaults>
</compile_context>

<pallas_src>
import functools

import jax
import jax.numpy as jnp
from jax.experimental import pallas as pl
from jax.experimental.pallas import tpu as pltpu


def _attention_kernel(x_ref, wqkv_ref, wout_ref, bout_ref, y_ref, attn_ref,
                      *, heads, dim_head, scale):
    # x_ref    : (1, N, D)         bf16  VMEM
    # wqkv_ref : (D, 3*inner)      bf16  VMEM
    # wout_ref : (heads, dh, D)    bf16  VMEM
    # bout_ref : (1, D)            f32   VMEM
    # y_ref    : (1, N, D)         f32   VMEM
    # attn_ref : (1, heads, N, N)  f32   VMEM
    inner = heads * dim_head

    x = x_ref[0]                                              # (N, D) bf16

    # One wide QKV projection on the MXU: 512-deep contraction, 3*inner-wide
    # output, bf16 operands with f32 accumulation.
    qkv = jnp.dot(x, wqkv_ref[...],
                  preferred_element_type=jnp.float32)         # (N, 3*inner) f32

    # Gather heads ONCE into a head-batched layout (heads, N, dh).
    def gather_heads(base):
        return jnp.stack(
            [qkv[:, base + h * dim_head: base + (h + 1) * dim_head]
             for h in range(heads)],
            axis=0)

    q3 = (gather_heads(0) * scale).astype(jnp.bfloat16)       # scale folded into q
    k3 = gather_heads(inner).astype(jnp.bfloat16)
    v3 = gather_heads(2 * inner).astype(jnp.bfloat16)

    # Head-batched QK^T -- contraction spec handles the transpose (no k.T).
    dots = jnp.einsum('hnd,hmd->hnm', q3, k3,
                      preferred_element_type=jnp.float32)     # (heads, N, N) f32

    # Numerically-stable softmax in f32; approx reciprocal runs on the EUP.
    dots = dots - jnp.max(dots, axis=-1, keepdims=True)
    e = jnp.exp(dots)
    attn = e * pl.reciprocal(jnp.sum(e, axis=-1, keepdims=True), approx=True)

    # Single whole-block store of the attention map.
    attn_ref[0] = attn.astype(attn_ref.dtype)

    # Head-batched attn @ V.
    out3 = jnp.einsum('hnm,hmd->hnd', attn.astype(jnp.bfloat16), v3,
                      preferred_element_type=jnp.float32)     # (heads, N, dh) f32

    # Output projection fused across heads:
    #   y = sum_h out_h @ W_out[h*dh:(h+1)*dh, :]
    # expressed as one batched dot_general + reduction over the untiled head
    # axis (cheap VALU adds), instead of 8 serial small matmuls.
    yh = jnp.einsum('hnd,hdk->hnk', out3.astype(jnp.bfloat16), wout_ref[...],
                    preferred_element_type=jnp.float32)       # (heads, N, D) f32
    y = jnp.sum(yh, axis=0) + bout_ref[...]                   # (N, D) f32
    y_ref[0] = y.astype(y_ref.dtype)


def attention_forward(x, w_qkv, w_out, b_out, *, heads):
    """Pallas implementation of Attention.forward. Returns (y, attn)."""
    B, N, D = x.shape
    inner = w_qkv.shape[1] // 3
    dim_head = inner // heads
    scale = float(dim_head) ** -0.5
    out_dtype = x.dtype

    # bf16 operands for the MXU; also halves the weight DMA.
    x_bf = x.astype(jnp.bfloat16)
    wqkv_bf = w_qkv.astype(jnp.bfloat16)
    wout_h = w_out.reshape(heads, dim_head, D).astype(jnp.bfloat16)
    b_out2d = b_out.reshape(1, D).astype(jnp.float32)

    kernel = functools.partial(_attention_kernel,
                               heads=heads, dim_head=dim_head, scale=scale)

    y, attn = pl.pallas_call(
        kernel,
        out_shape=(
            jax.ShapeDtypeStruct((B, N, D), out_dtype),
            jax.ShapeDtypeStruct((B, heads, N, N), jnp.float32),
        ),
        grid=(B,),
        in_specs=[
            pl.BlockSpec((1, N, D), lambda b: (b, 0, 0)),
            # Weights: full-array blocks with constant index_map -> fetched
            # once, kept resident in VMEM across grid steps.
            pl.BlockSpec((D, 3 * inner), lambda b: (0, 0)),
            pl.BlockSpec((heads, dim_head, D), lambda b: (0, 0, 0)),
            pl.BlockSpec((1, D), lambda b: (0, 0)),
        ],
        out_specs=[
            pl.BlockSpec((1, N, D), lambda b: (b, 0, 0)),
            pl.BlockSpec((1, heads, N, N), lambda b: (b, 0, 0, 0)),
        ],
        compiler_params=pltpu.CompilerParams(
            dimension_semantics=("parallel",),      # feeds v7x's 2 TensorCores
            vmem_limit_bytes=32 * 1024 * 1024),     # headroom within v7x 64 MiB
    )(x_bf, wqkv_bf, wout_h, b_out2d)
    return y, attn


def attention_reference(x, w_qkv, w_out, b_out, *, heads):
    """Pure-JAX f32 reference mirroring the PyTorch forward (eval mode)."""
    B, N, D = x.shape
    qkv = x @ w_qkv
    q, k, v = jnp.split(qkv, 3, axis=-1)

    def split_heads(t):
        return t.reshape(B, N, heads, -1).transpose(0, 2, 1, 3)  # b h n d

    q, k, v = map(split_heads, (q, k, v))
    dh = q.shape[-1]
    dots = jnp.einsum('bhnd,bhmd->bhnm', q, k) * (dh ** -0.5)
    attn = jax.nn.softmax(dots, axis=-1)
    out = jnp.einsum('bhnm,bhmd->bhnd', attn, v)
    out = out.transpose(0, 2, 1, 3).reshape(B, N, -1)
    y = out @ w_out + b_out
    return y, attn


if __name__ == "__main__":
    # Module defaults: dim=512, heads=8, dim_head=64, inner_dim=512.
    dim, heads = 512, 8
    dim_head = dim // heads
    inner = heads * dim_head
    B, N = 2, 8  # small batch / sequence

    key = jax.random.PRNGKey(0)
    kx, kqkv, kout, kb = jax.random.split(key, 4)
    x = jax.random.normal(kx, (B, N, dim), dtype=jnp.float32)
    # Deterministic, scaled weight init (synthetic; not a checkpoint load).
    w_qkv = jax.random.normal(kqkv, (dim, 3 * inner), dtype=jnp.float32) / jnp.sqrt(dim)
    w_out = jax.random.normal(kout, (inner, dim), dtype=jnp.float32) / jnp.sqrt(inner)
    b_out = jax.random.normal(kb, (dim,), dtype=jnp.float32) * 0.01
    # TODO(synk): training-mode Dropout(0.1) after the output Linear is not
    # implemented (eval-mode identity is used, matching module.eval()).

    y, attn = jax.block_until_ready(
        attention_forward(x, w_qkv, w_out, b_out, heads=heads))

    y_ref, attn_ref = attention_reference(x, w_qkv, w_out, b_out, heads=heads)

    assert y.shape == (B, N, dim) and attn.shape == (B, heads, N, N)
    # Tolerances account for bf16 MXU operands (f32 accumulation) and the
    # approx EUP reciprocal in the softmax; f32 reference above.
    assert jnp.allclose(attn, attn_ref, atol=3e-2, rtol=3e-2)
    assert jnp.allclose(y, y_ref, atol=8e-2, rtol=5e-2)
    # Aggregate error checks (tighter than the elementwise outlier bounds).
    assert float(jnp.mean(jnp.abs(attn - attn_ref))) < 5e-3
    assert float(jnp.mean(jnp.abs(y - y_ref))) < 2e-2

    print("KERNEL_OK")
</pallas_src>

<mosaic_0001>
module attributes {stable_mosaic.version = 11 : i64} {
  func.func @_attention_kernel(%arg0: i32, %arg1: memref<1x8x512xbf16, #tpu.memory_space<vmem>>, %arg2: memref<512x1536xbf16, #tpu.memory_space<vmem>>, %arg3: memref<8x64x512xbf16, #tpu.memory_space<vmem>>, %arg4: memref<1x512xf32, #tpu.memory_space<vmem>>, %arg5: memref<1x8x512xf32, #tpu.memory_space<vmem>>, %arg6: memref<1x8x8x8xf32, #tpu.memory_space<vmem>>) attributes {dimension_semantics = [#tpu.dimension_semantics<parallel>], iteration_bounds = array<i64: 2>, scalar_prefetch = 0 : i64, scratch_operands = 0 : i64, tpu.core_type = #tpu.core_type<tc>, window_params = [{transform_indices = @transform_0, window_bounds = array<i64: 1, 8, 512>}, {pipeline_mode = #tpu.pipeline_mode<synchronous>, transform_indices = @transform_1, window_bounds = array<i64: 512, 1536>}, {pipeline_mode = #tpu.pipeline_mode<synchronous>, transform_indices = @transform_2, window_bounds = array<i64: 8, 64, 512>}, {pipeline_mode = #tpu.pipeline_mode<synchronous>, transform_indices = @transform_3, window_bounds = array<i64: 1, 512>}, {transform_indices = @transform_4, window_bounds = array<i64: 1, 8, 512>}, {transform_indices = @transform_5, window_bounds = array<i64: 1, 8, 8, 8>}]} {
    %c0 = arith.constant 0 : index
    %c0_0 = arith.constant 0 : index
    %c0_1 = arith.constant 0 : index
    %0 = vector.load %arg1[%c0, %c0_0, %c0_1] : memref<1x8x512xbf16, #tpu.memory_space<vmem>>, vector<1x8x512xbf16>
    %1 = vector.shape_cast %0 : vector<1x8x512xbf16> to vector<8x512xbf16>
    %c0_2 = arith.constant 0 : index
    %c0_3 = arith.constant 0 : index
    %2 = vector.load %arg2[%c0_2, %c0_3] : memref<512x1536xbf16, #tpu.memory_space<vmem>>, vector<512x1536xbf16>
    %cst = arith.constant dense<0.000000e+00> : vector<8x1536xf32>
    %3 = tpu.matmul %1, %2, %cst {dimension_numbers = #tpu.dot_dimension_numbers<[1], [0], [0], [1], [0, 0, 1, 1], [], []>} : vector<8x512xbf16>, vector<512x1536xbf16>, vector<8x1536xf32> -> vector<8x1536xf32>
    %4 = vector.extract_strided_slice %3 {offsets = [0, 0], sizes = [8, 64], strides = [1, 1]} : vector<8x1536xf32> to vector<8x64xf32>
    %5 = vector.extract_strided_slice %3 {offsets = [0, 64], sizes = [8, 64], strides = [1, 1]} : vector<8x1536xf32> to vector<8x64xf32>
    %6 = vector.extract_strided_slice %3 {offsets = [0, 128], sizes = [8, 64], strides = [1, 1]} : vector<8x1536xf32> to vector<8x64xf32>
    %7 = vector.extract_strided_slice %3 {offsets = [0, 192], sizes = [8, 64], strides = [1, 1]} : vector<8x1536xf32> to vector<8x64xf32>
    %8 = vector.extract_strided_slice %3 {offsets = [0, 256], sizes = [8, 64], strides = [1, 1]} : vector<8x1536xf32> to vector<8x64xf32>
    %9 = vector.extract_strided_slice %3 {offsets = [0, 320], sizes = [8, 64], strides = [1, 1]} : vector<8x1536xf32> to vector<8x64xf32>
    %10 = vector.extract_strided_slice %3 {offsets = [0, 384], sizes = [8, 64], strides = [1, 1]} : vector<8x1536xf32> to vector<8x64xf32>
    %11 = vector.extract_strided_slice %3 {offsets = [0, 448], sizes = [8, 64], strides = [1, 1]} : vector<8x1536xf32> to vector<8x64xf32>
    %12 = vector.shape_cast %4 : vector<8x64xf32> to vector<1x8x64xf32>
    %13 = vector.shape_cast %5 : vector<8x64xf32> to vector<1x8x64xf32>
    %14 = vector.shape_cast %6 : vector<8x64xf32> to vector<1x8x64xf32>
    %15 = vector.shape_cast %7 : vector<8x64xf32> to vector<1x8x64xf32>
    %16 = vector.shape_cast %8 : vector<8x64xf32> to vector<1x8x64xf32>
    %17 = vector.shape_cast %9 : vector<8x64xf32> to vector<1x8x64xf32>
    %18 = vector.shape_cast %10 : vector<8x64xf32> to vector<1x8x64xf32>
    %19 = vector.shape_cast %11 : vector<8x64xf32> to vector<1x8x64xf32>
    %20 = tpu.concatenate %12, %13, %14, %15, %16, %17, %18, %19 in 0 : vector<1x8x64xf32>, vector<1x8x64xf32>, vector<1x8x64xf32>, vector<1x8x64xf32>, vector<1x8x64xf32>, vector<1x8x64xf32>, vector<1x8x64xf32>, vector<1x8x64xf32> -> vector<8x8x64xf32>
    %cst_4 = arith.constant 1.250000e-01 : f32
    %21 = vector.broadcast %cst_4 : f32 to vector<8x8x64xf32>
    %22 = arith.mulf %20, %21 : vector<8x8x64xf32>
    %23 = arith.truncf %22 : vector<8x8x64xf32> to vector<8x8x64xbf16>
    %24 = vector.extract_strided_slice %3 {offsets = [0, 512], sizes = [8, 64], strides = [1, 1]} : vector<8x1536xf32> to vector<8x64xf32>
    %25 = vector.extract_strided_slice %3 {offsets = [0, 576], sizes = [8, 64], strides = [1, 1]} : vector<8x1536xf32> to vector<8x64xf32>
    %26 = vector.extract_strided_slice %3 {offsets = [0, 640], sizes = [8, 64], strides = [1, 1]} : vector<8x1536xf32> to vector<8x64xf32>
    %27 = vector.extract_strided_slice %3 {offsets = [0, 704], sizes = [8, 64], strides = [1, 1]} : vector<8x1536xf32> to vector<8x64xf32>
    %28 = vector.extract_strided_slice %3 {offsets = [0, 768], sizes = [8, 64], strides = [1, 1]} : vector<8x1536xf32> to vector<8x64xf32>
    %29 = vector.extract_strided_slice %3 {offsets = [0, 832], sizes = [8, 64], strides = [1, 1]} : vector<8x1536xf32> to vector<8x64xf32>
    %30 = vector.extract_strided_slice %3 {offsets = [0, 896], sizes = [8, 64], strides = [1, 1]} : vector<8x1536xf32> to vector<8x64xf32>
    %31 = vector.extract_strided_slice %3 {offsets = [0, 960], sizes = [8, 64], strides = [1, 1]} : vector<8x1536xf32> to vector<8x64xf32>
    %32 = vector.shape_cast %24 : vector<8x64xf32> to vector<1x8x64xf32>
    %33 = vector.shape_cast %25 : vector<8x64xf32> to vector<1x8x64xf32>
    %34 = vector.shape_cast %26 : vector<8x64xf32> to vector<1x8x64xf32>
    %35 = vector.shape_cast %27 : vector<8x64xf32> to vector<1x8x64xf32>
    %36 = vector.shape_cast %28 : vector<8x64xf32> to vector<1x8x64xf32>
    %37 = vector.shape_cast %29 : vector<8x64xf32> to vector<1x8x64xf32>
    %38 = vector.shape_cast %30 : vector<8x64xf32> to vector<1x8x64xf32>
    %39 = vector.shape_cast %31 : vector<8x64xf32> to vector<1x8x64xf32>
    %40 = tpu.concatenate %32, %33, %34, %35, %36, %37, %38, %39 in 0 : vector<1x8x64xf32>, vector<1x8x64xf32>, vector<1x8x64xf32>, vector<1x8x64xf32>, vector<1x8x64xf32>, vector<1x8x64xf32>, vector<1x8x64xf32>, vector<1x8x64xf32> -> vector<8x8x64xf32>
    %41 = arith.truncf %40 : vector<8x8x64xf32> to vector<8x8x64xbf16>
    %42 = vector.extract_strided_slice %3 {offsets = [0, 1024], sizes = [8, 64], strides = [1, 1]} : vector<8x1536xf32> to vector<8x64xf32>
    %43 = vector.extract_strided_slice %3 {offsets = [0, 1088], sizes = [8, 64], strides = [1, 1]} : vector<8x1536xf32> to vector<8x64xf32>
    %44 = vector.extract_strided_slice %3 {offsets = [0, 1152], sizes = [8, 64], strides = [1, 1]} : vector<8x1536xf32> to vector<8x64xf32>
    %45 = vector.extract_strided_slice %3 {offsets = [0, 1216], sizes = [8, 64], strides = [1, 1]} : vector<8x1536xf32> to vector<8x64xf32>
    %46 = vector.extract_strided_slice %3 {offsets = [0, 1280], sizes = [8, 64], strides = [1, 1]} : vector<8x1536xf32> to vector<8x64xf32>
    %47 = vector.extract_strided_slice %3 {offsets = [0, 1344], sizes = [8, 64], strides = [1, 1]} : vector<8x1536xf32> to vector<8x64xf32>
    %48 = vector.extract_strided_slice %3 {offsets = [0, 1408], sizes = [8, 64], strides = [1, 1]} : vector<8x1536xf32> to vector<8x64xf32>
    %49 = vector.extract_strided_slice %3 {offsets = [0, 1472], sizes = [8, 64], strides = [1, 1]} : vector<8x1536xf32> to vector<8x64xf32>
    %50 = vector.shape_cast %42 : vector<8x64xf32> to vector<1x8x64xf32>
    %51 = vector.shape_cast %43 : vector<8x64xf32> to vector<1x8x64xf32>
    %52 = vector.shape_cast %44 : vector<8x64xf32> to vector<1x8x64xf32>
    %53 = vector.shape_cast %45 : vector<8x64xf32> to vector<1x8x64xf32>
    %54 = vector.shape_cast %46 : vector<8x64xf32> to vector<1x8x64xf32>
    %55 = vector.shape_cast %47 : vector<8x64xf32> to vector<1x8x64xf32>
    %56 = vector.shape_cast %48 : vector<8x64xf32> to vector<1x8x64xf32>
    %57 = vector.shape_cast %49 : vector<8x64xf32> to vector<1x8x64xf32>
    %58 = tpu.concatenate %50, %51, %52, %53, %54, %55, %56, %57 in 0 : vector<1x8x64xf32>, vector<1x8x64xf32>, vector<1x8x64xf32>, vector<1x8x64xf32>, vector<1x8x64xf32>, vector<1x8x64xf32>, vector<1x8x64xf32>, vector<1x8x64xf32> -> vector<8x8x64xf32>
    %59 = arith.truncf %58 : vector<8x8x64xf32> to vector<8x8x64xbf16>
    "tpu.trace_start"() <{level = 10 : i32, message = "hnd,hmd->hnm"}> : () -> ()
    %cst_5 = arith.constant dense<0.000000e+00> : vector<8x8x8xf32>
    %60 = tpu.matmul %23, %41, %cst_5 {dimension_numbers = #tpu.dot_dimension_numbers<[2], [2], [1], [1], [0, 0, 0, 1, 1, 1], [0], [0]>} : vector<8x8x64xbf16>, vector<8x8x64xbf16>, vector<8x8x8xf32> -> vector<8x8x8xf32>
    "tpu.trace_stop"() : () -> ()
    %cst_6 = arith.constant dense<0xFF800000> : vector<8x8xf32>
    %61 = vector.multi_reduction <maximumf>, %60, %cst_6 [2] : vector<8x8x8xf32> to vector<8x8xf32>
    %62 = vector.shape_cast %61 : vector<8x8xf32> to vector<8x8x1xf32>
    %63 = vector.broadcast %62 : vector<8x8x1xf32> to vector<8x8x8xf32>
    %64 = arith.subf %60, %63 : vector<8x8x8xf32>
    %65 = math.exp %64 : vector<8x8x8xf32>
    %cst_7 = arith.constant dense<0.000000e+00> : vector<8x8xf32>
    %66 = vector.multi_reduction <add>, %65, %cst_7 [2] : vector<8x8x8xf32> to vector<8x8xf32>
    %67 = vector.shape_cast %66 : vector<8x8xf32> to vector<8x8x1xf32>
    %68 = tpu.reciprocal %67 {approx = true} : vector<8x8x1xf32> -> vector<8x8x1xf32>
    %69 = vector.broadcast %68 : vector<8x8x1xf32> to vector<8x8x8xf32>
    %70 = arith.mulf %65, %69 : vector<8x8x8xf32>
    %c0_8 = arith.constant 0 : index
    %c0_9 = arith.constant 0 : index
    %c0_10 = arith.constant 0 : index
    %c0_11 = arith.constant 0 : index
    %71 = vector.load %arg6[%c0_8, %c0_9, %c0_10, %c0_11] : memref<1x8x8x8xf32, #tpu.memory_space<vmem>>, vector<1x8x8x8xf32>
    %72 = vector.shape_cast %71 : vector<1x8x8x8xf32> to vector<8x8x8xf32>
    %73 = vector.shape_cast %70 : vector<8x8x8xf32> to vector<1x8x8x8xf32>
    tpu.vector_store %arg6[%c0_8, %c0_9, %c0_10, %c0_11], %73 {strides = array<i32>} : memref<1x8x8x8xf32, #tpu.memory_space<vmem>>, vector<1x8x8x8xf32>,
    %74 = arith.truncf %70 : vector<8x8x8xf32> to vector<8x8x8xbf16>
    "tpu.trace_start"() <{level = 10 : i32, message = "hnm,hmd->hnd"}> : () -> ()
    %cst_12 = arith.constant dense<0.000000e+00> : vector<8x8x64xf32>
    %75 = tpu.matmul %74, %59, %cst_12 {dimension_numbers = #tpu.dot_dimension_numbers<[2], [1], [1], [2], [0, 0, 0, 1, 1, 2], [0], [0]>} : vector<8x8x8xbf16>, vector<8x8x64xbf16>, vector<8x8x64xf32> -> vector<8x8x64xf32>
    "tpu.trace_stop"() : () -> ()
    %76 = arith.truncf %75 : vector<8x8x64xf32> to vector<8x8x64xbf16>
    %c0_13 = arith.constant 0 : index
    %c0_14 = arith.constant 0 : index
    %c0_15 = arith.constant 0 : index
    %77 = vector.load %arg3[%c0_13, %c0_14, %c0_15] : memref<8x64x512xbf16, #tpu.memory_space<vmem>>, vector<8x64x512xbf16>
    "tpu.trace_start"() <{level = 10 : i32, message = "hnd,hdk->hnk"}> : () -> ()
    %cst_16 = arith.constant dense<0.000000e+00> : vector<8x8x512xf32>
    %78 = tpu.matmul %76, %77, %cst_16 {dimension_numbers = #tpu.dot_dimension_numbers<[2], [1], [1], [2], [0, 0, 0, 1, 1, 2], [0], [0]>} : vector<8x8x64xbf16>, vector<8x64x512xbf16>, vector<8x8x512xf32> -> vector<8x8x512xf32>
    "tpu.trace_stop"() : () -> ()
    %cst_17 = arith.constant dense<0.000000e+00> : vector<8x512xf32>
    %79 = vector.multi_reduction <add>, %78, %cst_17 [0] : vector<8x8x512xf32> to vector<8x512xf32>
    %c0_18 = arith.constant 0 : index
    %c0_19 = arith.constant 0 : index
    %80 = vector.load %arg4[%c0_18, %c0_19] : memref<1x512xf32, #tpu.memory_space<vmem>>, vector<1x512xf32>
    %81 = vector.broadcast %80 : vector<1x512xf32> to vector<8x512xf32>
    %82 = arith.addf %79, %81 : vector<8x512xf32>
    %c0_20 = arith.constant 0 : index
    %c0_21 = arith.constant 0 : index
    %c0_22 = arith.constant 0 : index
    %83 = vector.load %arg5[%c0_20, %c0_21, %c0_22] : memref<1x8x512xf32, #tpu.memory_space<vmem>>, vector<1x8x512xf32>
    %84 = vector.shape_cast %83 : vector<1x8x512xf32> to vector<8x512xf32>
    %85 = vector.shape_cast %82 : vector<8x512xf32> to vector<1x8x512xf32>
    tpu.vector_store %arg5[%c0_20, %c0_21, %c0_22], %85 {strides = array<i32>} : memref<1x8x512xf32, #tpu.memory_space<vmem>>, vector<1x8x512xf32>,
    return
  }
  func.func @transform_0(%arg0: i32) -> (i32, i32, i32) {
    %c0_i32 = arith.constant 0 : i32
    %c0_i32_0 = arith.constant 0 : i32
    %c0_i32_1 = arith.constant 0 : i32
    return %arg0, %c0_i32, %c0_i32_0 : i32, i32, i32
  }
  func.func @transform_1(%arg0: i32) -> (i32, i32) {
    %c0_i32 = arith.constant 0 : i32
    %c0_i32_0 = arith.constant 0 : i32
    %c0_i32_1 = arith.constant 0 : i32
    return %c0_i32, %c0_i32_0 : i32, i32
  }
  func.func @transform_2(%arg0: i32) -> (i32, i32, i32) {
    %c0_i32 = arith.constant 0 : i32
    %c0_i32_0 = arith.constant 0 : i32
    %c0_i32_1 = arith.constant 0 : i32
    %c0_i32_2 = arith.constant 0 : i32
    return %c0_i32, %c0_i32_0, %c0_i32_1 : i32, i32, i32
  }
  func.func @transform_3(%arg0: i32) -> (i32, i32) {
    %c0_i32 = arith.constant 0 : i32
    %c0_i32_0 = arith.constant 0 : i32
    %c0_i32_1 = arith.constant 0 : i32
    return %c0_i32, %c0_i32_0 : i32, i32
  }
  func.func @transform_4(%arg0: i32) -> (i32, i32, i32) {
    %c0_i32 = arith.constant 0 : i32
    %c0_i32_0 = arith.constant 0 : i32
    %c0_i32_1 = arith.constant 0 : i32
    return %arg0, %c0_i32, %c0_i32_0 : i32, i32, i32
  }
  func.func @transform_5(%arg0: i32) -> (i32, i32, i32, i32) {
    %c0_i32 = arith.constant 0 : i32
    %c0_i32_0 = arith.constant 0 : i32
    %c0_i32_1 = arith.constant 0 : i32
    %c0_i32_2 = arith.constant 0 : i32
    return %arg0, %c0_i32, %c0_i32_0, %c0_i32_1 : i32, i32, i32, i32
  }
}

</mosaic_0001>

<bundles_post_ra>
// kernel: tpu_custom_call.1
= control target key start
LH: loop header
LB: loop body
LE: loop exit
PB: predicated region body
PF: predicated region fallthrough
CT: control target
= control target key end

     0   :  { %11 = vsyncpa [#allocation3], 0  ;;  %s8168_s0 = inlined_call_operand.hbm [shape: bf16[2,8,512], index: 0, kind: input, shape index: {}]   ;;  %s8169_s1 = inlined_call_operand.hbm [shape: bf16[512,1536], index: 1, kind: input, shape index: {}]   ;;  %s8170_s2 = inlined_call_operand.hbm [shape: bf16[8,64,512], index: 2, kind: input, shape index: {}]   ;;  %s8171_s3 = inlined_call_operand.hbm [shape: f32[1,512], index: 3, kind: input, shape index: {}]   ;;  %s8172_s4 = inlined_call_operand.hbm [shape: f32[2,8,512], index: 4, kind: output, shape index: {0}]   ;;  %s8173_s5 = inlined_call_operand.hbm [shape: f32[2,8,8,8], index: 5, kind: output, shape index: {1}]  }
   0x1   :  { %13 = vsyncpa [#allocation3 + $0x1], 0 }
   0x2   :  { %14 = vsyncpa [#allocation6], 0 }
   0x3   :  { %15 = vsyncpa [#allocation9], 0 }
   0x4   :  { %16 = vsyncpa [#allocation4], 0 }
   0x5   :  { %18 = vsyncpa [#allocation4 + $0x1], 0 }
   0x6   :  { %19 = vsyncpa [#allocation12], 0 }
   0x7   :  { %21 = vsyncpa [#allocation12 + $0x1], 0  ;;  %s7602_s18 = smov 0   ;;  %s7604_s19 = smov 0  }
   0x8   :  { %s7606_s20 = smov 0   ;;  %s7608_s21 = smov 0  }
   0x9 LB: > { %s7623_s22 = sadd.s32 4294967295, %s7554_s21   ;;  %s5711_s23 = sadd.s32 4294967294, %s7554_s21   ;;  %s7554_s21 = sphi %s7608_s21, %s8196_s21   ;;  %s7550_s20 = sphi %s7606_s20, %s8195_s20   ;;  %s7546_s19 = sphi %s7604_s19, %s8194_s19   ;;  %s7542_s18 = sphi %s7602_s18, %s8193_s18  }
   0xa   : > { %p47_p0 = scmp.ne.s32.totalorder %s7546_s19, %s7542_s18  ;;  %p8174_p1 = scmp.eq.s32.totalorder %s7623_s22, 0 }
   0xb   : > { %p140_p3 = scmp.eq.s32.totalorder %s5711_s23, 1  ;;  %p5712_p5 = scmp.ge.s32.totalorder %s7554_s21, 1 }
   0xc   : > { %p7632_p4 = por %p8174_p1, %p47_p0  ;;  %p173_p7 = scmp.lt.s32.totalorder %s7554_s21, 3 }
   0xd   : > { %p7637_p6 = por %p140_p3, %p47_p0  ;;  %s7556_s27 = smov [#allocation5]  }
   0xe   : > { %s8177_s24 = scalar_select %p7632_p4, 1, 0 }
   0xf   : > { %s8178_s25 = scalar_select %p7637_p6, 1, 0 }
  0x10   : > { %p7642_p8 = pnand %p5712_p5, %p173_p7  ;;  %s185_s28 = sshll.u32 %s7556_s27, 4  ;;  %s7646_s28 = int_to_ptr.vmem [resolvable:$true] %s185_s28 }
  0x11   : > { %s7557_s30 = smov [#allocation7]   ;;  %s7334_s9 = scalar_lea.hbm %s8169_s1, 49152 }
  0x12   : > { %s8179_s26 = scalar_select %p7642_p8, 1, 0 }
  0x13   : > { %p6456_p9 = pneg %p7642_p8  ;;  %s198_s6 = sshll.u32 %s7557_s30, 4  ;;  %s7657_s6 = int_to_ptr.vmem [resolvable:$true] %s198_s6 }
  0x14   : > { %p7335_p12 = scmp.ne.s32.totalorder %s8169_s1, %s7334_s9  ;;  %p7341_p5 = scmp.lt.u32.totalorder %s7334_s9, %s8169_s1 }
  0x15   : > { %p7653_p11 = pnand %p6456_p9, %p8174_p1 }
  0x17   : > { %p7667_p13 = pneg %p7653_p11 }
  0x19   : > { %p7337_p0 = pnand %p7667_p13, %p7335_p12 }
  0x1b   : > { %p7338_p3 = pneg %p7337_p0 }
  0x1d   : > { %p7343_p7 = pnand %p7341_p5, %p7338_p3 }
  0x1f   : > { %7346 = shalt.err (!%p7343_p7)
}
  0x20   : > { %s7347_s15 = scalar_lea.vmem %s7646_s28, 49152  ;;  %p7355_p2 = scmp.lt.s32.totalorder %s7646_s28, %s7646_s28 }
  0x21   : > { %p7348_p9 = scmp.ne.s32.totalorder %s7646_s28, %s7347_s15  ;;  %p7356_p6 = scmp.lt.s32.totalorder %s7347_s15, %s7347_s15 }
  0x23   : > { %p7350_p10 = pnand %p7348_p9, %p7667_p13  ;;  %p7357_p12 = por %p7356_p6, %p7355_p2 }
  0x25   : > { %p7351_p1 = pneg %p7350_p10 }
  0x27   : > { %p7358_p0 = pnand %p7357_p12, %p7351_p1 }
  0x29   : > { %7361 = shalt.err (!%p7358_p0)
}
  0x2a   : > { %s7558_s16 = smov 768   ;;  %s7559_s17 = smov 48  }
  0x2b   : > { %6459 = dma.hbm_to_vmem [thread:$0]  (!%p7653_p11), %s8169_s1, 49152, %s7646_s28, [#allocation6], %s7558_s16, %s7558_s16, %s7559_s17  }
  0x2c   : > { %s7362_s8 = scalar_lea.hbm %s8170_s2, 16384 }
  0x2d   : > { %p7363_p2 = scmp.ne.s32.totalorder %s8170_s2, %s7362_s8  ;;  %p7369_p10 = scmp.lt.u32.totalorder %s7362_s8, %s8170_s2 }
  0x2f   : > { %p7365_p1 = pnand %p7363_p2, %p7667_p13 }
  0x31   : > { %p7366_p6 = pneg %p7365_p1 }
  0x33   : > { %p7371_p3 = pnand %p7369_p10, %p7366_p6 }
  0x35   : > { %7374 = shalt.err (!%p7371_p3)
}
  0x36   : > { %s7375_s28 = scalar_lea.vmem %s7657_s6, 16384  ;;  %p7383_p12 = scmp.lt.s32.totalorder %s7657_s6, %s7657_s6 }
  0x37   : > { %p7376_p5 = scmp.ne.s32.totalorder %s7657_s6, %s7375_s28  ;;  %p7384_p0 = scmp.lt.s32.totalorder %s7375_s28, %s7375_s28 }
  0x39   : > { %p7378_p7 = pnand %p7376_p5, %p7667_p13  ;;  %p7385_p2 = por %p7384_p0, %p7383_p12 }
  0x3b   : > { %p7379_p9 = pneg %p7378_p7 }
  0x3d   : > { %p7386_p1 = pnand %p7385_p2, %p7379_p9 }
  0x3f   : > { %7389 = shalt.err (!%p7386_p1)
}
  0x40   : > { %s7560_s14 = smov 256   ;;  %s7561_s15 = smov 16  }
  0x41   : > { %6462 = dma.hbm_to_vmem [thread:$0]  (!%p7653_p11), %s8170_s2, 16384, %s7657_s6, [#allocation6], %s7560_s14, %s7560_s14, %s7561_s15  }
  0x42   : > { %s7562_s23 = smov [#allocation8]   ;;  %s7712_s30 = sadd.s32 1, %s7554_s21  }
  0x43   : > { %s212_s27 = sshll.u32 %s7562_s23, 4  ;;  %s7390_s9 = scalar_lea.hbm %s8171_s3, 64  ;;  %s213_s27 = int_to_ptr.vmem [resolvable:$true] %s212_s27 }
  0x44   : > { %p7391_p6 = scmp.ne.s32.totalorder %s8171_s3, %s7390_s9  ;;  %p7397_p5 = scmp.lt.u32.totalorder %s7390_s9, %s8171_s3 }
  0x46   : > { %p7393_p10 = pnand %p7391_p6, %p7667_p13 }
  0x48   : > { %p7394_p3 = pneg %p7393_p10 }
  0x4a   : > { %p7399_p7 = pnand %p7397_p5, %p7394_p3 }
  0x4c   : > { %7402 = shalt.err (!%p7399_p7)
}
  0x4d   : > { %s7403_s6 = scalar_lea.vmem %s213_s27, 64  ;;  %p7411_p2 = scmp.lt.s32.totalorder %s213_s27, %s213_s27 }
  0x4e   : > { %p7404_p9 = scmp.ne.s32.totalorder %s213_s27, %s7403_s6  ;;  %p7412_p1 = scmp.lt.s32.totalorder %s7403_s6, %s7403_s6 }
  0x50   : > { %p7406_p12 = pnand %p7404_p9, %p7667_p13  ;;  %p7413_p4 = por %p7412_p1, %p7411_p2 }
  0x52   : > { %p7407_p0 = pneg %p7406_p12 }
  0x54   : > { %p7414_p8 = pnand %p7413_p4, %p7407_p0 }
  0x56   : > { %7417 = shalt.err (!%p7414_p8)
}
  0x57   : > { %6465 = dma.hbm_to_vmem [thread:$0]  (!%p7653_p11), %s8171_s3, 64, %s213_s27, [#allocation9]  }
  0x58   : > { %s31_s12 = ssub.s32 %s7554_s21, %s7712_s30  ;;  %s34_s16 = sadd.s32 1, %s7550_s20 }
  0x59   : > { %p32_p4 = scmp.eq.s32.totalorder %s31_s12, 0  ;;  %p41_p8 = scmp.ne.s32.totalorder %s7550_s20, %s7546_s19 }
  0x5a   : > { %p42_p13 = scmp.eq.s32.totalorder %s7554_s21, 0  ;;  %p6480_p6 = scmp.lt.s32.totalorder %s7554_s21, 2 }
  0x5b   : > { %s7740_s29 = scalar_select %p32_p4, %s7550_s20, %s34_s16  }
  0x5c   : > { %p43_p10 = por %p42_p13, %p41_p8  ;;  %p8182_p3 = scmp.eq.s32.totalorder %s7623_s22, 1 }
  0x5d   : > { %s223_s23 = sand.u32 1, %s7550_s20   ;;  %s6283_s7 = sshll.u32 %s7554_s21, 8 }
  0x5e   : > { %p7744_p5 = por %p8182_p3, %p41_p8  ;;  %s5717_s8 = sshll.u32 %s223_s23, 4 }
  0x5f   : > { %s7753_s27 = scalar_lea.hbm %s8168_s0, %s6283_s7  ;;  %s227_s11 = scalar_lea.vmem [#allocation2], %s5717_s8 }
  0x60   : > { %s235_s13 = sshll.u32 %s227_s11, 4  ;;  %p7755_p11 = pnand %p6480_p6, %p43_p10  ;;  %s7759_s13 = int_to_ptr.vmem [resolvable:$true] %s235_s13 }
  0x61   : > { %s224_s6 = scalar_lea.sflag [#allocation3], %s223_s23  ;;  %s7418_s14 = scalar_lea.hbm %s7753_s27, 256 }
  0x62   : > { %p7419_p7 = scmp.ne.s32.totalorder %s7753_s27, %s7418_s14  ;;  %p7420_p9 = pneg %p7755_p11 }
  0x63   : > { %s7423_s16 = scalar_lea.hbm %s8168_s0, 512  ;;  %p7424_p2 = scmp.lt.u32.totalorder %s7753_s27, %s8168_s0 }
  0x64   : > { %p7421_p12 = pnand %p7420_p9, %p7419_p7  ;;  %p7425_p1 = scmp.lt.u32.totalorder %s7423_s16, %s7418_s14 }
  0x65   : > { %p7427_p8 = scmp.lt.u32.totalorder %s7418_s14, %s7753_s27 }
  0x66   : > { %p7422_p0 = pneg %p7421_p12  ;;  %p7426_p4 = por %p7425_p1, %p7424_p2 }
  0x68   : > { %p7428_p13 = por %p7427_p8, %p7426_p4 }
  0x6a   : > { %p7429_p6 = pnand %p7428_p13, %p7422_p0 }
  0x6c   : > { %7432 = shalt.err (!%p7429_p6)
}
  0x6d   : > { %s7433_s23 = scalar_lea.vmem %s7759_s13, 256  ;;  %s7563_s9 = smov [#allocation2]  }
  0x6e   : > { %p7434_p10 = scmp.ne.s32.totalorder %s7759_s13, %s7433_s23  ;;  %s7438_s10 = sshll.u32 %s7563_s9, 4  ;;  %s7439_s10 = int_to_ptr.vmem [resolvable:$false] %s7438_s10 }
  0x6f   : > { %s7440_s11 = scalar_lea.vmem %s7439_s10, 512  ;;  %p7441_p12 = scmp.lt.s32.totalorder %s7759_s13, %s7439_s10 }
  0x70   : > { %p7436_p3 = pnand %p7434_p10, %p7420_p9  ;;  %p7442_p2 = scmp.lt.s32.totalorder %s7440_s11, %s7433_s23 }
  0x72   : > { %p7437_p7 = pneg %p7436_p3  ;;  %p7443_p1 = por %p7442_p2, %p7441_p12 }
  0x74   : > { %p7444_p4 = pnand %p7443_p1, %p7437_p7 }
  0x76   : > { %7447 = shalt.err (!%p7444_p4)
}
  0x77   : > { %6469 = dma.hbm_to_vmem [thread:$0]  (!%p7755_p11), %s7753_s27, 256, %s7759_s13, %s224_s6  }
  0x78   : > { %p8185_p0 = scmp.ne.s32.totalorder %s8179_s26, 0 }
  0x79   : > { %s7789_s14 = sand.u32 (!%p8185_p0), 1, %s7546_s19   ;;  %p8186_p9 = scmp.ne.s32.totalorder (!%p8185_p0), %s8177_s24, 0 }
  0x7a   : > { %244 = sbr.rel (%p8185_p0) target bundleno = 1800 (0x708), region = 36  ;;  %s5721_s15 = sshll.u32 (!%p8185_p0), %s7789_s14, 4 }
  0x7b   : > { %s247_s12 = scalar_lea.sflag (!%p8185_p0), [#allocation3], %s7789_s14  ;;  %s7793_s16 = scalar_lea.vmem (!%p8185_p0), [#allocation2], %s5721_s15 }
  0x81   : > { %7521 = dma.done.wait (%p8186_p9), %s247_s12, 256  }
  0x82   : > { %7523 = vsyncadd (%p8186_p9), %s247_s12, 4294967040  ;;  %p8187_p11 = scmp.eq.s32.totalorder %s7623_s22, 0 }
  0x84   : > { %7525 = dma.done.wait (%p8187_p11), [#allocation6], 65536   ;;  %p8188_p8 = pmov %p8187_p11 }
  0x86   : > { %7527 = vsyncadd (%p8188_p8), [#allocation6], 4294901760  ;;  %p8189_p13 = pmov %p8188_p8 }
  0x87   : > { %p8190_p6 = pmov %p8188_p8 }
  0x88   : > { %7529 = dma.done.wait (%p8189_p13), [#allocation9], 64  }
  0x89   : > { %7531 = vsyncadd (%p8190_p6), [#allocation9], 4294967232  ;;  %v6530_v0 = vld [vmem:[#allocation5 + $0x4] ss:$48 sps:$4 sm:$0xff]   ;;  %v6532_v1 = vld [vmem:[#allocation5 + $0xc] ss:$48 sps:$4 sm:$0xff]  }
  0x8a   : > { %2615 = vmatprep.subr.bf16.mxu0 %v6530_v0  ;;  %v6534_v2 = vld [vmem:[#allocation5] ss:$48 sps:$4 sm:$0xff]   ;;  %v6535_v3 = vld [vmem:[#allocation5 + $0x8] ss:$48 sps:$4 sm:$0xff]   ;;  %2697 = vmatprep.subr.bf16.mxu1 %v6532_v1  ;;  %v6536_v4 = vld [vmem:[#allocation5 + $0x64] ss:$48 sps:$4 sm:$0xff]  }
  0x8b   : > { %2616 = vmatpush1.bf16.msra.mxu0 %v6534_v2  ;;  %2698 = vmatpush1.bf16.msra.mxu1 %v6535_v3  ;;  %v6538_v5 = vld [vmem:[#allocation5 + $0x6c] ss:$48 sps:$4 sm:$0xff]   ;;  %v6540_v6 = vld [vmem:[#allocation5 + $0x60] ss:$48 sps:$4 sm:$0xff]   ;;  %v6541_v7 = vld [vmem:[#allocation5 + $0x68] ss:$48 sps:$4 sm:$0xff]  }
  0x8c   : > { %2617 = vmatprep.subr.bf16.mxu0 %v6536_v4  ;;  %2699 = vmatprep.subr.bf16.mxu1 %v6538_v5  ;;  %v6542_v8 = vld [vmem:[#allocation5 + $0xc4] ss:$48 sps:$4 sm:$0xff]   ;;  %v6544_v9 = vld [vmem:[#allocation5 + $0xcc] ss:$48 sps:$4 sm:$0xff]   ;;  %v6546_v10 = vld [vmem:[#allocation5 + $0xc0] ss:$48 sps:$4 sm:$0xff]  }
  0x8d   : > { %v6547_v11 = vld [vmem:[#allocation5 + $0xc8] ss:$48 sps:$4 sm:$0xff]   ;;  %v6548_v12 = vld [vmem:[#allocation5 + $0x124] ss:$48 sps:$4 sm:$0xff]   ;;  %v6550_v13 = vld [vmem:[#allocation5 + $0x12c] ss:$48 sps:$4 sm:$0xff]  }
  0x8e   : > { %v6552_v14 = vld [vmem:[#allocation5 + $0x120] ss:$48 sps:$4 sm:$0xff]   ;;  %v6553_v15 = vld [vmem:[#allocation5 + $0x128] ss:$48 sps:$4 sm:$0xff]   ;;  %v6554_v16 = vld [vmem:[#allocation5 + $0x184] ss:$48 sps:$4 sm:$0xff]  }
  0x8f   : > { %2618 = vmatpush1.bf16.msra.mxu0 %v6540_v6  ;;  %2700 = vmatpush1.bf16.msra.mxu1 %v6541_v7  ;;  %v6556_v17 = vld [vmem:[#allocation5 + $0x18c] ss:$48 sps:$4 sm:$0xff]   ;;  %v6558_v18 = vld [vmem:[#allocation5 + $0x180] ss:$48 sps:$4 sm:$0xff]   ;;  %v6559_v19 = vld [vmem:[#allocation5 + $0x188] ss:$48 sps:$4 sm:$0xff]  }
  0x90   : > { %2619 = vmatprep.subr.bf16.mxu0 %v6542_v8  ;;  %2701 = vmatprep.subr.bf16.mxu1 %v6544_v9  ;;  %v6560_v20 = vld [vmem:[#allocation5 + $0x1e4] ss:$48 sps:$4 sm:$0xff]   ;;  %v6562_v21 = vld [vmem:[#allocation5 + $0x1ec] ss:$48 sps:$4 sm:$0xff]   ;;  %v6564_v22 = vld [vmem:[#allocation5 + $0x1e0] ss:$48 sps:$4 sm:$0xff]  }
  0x91   : > { %v6565_v23 = vld [vmem:[#allocation5 + $0x1e8] ss:$48 sps:$4 sm:$0xff]   ;;  %v6566_v24 = vld [vmem:[#allocation5 + $0x244] ss:$48 sps:$4 sm:$0xff]   ;;  %v6568_v25 = vld [vmem:[#allocation5 + $0x24c] ss:$48 sps:$4 sm:$0xff]  }
  0x92   : > { %v6570_v26 = vld [vmem:[#allocation5 + $0x240] ss:$48 sps:$4 sm:$0xff]   ;;  %v6571_v27 = vld [vmem:[#allocation5 + $0x248] ss:$48 sps:$4 sm:$0xff]   ;;  %v6572_v28 = vld [vmem:[#allocation5 + $0x2a4] ss:$48 sps:$4 sm:$0xff]  }
  0x93   : > { %2620 = vmatpush1.bf16.msra.mxu0 %v6546_v10  ;;  %2702 = vmatpush1.bf16.msra.mxu1 %v6547_v11  ;;  %v6574_v29 = vld [vmem:[#allocation5 + $0x2ac] ss:$48 sps:$4 sm:$0xff]   ;;  %v6576_v30 = vld [vmem:[#allocation5 + $0x2a0] ss:$48 sps:$4 sm:$0xff]   ;;  %v6577_v31 = vld [vmem:[#allocation5 + $0x2a8] ss:$48 sps:$4 sm:$0xff]  }
  0x94   : > { %2621 = vmatprep.subr.bf16.mxu0 %v6548_v12  ;;  %2703 = vmatprep.subr.bf16.mxu1 %v6550_v13  ;;  %v6578_v32 = vld [vmem:[#allocation5 + $0x304] ss:$48 sps:$4 sm:$0xff]   ;;  %v6580_v33 = vld [vmem:[#allocation5 + $0x30c] ss:$48 sps:$4 sm:$0xff]   ;;  %v6582_v34 = vld [vmem:[#allocation5 + $0x300] ss:$48 sps:$4 sm:$0xff]  }
  0x95   : > { %v6583_v35 = vld [vmem:[#allocation5 + $0x308] ss:$48 sps:$4 sm:$0xff]   ;;  %v6584_v36 = vld [vmem:[#allocation5 + $0x364] ss:$48 sps:$4 sm:$0xff]   ;;  %v6586_v37 = vld [vmem:[#allocation5 + $0x36c] ss:$48 sps:$4 sm:$0xff]  }
  0x96   : > { %v6588_v38 = vld [vmem:[#allocation5 + $0x360] ss:$48 sps:$4 sm:$0xff]   ;;  %v6589_v39 = vld [vmem:[#allocation5 + $0x368] ss:$48 sps:$4 sm:$0xff]   ;;  %v6590_v40 = vld [vmem:[#allocation5 + $0x3c4] ss:$48 sps:$4 sm:$0xff]  }
  0x97   : > { %2622 = vmatpush1.bf16.msra.mxu0 %v6552_v14  ;;  %2704 = vmatpush1.bf16.msra.mxu1 %v6553_v15  ;;  %v6592_v41 = vld [vmem:[#allocation5 + $0x3cc] ss:$48 sps:$4 sm:$0xff]   ;;  %v6594_v42 = vld [vmem:[#allocation5 + $0x3c0] ss:$48 sps:$4 sm:$0xff]   ;;  %v6595_v43 = vld [vmem:[#allocation5 + $0x3c8] ss:$48 sps:$4 sm:$0xff]  }
  0x98   : > { %2623 = vmatprep.subr.bf16.mxu0 %v6554_v16  ;;  %2705 = vmatprep.subr.bf16.mxu1 %v6556_v17  ;;  %v6596_v44 = vld [vmem:[#allocation5 + $0x424] ss:$48 sps:$4 sm:$0xff]   ;;  %v6598_v45 = vld [vmem:[#allocation5 + $0x42c] ss:$48 sps:$4 sm:$0xff]   ;;  %v6600_v47 = vld [vmem:[#allocation5 + $0x420] ss:$48 sps:$4 sm:$0xff]  }
  0x99   : > { %v295_v46 = vld [vmem:[%s7793_s16] sm:$0xff]  ;;  %v6601_v49 = vld [vmem:[#allocation5 + $0x428] ss:$48 sps:$4 sm:$0xff]   ;;  %v6604_v51 = vld [vmem:[#allocation5 + $0x48c] ss:$48 sps:$4 sm:$0xff]   ;;  %vm7565_vm0 = vmmov 0  }
  0x9a   : > { %v7808_v48 = vcombine.high %v295_v46, %v295_v46  ;;  %v6602_v50 = vld [vmem:[#allocation5 + $0x484] ss:$48 sps:$4 sm:$0xff]   ;;  %v6606_v52 = vld [vmem:[#allocation5 + $0x480] ss:$48 sps:$4 sm:$0xff]   ;;  %v6607_v53 = vld [vmem:[#allocation5 + $0x488] ss:$48 sps:$4 sm:$0xff]   ;;  %v7812_v5 = vcombine.low %v295_v46, %v295_v46 }
  0x9b   : > { %2624 = vmatpush1.bf16.msra.mxu0 %v6558_v18  ;;  %2706 = vmatpush1.bf16.msra.mxu1 %v6559_v19  ;;  %v6608_v54 = vld [vmem:[#allocation5 + $0x4e4] ss:$48 sps:$4 sm:$0xff]   ;;  %v6610_v55 = vld [vmem:[#allocation5 + $0x4ec] ss:$48 sps:$4 sm:$0xff]   ;;  %v6612_v56 = vld [vmem:[#allocation5 + $0x4e0] ss:$48 sps:$4 sm:$0xff]  }
  0x9c   : > { %2625 = vmatprep.subr.bf16.mxu0 %v6560_v20  ;;  %2707 = vmatprep.subr.bf16.mxu1 %v6562_v21  ;;  %v6613_v57 = vld [vmem:[#allocation5 + $0x4e8] ss:$48 sps:$4 sm:$0xff]   ;;  %v6614_v58 = vld [vmem:[#allocation5 + $0x544] ss:$48 sps:$4 sm:$0xff]   ;;  %v6616_v59 = vld [vmem:[#allocation5 + $0x54c] ss:$48 sps:$4 sm:$0xff]  }
  0x9d   : > { %2647 = vmatprep.mubr.bf16.mxu0 %v7808_v48  ;;  %2729 = vmatprep.mubr.bf16.mxu1 %v7808_v48  ;;  %v6618_v60 = vld [vmem:[#allocation5 + $0x540] ss:$48 sps:$4 sm:$0xff]   ;;  %v6619_v61 = vld [vmem:[#allocation5 + $0x548] ss:$48 sps:$4 sm:$0xff]   ;;  %v6620_v62 = vld [vmem:[#allocation5 + $0x5a4] ss:$48 sps:$4 sm:$0xff]  }
  0x9e   : > { %v6622_v63 = vld [vmem:[#allocation5 + $0x5ac] ss:$48 sps:$4 sm:$0xff]   ;;  %v6624_v0 = vld [vmem:[#allocation5 + $0x5a0] ss:$48 sps:$4 sm:$0xff]   ;;  %v6625_v1 = vld [vmem:[#allocation5 + $0x5a8] ss:$48 sps:$4 sm:$0xff]  }
  0x9f   : > { %2626 = vmatpush1.bf16.msra.mxu0 %v6564_v22  ;;  %2708 = vmatpush1.bf16.msra.mxu1 %v6565_v23  ;;  %v6629_v2 = vld [vmem:[#allocation5 + $0x604] ss:$48 sps:$4 sm:$0xff]   ;;  %v6632_v3 = vld [vmem:[#allocation5 + $0x60c] ss:$48 sps:$4 sm:$0xff]   ;;  %v6627_v4 = vld [vmem:[#allocation5 + $0x600] ss:$48 sps:$4 sm:$0xff]  }
  0xa0   : > { %2627 = vmatprep.subr.bf16.mxu0 %v6566_v24  ;;  %2709 = vmatprep.subr.bf16.mxu1 %v6568_v25  ;;  %v6630_v6 = vld [vmem:[#allocation5 + $0x608] ss:$48 sps:$4 sm:$0xff]   ;;  %v6636_v7 = vld [vmem:[#allocation5 + $0x664] ss:$48 sps:$4 sm:$0xff]   ;;  %v6639_v8 = vld [vmem:[#allocation5 + $0x66c] ss:$48 sps:$4 sm:$0xff]  }
  0xa1   : > { %v6634_v9 = vld [vmem:[#allocation5 + $0x660] ss:$48 sps:$4 sm:$0xff]   ;;  %v6637_v10 = vld [vmem:[#allocation5 + $0x668] ss:$48 sps:$4 sm:$0xff]   ;;  %v6642_v11 = vld [vmem:[#allocation5 + $0x6c4] ss:$48 sps:$4 sm:$0xff]  }
  0xa2   : > { %v6645_v12 = vld [vmem:[#allocation5 + $0x6cc] ss:$48 sps:$4 sm:$0xff]   ;;  %v6640_v13 = vld [vmem:[#allocation5 + $0x6c0] ss:$48 sps:$4 sm:$0xff]   ;;  %v6643_v14 = vld [vmem:[#allocation5 + $0x6c8] ss:$48 sps:$4 sm:$0xff]  }
  0xa3   : > { %2628 = vmatpush1.bf16.msra.mxu0 %v6570_v26  ;;  %2710 = vmatpush1.bf16.msra.mxu1 %v6571_v27  ;;  %v6648_v15 = vld [vmem:[#allocation5 + $0x724] ss:$48 sps:$4 sm:$0xff]   ;;  %v6651_v16 = vld [vmem:[#allocation5 + $0x72c] ss:$48 sps:$4 sm:$0xff]   ;;  %v6646_v17 = vld [vmem:[#allocation5 + $0x720] ss:$48 sps:$4 sm:$0xff]  }
  0xa4   : > { %2629 = vmatprep.subr.bf16.mxu0 %v6572_v28  ;;  %2711 = vmatprep.subr.bf16.mxu1 %v6574_v29  ;;  %v6649_v18 = vld [vmem:[#allocation5 + $0x728] ss:$48 sps:$4 sm:$0xff]   ;;  %v6654_v19 = vld [vmem:[#allocation5 + $0x784] ss:$48 sps:$4 sm:$0xff]   ;;  %v6657_v20 = vld [vmem:[#allocation5 + $0x78c] ss:$48 sps:$4 sm:$0xff]  }
  0xa5   : > { %v6652_v21 = vld [vmem:[#allocation5 + $0x780] ss:$48 sps:$4 sm:$0xff]   ;;  %v6655_v22 = vld [vmem:[#allocation5 + $0x788] ss:$48 sps:$4 sm:$0xff]   ;;  %v6660_v23 = vld [vmem:[#allocation5 + $0x7e4] ss:$48 sps:$4 sm:$0xff]  }
  0xa6   : > { %v6663_v24 = vld [vmem:[#allocation5 + $0x7ec] ss:$48 sps:$4 sm:$0xff]   ;;  %v6658_v25 = vld [vmem:[#allocation5 + $0x7e0] ss:$48 sps:$4 sm:$0xff]   ;;  %v6661_v26 = vld [vmem:[#allocation5 + $0x7e8] ss:$48 sps:$4 sm:$0xff]  }
  0xa7   : > { %2630 = vmatpush1.bf16.msra.mxu0 %v6576_v30  ;;  %2712 = vmatpush1.bf16.msra.mxu1 %v6577_v31  ;;  %v6666_v27 = vld [vmem:[#allocation5 + $0x844] ss:$48 sps:$4 sm:$0xff]   ;;  %v6669_v28 = vld [vmem:[#allocation5 + $0x84c] ss:$48 sps:$4 sm:$0xff]   ;;  %v6664_v31 = vld [vmem:[#allocation5 + $0x840] ss:$48 sps:$4 sm:$0xff]  }
  0xa8   : > { %2631 = vmatprep.subr.bf16.mxu0 %v6578_v32  ;;  %2713 = vmatprep.subr.bf16.mxu1 %v6580_v33  ;;  %v7817_v29 = vld [vmem:[%s7793_s16 + $0x8] sm:$0xff]  ;;  %v6672_v33 = vld [vmem:[#allocation5 + $0x8a4] ss:$48 sps:$4 sm:$0xff]   ;;  %vm3187_vm1 = vcmask 523264   ;;  %s7566_s24 = smov 64   ;;  %vm3664_vm2 = vcmask 1043456  }
  0xa9   : > { %v7821_v30 = vcombine.high %v7817_v29, %v7817_v29  ;;  %v6667_v32 = vld [vmem:[#allocation5 + $0x848] ss:$48 sps:$4 sm:$0xff]   ;;  %v6693_v46 = vld [vmem:[#allocation5 + $0x9cc] ss:$48 sps:$4 sm:$0xff]   ;;  %vm3556_vm3 = vcmask 64512   ;;  %s5726_s26 = sshll.u32 %s7789_s14, 6 }
  0xaa   : > { %s7975_s27 = scalar_lea.vmem [#allocation11], %s5726_s26  ;;  %s6285_s13 = sshll.u32 %s7623_s22, 10 }
  0xab   : > { %2632 = vmatpush1.bf16.msra.mxu0 %v6582_v34  ;;  %2714 = vmatpush1.bf16.msra.mxu1 %v6583_v35  ;;  %v6675_v34 = vld [vmem:[#allocation5 + $0x8ac] ss:$48 sps:$4 sm:$0xff]   ;;  %v6670_v35 = vld [vmem:[#allocation5 + $0x8a0] ss:$48 sps:$4 sm:$0xff]   ;;  %s5577_s28 = sshll.u32 %s7975_s27, 4  ;;  %s8091_s8 = scalar_lea.hbm %s8173_s5, %s6285_s13  ;;  %s8093_s28 = int_to_ptr.vmem [resolvable:$true] %s5577_s28 }
  0xac   : > { %2633 = vmatprep.subr.bf16.mxu0 %v6584_v36  ;;  %2715 = vmatprep.subr.bf16.mxu1 %v6586_v37  ;;  %v6673_v36 = vld [vmem:[#allocation5 + $0x8a8] ss:$48 sps:$4 sm:$0xff]   ;;  %v6678_v37 = vld [vmem:[#allocation5 + $0x904] ss:$48 sps:$4 sm:$0xff]   ;;  %s5550_s23 = scalar_lea.sflag [#allocation12], %s7789_s14  ;;  %s7448_s9 = scalar_lea.vmem %s8093_s28, 1024 }
  0xad   : > { %p7449_p10 = scmp.ne.s32.totalorder %s8093_s28, %s7448_s9  ;;  %s7568_s10 = smov [#allocation11]  }
  0xae   : > { %s7452_s11 = sshll.u32 %s7568_s10, 4  ;;  %s7453_s11 = int_to_ptr.vmem [resolvable:$false] %s7452_s11 }
  0xaf   : > { %2634 = vmatpush1.bf16.msra.mxu0 %v6588_v38  ;;  %2716 = vmatpush1.bf16.msra.mxu1 %v6589_v39  ;;  %v6681_v38 = vld [vmem:[#allocation5 + $0x90c] ss:$48 sps:$4 sm:$0xff]   ;;  %v6676_v39 = vld [vmem:[#allocation5 + $0x900] ss:$48 sps:$4 sm:$0xff]   ;;  %p7450_p3 = pnand %p7449_p10, %p7744_p5  ;;  %s7454_s15 = scalar_lea.vmem %s7453_s11, 2048 }
  0xb0   : > { %2635 = vmatprep.subr.bf16.mxu0 %v6590_v40  ;;  %2717 = vmatprep.subr.bf16.mxu1 %v6592_v41  ;;  %v6679_v40 = vld [vmem:[#allocation5 + $0x908] ss:$48 sps:$4 sm:$0xff]   ;;  %v6684_v41 = vld [vmem:[#allocation5 + $0x964] ss:$48 sps:$4 sm:$0xff]   ;;  %p7455_p12 = scmp.lt.s32.totalorder %s8093_s28, %s7453_s11  ;;  %p7456_p2 = scmp.lt.s32.totalorder %s7454_s15, %s7448_s9 }
  0xb1   : > { %p7451_p7 = pneg %p7450_p3 }
  0xb2   : > { %p7457_p1 = por %p7456_p2, %p7455_p12 }
  0xb3   : > { %2636 = vmatpush1.bf16.msra.mxu0 %v6594_v42  ;;  %2718 = vmatpush1.bf16.msra.mxu1 %v6595_v43  ;;  %v6687_v42 = vld [vmem:[#allocation5 + $0x96c] ss:$48 sps:$4 sm:$0xff]   ;;  %v6682_v43 = vld [vmem:[#allocation5 + $0x960] ss:$48 sps:$4 sm:$0xff]  }
  0xb4   : > { %2637 = vmatprep.subr.bf16.mxu0 %v6596_v44  ;;  %2719 = vmatprep.subr.bf16.mxu1 %v6598_v45  ;;  %v6685_v44 = vld [vmem:[#allocation5 + $0x968] ss:$48 sps:$4 sm:$0xff]   ;;  %v6690_v45 = vld [vmem:[#allocation5 + $0x9c4] ss:$48 sps:$4 sm:$0xff]   ;;  %p7458_p4 = pnand %p7457_p1, %p7451_p7 }
  0xb7   : > { %2638 = vmatpush1.bf16.msra.mxu0 %v6600_v47  ;;  %2720 = vmatpush1.bf16.msra.mxu1 %v6601_v49  ;;  %v6688_v47 = vld [vmem:[#allocation5 + $0x9c0] ss:$48 sps:$4 sm:$0xff]   ;;  %v6691_v49 = vld [vmem:[#allocation5 + $0x9c8] ss:$48 sps:$4 sm:$0xff]  }
  0xb8   : > { %2639 = vmatprep.subr.bf16.mxu0 %v6602_v50  ;;  %2721 = vmatprep.subr.bf16.mxu1 %v6604_v51  ;;  %v6696_v50 = vld [vmem:[#allocation5 + $0xa24] ss:$48 sps:$4 sm:$0xff]   ;;  %v6699_v51 = vld [vmem:[#allocation5 + $0xa2c] ss:$48 sps:$4 sm:$0xff]  }
  0xbb   : > { %2640 = vmatpush1.bf16.msra.mxu0 %v6606_v52  ;;  %2722 = vmatpush1.bf16.msra.mxu1 %v6607_v53  ;;  %v6694_v52 = vld [vmem:[#allocation5 + $0xa20] ss:$48 sps:$4 sm:$0xff]   ;;  %v6697_v53 = vld [vmem:[#allocation5 + $0xa28] ss:$48 sps:$4 sm:$0xff]  }
  0xbc   : > { %2641 = vmatprep.subr.bf16.mxu0 %v6608_v54  ;;  %2723 = vmatprep.subr.bf16.mxu1 %v6610_v55  ;;  %v6702_v54 = vld [vmem:[#allocation5 + $0xa84] ss:$48 sps:$4 sm:$0xff]   ;;  %v6705_v55 = vld [vmem:[#allocation5 + $0xa8c] ss:$48 sps:$4 sm:$0xff]  }
  0xbf   : > { %2642 = vmatpush1.bf16.msra.mxu0 %v6612_v56  ;;  %2724 = vmatpush1.bf16.msra.mxu1 %v6613_v57  ;;  %v6700_v56 = vld [vmem:[#allocation5 + $0xa80] ss:$48 sps:$4 sm:$0xff]   ;;  %v6703_v57 = vld [vmem:[#allocation5 + $0xa88] ss:$48 sps:$4 sm:$0xff]  }
  0xc0   : > { %2643 = vmatprep.subr.bf16.mxu0 %v6614_v58  ;;  %2725 = vmatprep.subr.bf16.mxu1 %v6616_v59  ;;  %v6708_v58 = vld [vmem:[#allocation5 + $0xae4] ss:$48 sps:$4 sm:$0xff]   ;;  %v6711_v59 = vld [vmem:[#allocation5 + $0xaec] ss:$48 sps:$4 sm:$0xff]  }
  0xc3   : > { %2644 = vmatpush1.bf16.msra.mxu0 %v6618_v60  ;;  %2726 = vmatpush1.bf16.msra.mxu1 %v6619_v61  ;;  %v6706_v60 = vld [vmem:[#allocation5 + $0xae0] ss:$48 sps:$4 sm:$0xff]   ;;  %v6709_v61 = vld [vmem:[#allocation5 + $0xae8] ss:$48 sps:$4 sm:$0xff]  }
  0xc4   : > { %2645 = vmatprep.subr.bf16.mxu0 %v6620_v62  ;;  %2727 = vmatprep.subr.bf16.mxu1 %v6622_v63  ;;  %v6714_v62 = vld [vmem:[#allocation5 + $0xb44] ss:$48 sps:$4 sm:$0xff]   ;;  %v6717_v63 = vld [vmem:[#allocation5 + $0xb4c] ss:$48 sps:$4 sm:$0xff]  }
  0xc7   : > { %2646 = vmatpush1.bf16.msra.mxu0 %v6624_v0  ;;  %2728 = vmatpush1.bf16.msra.mxu1 %v6625_v1  ;;  %v6712_v0 = vld [vmem:[#allocation5 + $0xb40] ss:$48 sps:$4 sm:$0xff]   ;;  %v6715_v1 = vld [vmem:[#allocation5 + $0xb48] ss:$48 sps:$4 sm:$0xff]  }
  0xc8   : > { %2656 = vmatprep.subr.bf16.mxu0 %v6629_v2  ;;  %2738 = vmatprep.subr.bf16.mxu1 %v6632_v3  ;;  %v6720_v2 = vld [vmem:[#allocation5 + $0xba4] ss:$48 sps:$4 sm:$0xff]   ;;  %v6723_v3 = vld [vmem:[#allocation5 + $0xbac] ss:$48 sps:$4 sm:$0xff]  }
  0xca   : > { %2648 = vmatmul.mubr.bf16.vlgmr.msra.gmra.mrb[0].mxu0 %v7812_v5  ;;  %2730 = vmatmul.mubr.bf16.vlgmr.msra.gmra.mrb[0].mxu1 %v7812_v5 }
  0xcb   : > { %2657 = vmatpush1.bf16.msra.mxu0 %v6627_v4  ;;  %2739 = vmatpush1.bf16.msra.mxu1 %v6630_v6  ;;  %v6718_v4 = vld [vmem:[#allocation5 + $0xba0] ss:$48 sps:$4 sm:$0xff]   ;;  %v6721_v6 = vld [vmem:[#allocation5 + $0xba8] ss:$48 sps:$4 sm:$0xff]  }
  0xcc   : > { %2658 = vmatprep.subr.bf16.mxu0 %v6636_v7  ;;  %2740 = vmatprep.subr.bf16.mxu1 %v6639_v8  ;;  %v6728_v7 = vld [vmem:[#allocation5 + $0x14] ss:$48 sps:$4 sm:$0xff]   ;;  %v6731_v8 = vld [vmem:[#allocation5 + $0x1c] ss:$48 sps:$4 sm:$0xff]  }
  0xcd   : > { %2688 = vmatprep.mubr.bf16.mxu0 %v7821_v30  ;;  %2770 = vmatprep.mubr.bf16.mxu1 %v7821_v30 }
  0xcf   : > { %2659 = vmatpush1.bf16.msra.mxu0 %v6634_v9  ;;  %2741 = vmatpush1.bf16.msra.mxu1 %v6637_v10  ;;  %v7827_v9 = vcombine.low %v7817_v29, %v7817_v29  ;;  %v6726_v10 = vld [vmem:[#allocation5 + $0x10] ss:$48 sps:$4 sm:$0xff]   ;;  %v6761_v29 = vld [vmem:[#allocation5 + $0x1fc] ss:$48 sps:$4 sm:$0xff]  }
  0xd0   : > { %2660 = vmatprep.subr.bf16.mxu0 %v6642_v11  ;;  %2742 = vmatprep.subr.bf16.mxu1 %v6645_v12  ;;  %v6729_v11 = vld [vmem:[#allocation5 + $0x18] ss:$48 sps:$4 sm:$0xff]   ;;  %v6734_v12 = vld [vmem:[#allocation5 + $0x74] ss:$48 sps:$4 sm:$0xff]  }
  0xd3   : > { %2661 = vmatpush1.bf16.msra.mxu0 %v6640_v13  ;;  %2743 = vmatpush1.bf16.msra.mxu1 %v6643_v14  ;;  %v6737_v13 = vld [vmem:[#allocation5 + $0x7c] ss:$48 sps:$4 sm:$0xff]   ;;  %v6732_v14 = vld [vmem:[#allocation5 + $0x70] ss:$48 sps:$4 sm:$0xff]  }
  0xd4   : > { %2662 = vmatprep.subr.bf16.mxu0 %v6648_v15  ;;  %2744 = vmatprep.subr.bf16.mxu1 %v6651_v16  ;;  %v6735_v15 = vld [vmem:[#allocation5 + $0x78] ss:$48 sps:$4 sm:$0xff]   ;;  %v6740_v16 = vld [vmem:[#allocation5 + $0xd4] ss:$48 sps:$4 sm:$0xff]  }
  0xd7   : > { %2663 = vmatpush1.bf16.msra.mxu0 %v6646_v17  ;;  %2745 = vmatpush1.bf16.msra.mxu1 %v6649_v18  ;;  %v6743_v17 = vld [vmem:[#allocation5 + $0xdc] ss:$48 sps:$4 sm:$0xff]   ;;  %v6738_v18 = vld [vmem:[#allocation5 + $0xd0] ss:$48 sps:$4 sm:$0xff]  }
  0xd8   : > { %2664 = vmatprep.subr.bf16.mxu0 %v6654_v19  ;;  %2746 = vmatprep.subr.bf16.mxu1 %v6657_v20  ;;  %v6741_v19 = vld [vmem:[#allocation5 + $0xd8] ss:$48 sps:$4 sm:$0xff]   ;;  %v6746_v20 = vld [vmem:[#allocation5 + $0x134] ss:$48 sps:$4 sm:$0xff]  }
  0xdb   : > { %2665 = vmatpush1.bf16.msra.mxu0 %v6652_v21  ;;  %2747 = vmatpush1.bf16.msra.mxu1 %v6655_v22  ;;  %v6749_v21 = vld [vmem:[#allocation5 + $0x13c] ss:$48 sps:$4 sm:$0xff]   ;;  %v6744_v22 = vld [vmem:[#allocation5 + $0x130] ss:$48 sps:$4 sm:$0xff]  }
  0xdc   : > { %2666 = vmatprep.subr.bf16.mxu0 %v6660_v23  ;;  %2748 = vmatprep.subr.bf16.mxu1 %v6663_v24  ;;  %v6747_v23 = vld [vmem:[#allocation5 + $0x138] ss:$48 sps:$4 sm:$0xff]   ;;  %v6752_v24 = vld [vmem:[#allocation5 + $0x194] ss:$48 sps:$4 sm:$0xff]  }
  0xdf   : > { %2667 = vmatpush1.bf16.msra.mxu0 %v6658_v25  ;;  %2749 = vmatpush1.bf16.msra.mxu1 %v6661_v26  ;;  %v6755_v25 = vld [vmem:[#allocation5 + $0x19c] ss:$48 sps:$4 sm:$0xff]   ;;  %v6750_v26 = vld [vmem:[#allocation5 + $0x190] ss:$48 sps:$4 sm:$0xff]  }
  0xe0   : > { %2668 = vmatprep.subr.bf16.mxu0 %v6666_v27  ;;  %2750 = vmatprep.subr.bf16.mxu1 %v6669_v28  ;;  %v6753_v27 = vld [vmem:[#allocation5 + $0x198] ss:$48 sps:$4 sm:$0xff]   ;;  %v6758_v28 = vld [vmem:[#allocation5 + $0x1f4] ss:$48 sps:$4 sm:$0xff]  }
  0xe3   : > { %2669 = vmatpush1.bf16.msra.mxu0 %v6664_v31  ;;  %2751 = vmatpush1.bf16.msra.mxu1 %v6667_v32  ;;  %v6756_v31 = vld [vmem:[#allocation5 + $0x1f0] ss:$48 sps:$4 sm:$0xff]   ;;  %v6759_v32 = vld [vmem:[#allocation5 + $0x1f8] ss:$48 sps:$4 sm:$0xff]  }
  0xe4   : > { %2670 = vmatprep.subr.bf16.mxu0 %v6672_v33  ;;  %2752 = vmatprep.subr.bf16.mxu1 %v6675_v34  ;;  %v6764_v33 = vld [vmem:[#allocation5 + $0x254] ss:$48 sps:$4 sm:$0xff]   ;;  %v6767_v34 = vld [vmem:[#allocation5 + $0x25c] ss:$48 sps:$4 sm:$0xff]  }
  0xe7   : > { %2671 = vmatpush1.bf16.msra.mxu0 %v6670_v35  ;;  %2753 = vmatpush1.bf16.msra.mxu1 %v6673_v36  ;;  %v6762_v35 = vld [vmem:[#allocation5 + $0x250] ss:$48 sps:$4 sm:$0xff]   ;;  %v6765_v36 = vld [vmem:[#allocation5 + $0x258] ss:$48 sps:$4 sm:$0xff]  }
  0xe8   : > { %2672 = vmatprep.subr.bf16.mxu0 %v6678_v37  ;;  %2754 = vmatprep.subr.bf16.mxu1 %v6681_v38  ;;  %v6770_v37 = vld [vmem:[#allocation5 + $0x2b4] ss:$48 sps:$4 sm:$0xff]   ;;  %v6773_v38 = vld [vmem:[#allocation5 + $0x2bc] ss:$48 sps:$4 sm:$0xff]  }
  0xeb   : > { %2673 = vmatpush1.bf16.msra.mxu0 %v6676_v39  ;;  %2755 = vmatpush1.bf16.msra.mxu1 %v6679_v40  ;;  %v6768_v39 = vld [vmem:[#allocation5 + $0x2b0] ss:$48 sps:$4 sm:$0xff]   ;;  %v6771_v40 = vld [vmem:[#allocation5 + $0x2b8] ss:$48 sps:$4 sm:$0xff]  }
  0xec   : > { %2674 = vmatprep.subr.bf16.mxu0 %v6684_v41  ;;  %2756 = vmatprep.subr.bf16.mxu1 %v6687_v42  ;;  %v6776_v41 = vld [vmem:[#allocation5 + $0x314] ss:$48 sps:$4 sm:$0xff]   ;;  %v6779_v42 = vld [vmem:[#allocation5 + $0x31c] ss:$48 sps:$4 sm:$0xff]  }
  0xef   : > { %2675 = vmatpush1.bf16.msra.mxu0 %v6682_v43  ;;  %2757 = vmatpush1.bf16.msra.mxu1 %v6685_v44  ;;  %v6774_v43 = vld [vmem:[#allocation5 + $0x310] ss:$48 sps:$4 sm:$0xff]   ;;  %v6777_v44 = vld [vmem:[#allocation5 + $0x318] ss:$48 sps:$4 sm:$0xff]  }
  0xf0   : > { %2676 = vmatprep.subr.bf16.mxu0 %v6690_v45  ;;  %2758 = vmatprep.subr.bf16.mxu1 %v6693_v46  ;;  %v6782_v45 = vld [vmem:[#allocation5 + $0x374] ss:$48 sps:$4 sm:$0xff]   ;;  %v6785_v46 = vld [vmem:[#allocation5 + $0x37c] ss:$48 sps:$4 sm:$0xff]  }
  0xf3   : > { %2677 = vmatpush1.bf16.msra.mxu0 %v6688_v47  ;;  %2759 = vmatpush1.bf16.msra.mxu1 %v6691_v49  ;;  %v6780_v47 = vld [vmem:[#allocation5 + $0x370] ss:$48 sps:$4 sm:$0xff]   ;;  %v6783_v49 = vld [vmem:[#allocation5 + $0x378] ss:$48 sps:$4 sm:$0xff]  }
  0xf4   : > { %2678 = vmatprep.subr.bf16.mxu0 %v6696_v50  ;;  %2760 = vmatprep.subr.bf16.mxu1 %v6699_v51  ;;  %v6788_v50 = vld [vmem:[#allocation5 + $0x3d4] ss:$48 sps:$4 sm:$0xff]   ;;  %v6791_v51 = vld [vmem:[#allocation5 + $0x3dc] ss:$48 sps:$4 sm:$0xff]  }
  0xf7   : > { %2679 = vmatpush1.bf16.msra.mxu0 %v6694_v52  ;;  %2761 = vmatpush1.bf16.msra.mxu1 %v6697_v53  ;;  %v6786_v52 = vld [vmem:[#allocation5 + $0x3d0] ss:$48 sps:$4 sm:$0xff]   ;;  %v6789_v53 = vld [vmem:[#allocation5 + $0x3d8] ss:$48 sps:$4 sm:$0xff]  }
  0xf8   : > { %2680 = vmatprep.subr.bf16.mxu0 %v6702_v54  ;;  %2762 = vmatprep.subr.bf16.mxu1 %v6705_v55  ;;  %v6794_v54 = vld [vmem:[#allocation5 + $0x434] ss:$48 sps:$4 sm:$0xff]   ;;  %v6797_v55 = vld [vmem:[#allocation5 + $0x43c] ss:$48 sps:$4 sm:$0xff]  }
  0xfb   : > { %2681 = vmatpush1.bf16.msra.mxu0 %v6700_v56  ;;  %2763 = vmatpush1.bf16.msra.mxu1 %v6703_v57  ;;  %v6792_v56 = vld [vmem:[#allocation5 + $0x430] ss:$48 sps:$4 sm:$0xff]   ;;  %v6795_v57 = vld [vmem:[#allocation5 + $0x438] ss:$48 sps:$4 sm:$0xff]  }
  0xfc   : > { %2682 = vmatprep.subr.bf16.mxu0 %v6708_v58  ;;  %2764 = vmatprep.subr.bf16.mxu1 %v6711_v59  ;;  %v6800_v58 = vld [vmem:[#allocation5 + $0x494] ss:$48 sps:$4 sm:$0xff]   ;;  %v6803_v59 = vld [vmem:[#allocation5 + $0x49c] ss:$48 sps:$4 sm:$0xff]  }
  0xff   : > { %2683 = vmatpush1.bf16.msra.mxu0 %v6706_v60  ;;  %2765 = vmatpush1.bf16.msra.mxu1 %v6709_v61  ;;  %v6798_v60 = vld [vmem:[#allocation5 + $0x490] ss:$48 sps:$4 sm:$0xff]   ;;  %v6801_v61 = vld [vmem:[#allocation5 + $0x498] ss:$48 sps:$4 sm:$0xff]  }
 0x100   : > { %2684 = vmatprep.subr.bf16.mxu0 %v6714_v62  ;;  %2766 = vmatprep.subr.bf16.mxu1 %v6717_v63  ;;  %v6806_v62 = vld [vmem:[#allocation5 + $0x4f4] ss:$48 sps:$4 sm:$0xff]   ;;  %v6809_v63 = vld [vmem:[#allocation5 + $0x4fc] ss:$48 sps:$4 sm:$0xff]  }
 0x103   : > { %2685 = vmatpush1.bf16.msra.mxu0 %v6712_v0  ;;  %2767 = vmatpush1.bf16.msra.mxu1 %v6715_v1  ;;  %v6804_v0 = vld [vmem:[#allocation5 + $0x4f0] ss:$48 sps:$4 sm:$0xff]   ;;  %v6807_v1 = vld [vmem:[#allocation5 + $0x4f8] ss:$48 sps:$4 sm:$0xff]  }
 0x104   : > { %2686 = vmatprep.subr.bf16.mxu0 %v6720_v2  ;;  %2768 = vmatprep.subr.bf16.mxu1 %v6723_v3  ;;  %v6812_v2 = vld [vmem:[#allocation5 + $0x554] ss:$48 sps:$4 sm:$0xff]   ;;  %v6815_v3 = vld [vmem:[#allocation5 + $0x55c] ss:$48 sps:$4 sm:$0xff]  }
 0x107   : > { %2687 = vmatpush1.bf16.msra.mxu0 %v6718_v4  ;;  %2769 = vmatpush1.bf16.msra.mxu1 %v6721_v6  ;;  %v6810_v4 = vld [vmem:[#allocation5 + $0x550] ss:$48 sps:$4 sm:$0xff]   ;;  %v6813_v6 = vld [vmem:[#allocation5 + $0x558] ss:$48 sps:$4 sm:$0xff]  }
 0x108   : > { %2779 = vmatprep.subr.bf16.mxu0 %v6728_v7  ;;  %2861 = vmatprep.subr.bf16.mxu1 %v6731_v8  ;;  %v6818_v7 = vld [vmem:[#allocation5 + $0x5b4] ss:$48 sps:$4 sm:$0xff]   ;;  %v6821_v8 = vld [vmem:[#allocation5 + $0x5bc] ss:$48 sps:$4 sm:$0xff]  }
 0x10a   : > { %2689 = vmatmul.mubr.bf16.vlgmr.msra.gmra.mrb[0].mxu0 %v7827_v9  ;;  %2771 = vmatmul.mubr.bf16.vlgmr.msra.gmra.mrb[0].mxu1 %v7827_v9 }
 0x10b   : > { %2780 = vmatpush1.bf16.msra.mxu0 %v6726_v10  ;;  %2862 = vmatpush1.bf16.msra.mxu1 %v6729_v11  ;;  %v6816_v10 = vld [vmem:[#allocation5 + $0x5b0] ss:$48 sps:$4 sm:$0xff]   ;;  %v6819_v11 = vld [vmem:[#allocation5 + $0x5b8] ss:$48 sps:$4 sm:$0xff]  }
 0x10c   : > { %2781 = vmatprep.subr.bf16.mxu0 %v6734_v12  ;;  %2863 = vmatprep.subr.bf16.mxu1 %v6737_v13  ;;  %v6824_v12 = vld [vmem:[#allocation5 + $0x614] ss:$48 sps:$4 sm:$0xff]   ;;  %v6827_v13 = vld [vmem:[#allocation5 + $0x61c] ss:$48 sps:$4 sm:$0xff]  }
 0x10d   : > { %2811 = vmatprep.mubr.bf16.mxu0 %v7808_v48  ;;  %2893 = vmatprep.mubr.bf16.mxu1 %v7808_v48 }
 0x10f   : > { %2782 = vmatpush1.bf16.msra.mxu0 %v6732_v14  ;;  %2864 = vmatpush1.bf16.msra.mxu1 %v6735_v15  ;;  %v6822_v14 = vld [vmem:[#allocation5 + $0x610] ss:$48 sps:$4 sm:$0xff]   ;;  %v6825_v15 = vld [vmem:[#allocation5 + $0x618] ss:$48 sps:$4 sm:$0xff]  }
 0x110   : > { %2783 = vmatprep.subr.bf16.mxu0 %v6740_v16  ;;  %2865 = vmatprep.subr.bf16.mxu1 %v6743_v17  ;;  %v6830_v16 = vld [vmem:[#allocation5 + $0x674] ss:$48 sps:$4 sm:$0xff]   ;;  %v6833_v17 = vld [vmem:[#allocation5 + $0x67c] ss:$48 sps:$4 sm:$0xff]  }
 0x113   : > { %2784 = vmatpush1.bf16.msra.mxu0 %v6738_v18  ;;  %2866 = vmatpush1.bf16.msra.mxu1 %v6741_v19  ;;  %v6828_v18 = vld [vmem:[#allocation5 + $0x670] ss:$48 sps:$4 sm:$0xff]   ;;  %v6831_v19 = vld [vmem:[#allocation5 + $0x678] ss:$48 sps:$4 sm:$0xff]  }
 0x114   : > { %2785 = vmatprep.subr.bf16.mxu0 %v6746_v20  ;;  %2867 = vmatprep.subr.bf16.mxu1 %v6749_v21  ;;  %v6836_v20 = vld [vmem:[#allocation5 + $0x6d4] ss:$48 sps:$4 sm:$0xff]   ;;  %v6839_v21 = vld [vmem:[#allocation5 + $0x6dc] ss:$48 sps:$4 sm:$0xff]  }
 0x117   : > { %2786 = vmatpush1.bf16.msra.mxu0 %v6744_v22  ;;  %2868 = vmatpush1.bf16.msra.mxu1 %v6747_v23  ;;  %v6834_v22 = vld [vmem:[#allocation5 + $0x6d0] ss:$48 sps:$4 sm:$0xff]   ;;  %v6837_v23 = vld [vmem:[#allocation5 + $0x6d8] ss:$48 sps:$4 sm:$0xff]  }
 0x118   : > { %2787 = vmatprep.subr.bf16.mxu0 %v6752_v24  ;;  %2869 = vmatprep.subr.bf16.mxu1 %v6755_v25  ;;  %v6842_v24 = vld [vmem:[#allocation5 + $0x734] ss:$48 sps:$4 sm:$0xff]   ;;  %v6845_v25 = vld [vmem:[#allocation5 + $0x73c] ss:$48 sps:$4 sm:$0xff]  }
 0x11b   : > { %2788 = vmatpush1.bf16.msra.mxu0 %v6750_v26  ;;  %2870 = vmatpush1.bf16.msra.mxu1 %v6753_v27  ;;  %v6840_v26 = vld [vmem:[#allocation5 + $0x730] ss:$48 sps:$4 sm:$0xff]   ;;  %v6843_v27 = vld [vmem:[#allocation5 + $0x738] ss:$48 sps:$4 sm:$0xff]  }
 0x11c   : > { %2789 = vmatprep.subr.bf16.mxu0 %v6758_v28  ;;  %2871 = vmatprep.subr.bf16.mxu1 %v6761_v29  ;;  %v6848_v28 = vld [vmem:[#allocation5 + $0x794] ss:$48 sps:$4 sm:$0xff]   ;;  %v6851_v29 = vld [vmem:[#allocation5 + $0x79c] ss:$48 sps:$4 sm:$0xff]  }
 0x11f   : > { %2790 = vmatpush1.bf16.msra.mxu0 %v6756_v31  ;;  %2872 = vmatpush1.bf16.msra.mxu1 %v6759_v32  ;;  %v6846_v31 = vld [vmem:[#allocation5 + $0x790] ss:$48 sps:$4 sm:$0xff]   ;;  %v6849_v32 = vld [vmem:[#allocation5 + $0x798] ss:$48 sps:$4 sm:$0xff]  }
 0x120   : > { %2791 = vmatprep.subr.bf16.mxu0 %v6764_v33  ;;  %2873 = vmatprep.subr.bf16.mxu1 %v6767_v34  ;;  %v6854_v33 = vld [vmem:[#allocation5 + $0x7f4] ss:$48 sps:$4 sm:$0xff]   ;;  %v6857_v34 = vld [vmem:[#allocation5 + $0x7fc] ss:$48 sps:$4 sm:$0xff]  }
 0x123   : > { %2792 = vmatpush1.bf16.msra.mxu0 %v6762_v35  ;;  %2874 = vmatpush1.bf16.msra.mxu1 %v6765_v36  ;;  %v6852_v35 = vld [vmem:[#allocation5 + $0x7f0] ss:$48 sps:$4 sm:$0xff]   ;;  %v6855_v36 = vld [vmem:[#allocation5 + $0x7f8] ss:$48 sps:$4 sm:$0xff]  }
 0x124   : > { %2793 = vmatprep.subr.bf16.mxu0 %v6770_v37  ;;  %2875 = vmatprep.subr.bf16.mxu1 %v6773_v38  ;;  %v6860_v37 = vld [vmem:[#allocation5 + $0x854] ss:$48 sps:$4 sm:$0xff]   ;;  %v6863_v38 = vld [vmem:[#allocation5 + $0x85c] ss:$48 sps:$4 sm:$0xff]  }
 0x127   : > { %2794 = vmatpush1.bf16.msra.mxu0 %v6768_v39  ;;  %2876 = vmatpush1.bf16.msra.mxu1 %v6771_v40  ;;  %v6858_v39 = vld [vmem:[#allocation5 + $0x850] ss:$48 sps:$4 sm:$0xff]   ;;  %v6861_v40 = vld [vmem:[#allocation5 + $0x858] ss:$48 sps:$4 sm:$0xff]  }
 0x128   : > { %2795 = vmatprep.subr.bf16.mxu0 %v6776_v41  ;;  %2877 = vmatprep.subr.bf16.mxu1 %v6779_v42  ;;  %v6866_v41 = vld [vmem:[#allocation5 + $0x8b4] ss:$48 sps:$4 sm:$0xff]   ;;  %v6869_v42 = vld [vmem:[#allocation5 + $0x8bc] ss:$48 sps:$4 sm:$0xff]  }
 0x12b   : > { %2796 = vmatpush1.bf16.msra.mxu0 %v6774_v43  ;;  %2878 = vmatpush1.bf16.msra.mxu1 %v6777_v44  ;;  %v6864_v43 = vld [vmem:[#allocation5 + $0x8b0] ss:$48 sps:$4 sm:$0xff]   ;;  %v6867_v44 = vld [vmem:[#allocation5 + $0x8b8] ss:$48 sps:$4 sm:$0xff]  }
 0x12c   : > { %2797 = vmatprep.subr.bf16.mxu0 %v6782_v45  ;;  %2879 = vmatprep.subr.bf16.mxu1 %v6785_v46  ;;  %v6872_v45 = vld [vmem:[#allocation5 + $0x914] ss:$48 sps:$4 sm:$0xff]   ;;  %v6875_v46 = vld [vmem:[#allocation5 + $0x91c] ss:$48 sps:$4 sm:$0xff]  }
 0x12f   : > { %2798 = vmatpush1.bf16.msra.mxu0 %v6780_v47  ;;  %2880 = vmatpush1.bf16.msra.mxu1 %v6783_v49  ;;  %v6870_v47 = vld [vmem:[#allocation5 + $0x910] ss:$48 sps:$4 sm:$0xff]   ;;  %v6873_v49 = vld [vmem:[#allocation5 + $0x918] ss:$48 sps:$4 sm:$0xff]  }
 0x130   : > { %2799 = vmatprep.subr.bf16.mxu0 %v6788_v50  ;;  %2881 = vmatprep.subr.bf16.mxu1 %v6791_v51  ;;  %v6878_v50 = vld [vmem:[#allocation5 + $0x974] ss:$48 sps:$4 sm:$0xff]   ;;  %v6881_v51 = vld [vmem:[#allocation5 + $0x97c] ss:$48 sps:$4 sm:$0xff]  }
 0x133   : > { %2800 = vmatpush1.bf16.msra.mxu0 %v6786_v52  ;;  %2882 = vmatpush1.bf16.msra.mxu1 %v6789_v53  ;;  %v6876_v52 = vld [vmem:[#allocation5 + $0x970] ss:$48 sps:$4 sm:$0xff]   ;;  %v6879_v53 = vld [vmem:[#allocation5 + $0x978] ss:$48 sps:$4 sm:$0xff]  }
 0x134   : > { %2801 = vmatprep.subr.bf16.mxu0 %v6794_v54  ;;  %2883 = vmatprep.subr.bf16.mxu1 %v6797_v55  ;;  %v6884_v54 = vld [vmem:[#allocation5 + $0x9d4] ss:$48 sps:$4 sm:$0xff]   ;;  %v6887_v55 = vld [vmem:[#allocation5 + $0x9dc] ss:$48 sps:$4 sm:$0xff]  }
 0x137   : > { %2802 = vmatpush1.bf16.msra.mxu0 %v6792_v56  ;;  %2884 = vmatpush1.bf16.msra.mxu1 %v6795_v57  ;;  %v6882_v56 = vld [vmem:[#allocation5 + $0x9d0] ss:$48 sps:$4 sm:$0xff]   ;;  %v6885_v57 = vld [vmem:[#allocation5 + $0x9d8] ss:$48 sps:$4 sm:$0xff]  }
 0x138   : > { %2803 = vmatprep.subr.bf16.mxu0 %v6800_v58  ;;  %2885 = vmatprep.subr.bf16.mxu1 %v6803_v59  ;;  %v6890_v58 = vld [vmem:[#allocation5 + $0xa34] ss:$48 sps:$4 sm:$0xff]   ;;  %v6893_v59 = vld [vmem:[#allocation5 + $0xa3c] ss:$48 sps:$4 sm:$0xff]  }
 0x13b   : > { %2804 = vmatpush1.bf16.msra.mxu0 %v6798_v60  ;;  %2886 = vmatpush1.bf16.msra.mxu1 %v6801_v61  ;;  %v6888_v60 = vld [vmem:[#allocation5 + $0xa30] ss:$48 sps:$4 sm:$0xff]   ;;  %v6891_v61 = vld [vmem:[#allocation5 + $0xa38] ss:$48 sps:$4 sm:$0xff]  }
 0x13c   : > { %2805 = vmatprep.subr.bf16.mxu0 %v6806_v62  ;;  %2887 = vmatprep.subr.bf16.mxu1 %v6809_v63  ;;  %v6896_v62 = vld [vmem:[#allocation5 + $0xa94] ss:$48 sps:$4 sm:$0xff]   ;;  %v6899_v63 = vld [vmem:[#allocation5 + $0xa9c] ss:$48 sps:$4 sm:$0xff]  }
 0x13f   : > { %2806 = vmatpush1.bf16.msra.mxu0 %v6804_v0  ;;  %2888 = vmatpush1.bf16.msra.mxu1 %v6807_v1  ;;  %v6894_v0 = vld [vmem:[#allocation5 + $0xa90] ss:$48 sps:$4 sm:$0xff]   ;;  %v6897_v1 = vld [vmem:[#allocation5 + $0xa98] ss:$48 sps:$4 sm:$0xff]  }
 0x140   : > { %2807 = vmatprep.subr.bf16.mxu0 %v6812_v2  ;;  %2889 = vmatprep.subr.bf16.mxu1 %v6815_v3  ;;  %v6902_v2 = vld [vmem:[#allocation5 + $0xaf4] ss:$48 sps:$4 sm:$0xff]   ;;  %v6905_v3 = vld [vmem:[#allocation5 + $0xafc] ss:$48 sps:$4 sm:$0xff]  }
 0x143   : > { %2808 = vmatpush1.bf16.msra.mxu0 %v6810_v4  ;;  %2890 = vmatpush1.bf16.msra.mxu1 %v6813_v6  ;;  %v6900_v4 = vld [vmem:[#allocation5 + $0xaf0] ss:$48 sps:$4 sm:$0xff]   ;;  %v6903_v6 = vld [vmem:[#allocation5 + $0xaf8] ss:$48 sps:$4 sm:$0xff]  }
 0x144   : > { %2809 = vmatprep.subr.bf16.mxu0 %v6818_v7  ;;  %2891 = vmatprep.subr.bf16.mxu1 %v6821_v8  ;;  %v6908_v7 = vld [vmem:[#allocation5 + $0xb54] ss:$48 sps:$4 sm:$0xff]   ;;  %v6911_v8 = vld [vmem:[#allocation5 + $0xb5c] ss:$48 sps:$4 sm:$0xff]  }
 0x147   : > { %2810 = vmatpush1.bf16.msra.mxu0 %v6816_v10  ;;  %2892 = vmatpush1.bf16.msra.mxu1 %v6819_v11  ;;  %v6906_v10 = vld [vmem:[#allocation5 + $0xb50] ss:$48 sps:$4 sm:$0xff]   ;;  %v6909_v11 = vld [vmem:[#allocation5 + $0xb58] ss:$48 sps:$4 sm:$0xff]  }
 0x148   : > { %2820 = vmatprep.subr.bf16.mxu0 %v6824_v12  ;;  %2902 = vmatprep.subr.bf16.mxu1 %v6827_v13  ;;  %v6914_v12 = vld [vmem:[#allocation5 + $0xbb4] ss:$48 sps:$4 sm:$0xff]   ;;  %v6917_v13 = vld [vmem:[#allocation5 + $0xbbc] ss:$48 sps:$4 sm:$0xff]  }
 0x14a   : > { %2812 = vmatmul.mubr.bf16.vlgmr.msra.gmra.mrb[4].mxu0 %v7812_v5  ;;  %2894 = vmatmul.mubr.bf16.vlgmr.msra.gmra.mrb[4].mxu1 %v7812_v5 }
 0x14b   : > { %2821 = vmatpush1.bf16.msra.mxu0 %v6822_v14  ;;  %2903 = vmatpush1.bf16.msra.mxu1 %v6825_v15  ;;  %v6912_v14 = vld [vmem:[#allocation5 + $0xbb0] ss:$48 sps:$4 sm:$0xff]   ;;  %v6915_v15 = vld [vmem:[#allocation5 + $0xbb8] ss:$48 sps:$4 sm:$0xff]  }
 0x14c   : > { %2822 = vmatprep.subr.bf16.mxu0 %v6830_v16  ;;  %2904 = vmatprep.subr.bf16.mxu1 %v6833_v17  ;;  %v6920_v16 = vld [vmem:[#allocation5 + $0x24] ss:$48 sps:$4 sm:$0xff]   ;;  %v6959_v17 = vld [vmem:[#allocation5 + $0x2c] ss:$48 sps:$4 sm:$0xff]  }
 0x14d   : > { %2852 = vmatprep.mubr.bf16.mxu0 %v7821_v30  ;;  %2934 = vmatprep.mubr.bf16.mxu1 %v7821_v30 }
 0x14f   : > { %2823 = vmatpush1.bf16.msra.mxu0 %v6828_v18  ;;  %2905 = vmatpush1.bf16.msra.mxu1 %v6831_v19  ;;  %v6918_v18 = vld [vmem:[#allocation5 + $0x20] ss:$48 sps:$4 sm:$0xff]   ;;  %v6923_v19 = vld [vmem:[#allocation5 + $0x84] ss:$48 sps:$4 sm:$0xff]  }
 0x150   : > { %2824 = vmatprep.subr.bf16.mxu0 %v6836_v20  ;;  %2906 = vmatprep.subr.bf16.mxu1 %v6839_v21  ;;  %v6957_v20 = vld [vmem:[#allocation5 + $0x28] ss:$48 sps:$4 sm:$0xff]   ;;  %v6965_v21 = vld [vmem:[#allocation5 + $0x8c] ss:$48 sps:$4 sm:$0xff]  }
 0x153   : > { %2825 = vmatpush1.bf16.msra.mxu0 %v6834_v22  ;;  %2907 = vmatpush1.bf16.msra.mxu1 %v6837_v23  ;;  %v6921_v22 = vld [vmem:[#allocation5 + $0x80] ss:$48 sps:$4 sm:$0xff]   ;;  %v6963_v23 = vld [vmem:[#allocation5 + $0x88] ss:$48 sps:$4 sm:$0xff]  }
 0x154   : > { %2826 = vmatprep.subr.bf16.mxu0 %v6842_v24  ;;  %2908 = vmatprep.subr.bf16.mxu1 %v6845_v25  ;;  %v6926_v24 = vld [vmem:[#allocation5 + $0xe4] ss:$48 sps:$4 sm:$0xff]   ;;  %v6971_v25 = vld [vmem:[#allocation5 + $0xec] ss:$48 sps:$4 sm:$0xff]  }
 0x157   : > { %2827 = vmatpush1.bf16.msra.mxu0 %v6840_v26  ;;  %2909 = vmatpush1.bf16.msra.mxu1 %v6843_v27  ;;  %v6924_v26 = vld [vmem:[#allocation5 + $0xe0] ss:$48 sps:$4 sm:$0xff]   ;;  %v6969_v27 = vld [vmem:[#allocation5 + $0xe8] ss:$48 sps:$4 sm:$0xff]  }
 0x158   : > { %2828 = vmatprep.subr.bf16.mxu0 %v6848_v28  ;;  %2910 = vmatprep.subr.bf16.mxu1 %v6851_v29  ;;  %v6929_v28 = vld [vmem:[#allocation5 + $0x144] ss:$48 sps:$4 sm:$0xff]   ;;  %v6977_v29 = vld [vmem:[#allocation5 + $0x14c] ss:$48 sps:$4 sm:$0xff]  }
 0x15b   : > { %2829 = vmatpush1.bf16.msra.mxu0 %v6846_v31  ;;  %2911 = vmatpush1.bf16.msra.mxu1 %v6849_v32  ;;  %v6927_v31 = vld [vmem:[#allocation5 + $0x140] ss:$48 sps:$4 sm:$0xff]   ;;  %v6975_v32 = vld [vmem:[#allocation5 + $0x148] ss:$48 sps:$4 sm:$0xff]  }
 0x15c   : > { %2830 = vmatprep.subr.bf16.mxu0 %v6854_v33  ;;  %2912 = vmatprep.subr.bf16.mxu1 %v6857_v34  ;;  %v6932_v33 = vld [vmem:[#allocation5 + $0x1a4] ss:$48 sps:$4 sm:$0xff]   ;;  %v6983_v34 = vld [vmem:[#allocation5 + $0x1ac] ss:$48 sps:$4 sm:$0xff]  }
 0x15f   : > { %2831 = vmatpush1.bf16.msra.mxu0 %v6852_v35  ;;  %2913 = vmatpush1.bf16.msra.mxu1 %v6855_v36  ;;  %v6930_v35 = vld [vmem:[#allocation5 + $0x1a0] ss:$48 sps:$4 sm:$0xff]   ;;  %v6981_v36 = vld [vmem:[#allocation5 + $0x1a8] ss:$48 sps:$4 sm:$0xff]  }
 0x160   : > { %2832 = vmatprep.subr.bf16.mxu0 %v6860_v37  ;;  %2914 = vmatprep.subr.bf16.mxu1 %v6863_v38  ;;  %v6935_v37 = vld [vmem:[#allocation5 + $0x204] ss:$48 sps:$4 sm:$0xff]   ;;  %v6989_v38 = vld [vmem:[#allocation5 + $0x20c] ss:$48 sps:$4 sm:$0xff]  }
 0x163   : > { %2833 = vmatpush1.bf16.msra.mxu0 %v6858_v39  ;;  %2915 = vmatpush1.bf16.msra.mxu1 %v6861_v40  ;;  %v6987_v39 = vld [vmem:[#allocation5 + $0x208] ss:$48 sps:$4 sm:$0xff]   ;;  %v6938_v40 = vld [vmem:[#allocation5 + $0x264] ss:$48 sps:$4 sm:$0xff]  }
 0x164   : > { %2834 = vmatprep.subr.bf16.mxu0 %v6866_v41  ;;  %2916 = vmatprep.subr.bf16.mxu1 %v6869_v42  ;;  %v6995_v41 = vld [vmem:[#allocation5 + $0x26c] ss:$48 sps:$4 sm:$0xff]   ;;  %v6936_v42 = vld [vmem:[#allocation5 + $0x260] ss:$48 sps:$4 sm:$0xff]  }
 0x167   : > { %2835 = vmatpush1.bf16.msra.mxu0 %v6864_v43  ;;  %2917 = vmatpush1.bf16.msra.mxu1 %v6867_v44  ;;  %v6993_v43 = vld [vmem:[#allocation5 + $0x268] ss:$48 sps:$4 sm:$0xff]   ;;  %v6941_v44 = vld [vmem:[#allocation5 + $0x2c4] ss:$48 sps:$4 sm:$0xff]  }
 0x168   : > { %2836 = vmatprep.subr.bf16.mxu0 %v6872_v45  ;;  %2918 = vmatprep.subr.bf16.mxu1 %v6875_v46  ;;  %v7001_v45 = vld [vmem:[#allocation5 + $0x2cc] ss:$48 sps:$4 sm:$0xff]   ;;  %v6939_v46 = vld [vmem:[#allocation5 + $0x2c0] ss:$48 sps:$4 sm:$0xff]  }
 0x16b   : > { %2837 = vmatpush1.bf16.msra.mxu0 %v6870_v47  ;;  %2919 = vmatpush1.bf16.msra.mxu1 %v6873_v49  ;;  %v6999_v47 = vld [vmem:[#allocation5 + $0x2c8] ss:$48 sps:$4 sm:$0xff]   ;;  %v6944_v49 = vld [vmem:[#allocation5 + $0x324] ss:$48 sps:$4 sm:$0xff]  }
 0x16c   : > { %2838 = vmatprep.subr.bf16.mxu0 %v6878_v50  ;;  %2920 = vmatprep.subr.bf16.mxu1 %v6881_v51  ;;  %v7007_v50 = vld [vmem:[#allocation5 + $0x32c] ss:$48 sps:$4 sm:$0xff]   ;;  %v6942_v51 = vld [vmem:[#allocation5 + $0x320] ss:$48 sps:$4 sm:$0xff]  }
 0x16f   : > { %2839 = vmatpush1.bf16.msra.mxu0 %v6876_v52  ;;  %2921 = vmatpush1.bf16.msra.mxu1 %v6879_v53  ;;  %v7005_v52 = vld [vmem:[#allocation5 + $0x328] ss:$48 sps:$4 sm:$0xff]   ;;  %v6947_v53 = vld [vmem:[#allocation5 + $0x384] ss:$48 sps:$4 sm:$0xff]  }
 0x170   : > { %2840 = vmatprep.subr.bf16.mxu0 %v6884_v54  ;;  %2922 = vmatprep.subr.bf16.mxu1 %v6887_v55  ;;  %v7013_v54 = vld [vmem:[#allocation5 + $0x38c] ss:$48 sps:$4 sm:$0xff]   ;;  %v6945_v55 = vld [vmem:[#allocation5 + $0x380] ss:$48 sps:$4 sm:$0xff]  }
 0x173   : > { %2841 = vmatpush1.bf16.msra.mxu0 %v6882_v56  ;;  %2923 = vmatpush1.bf16.msra.mxu1 %v6885_v57  ;;  %v7011_v56 = vld [vmem:[#allocation5 + $0x388] ss:$48 sps:$4 sm:$0xff]   ;;  %v6950_v57 = vld [vmem:[#allocation5 + $0x3e4] ss:$48 sps:$4 sm:$0xff]  }
 0x174   : > { %2842 = vmatprep.subr.bf16.mxu0 %v6890_v58  ;;  %2924 = vmatprep.subr.bf16.mxu1 %v6893_v59  ;;  %v7019_v58 = vld [vmem:[#allocation5 + $0x3ec] ss:$48 sps:$4 sm:$0xff]   ;;  %v6948_v59 = vld [vmem:[#allocation5 + $0x3e0] ss:$48 sps:$4 sm:$0xff]  }
 0x177   : > { %2843 = vmatpush1.bf16.msra.mxu0 %v6888_v60  ;;  %2925 = vmatpush1.bf16.msra.mxu1 %v6891_v61  ;;  %v7017_v60 = vld [vmem:[#allocation5 + $0x3e8] ss:$48 sps:$4 sm:$0xff]   ;;  %v6953_v61 = vld [vmem:[#allocation5 + $0x444] ss:$48 sps:$4 sm:$0xff]  }
 0x178   : > { %2844 = vmatprep.subr.bf16.mxu0 %v6896_v62  ;;  %2926 = vmatprep.subr.bf16.mxu1 %v6899_v63  ;;  %v7025_v62 = vld [vmem:[#allocation5 + $0x44c] ss:$48 sps:$4 sm:$0xff]   ;;  %v6951_v63 = vld [vmem:[#allocation5 + $0x440] ss:$48 sps:$4 sm:$0xff]  }
 0x17b   : > { %2845 = vmatpush1.bf16.msra.mxu0 %v6894_v0  ;;  %2927 = vmatpush1.bf16.msra.mxu1 %v6897_v1  ;;  %v7023_v0 = vld [vmem:[#allocation5 + $0x448] ss:$48 sps:$4 sm:$0xff]   ;;  %v6956_v1 = vld [vmem:[#allocation5 + $0x4a4] ss:$48 sps:$4 sm:$0xff]  }
 0x17c   : > { %2846 = vmatprep.subr.bf16.mxu0 %v6902_v2  ;;  %2928 = vmatprep.subr.bf16.mxu1 %v6905_v3  ;;  %v7031_v2 = vld [vmem:[#allocation5 + $0x4ac] ss:$48 sps:$4 sm:$0xff]   ;;  %v6954_v3 = vld [vmem:[#allocation5 + $0x4a0] ss:$48 sps:$4 sm:$0xff]  }
 0x17f   : > { %2847 = vmatpush1.bf16.msra.mxu0 %v6900_v4  ;;  %2929 = vmatpush1.bf16.msra.mxu1 %v6903_v6  ;;  %v7029_v4 = vld [vmem:[#allocation5 + $0x4a8] ss:$48 sps:$4 sm:$0xff]   ;;  %v6962_v6 = vld [vmem:[#allocation5 + $0x504] ss:$48 sps:$4 sm:$0xff]  }
 0x180   : > { %2848 = vmatprep.subr.bf16.mxu0 %v6908_v7  ;;  %2930 = vmatprep.subr.bf16.mxu1 %v6911_v8  ;;  %v7037_v7 = vld [vmem:[#allocation5 + $0x50c] ss:$48 sps:$4 sm:$0xff]   ;;  %v6960_v8 = vld [vmem:[#allocation5 + $0x500] ss:$48 sps:$4 sm:$0xff]  }
 0x183   : > { %2849 = vmatpush1.bf16.msra.mxu0 %v6906_v10  ;;  %2931 = vmatpush1.bf16.msra.mxu1 %v6909_v11  ;;  %v7035_v10 = vld [vmem:[#allocation5 + $0x508] ss:$48 sps:$4 sm:$0xff]   ;;  %v6968_v11 = vld [vmem:[#allocation5 + $0x564] ss:$48 sps:$4 sm:$0xff]  }
 0x184   : > { %2850 = vmatprep.subr.bf16.mxu0 %v6914_v12  ;;  %2932 = vmatprep.subr.bf16.mxu1 %v6917_v13  ;;  %v7043_v12 = vld [vmem:[#allocation5 + $0x56c] ss:$48 sps:$4 sm:$0xff]   ;;  %v6966_v13 = vld [vmem:[#allocation5 + $0x560] ss:$48 sps:$4 sm:$0xff]  }
 0x187   : > { %2851 = vmatpush1.bf16.msra.mxu0 %v6912_v14  ;;  %2933 = vmatpush1.bf16.msra.mxu1 %v6915_v15  ;;  %v7041_v14 = vld [vmem:[#allocation5 + $0x568] ss:$48 sps:$4 sm:$0xff]   ;;  %v6974_v15 = vld [vmem:[#allocation5 + $0x5c4] ss:$48 sps:$4 sm:$0xff]  }
 0x188   : > { %2943 = vmatprep.subr.bf16.mxu0 %v6920_v16  ;;  %3025 = vmatprep.subr.bf16.mxu1 %v6959_v17  ;;  %v7049_v16 = vld [vmem:[#allocation5 + $0x5cc] ss:$48 sps:$4 sm:$0xff]   ;;  %v6972_v17 = vld [vmem:[#allocation5 + $0x5c0] ss:$48 sps:$4 sm:$0xff]  }
 0x18a   : > { %2853 = vmatmul.mubr.bf16.vlgmr.msra.gmra.mrb[4].mxu0 %v7827_v9  ;;  %2935 = vmatmul.mubr.bf16.vlgmr.msra.gmra.mrb[4].mxu1 %v7827_v9 }
 0x18b   : > { %2944 = vmatpush1.bf16.msra.mxu0 %v6918_v18  ;;  %3026 = vmatpush1.bf16.msra.mxu1 %v6957_v20  ;;  %v7047_v18 = vld [vmem:[#allocation5 + $0x5c8] ss:$48 sps:$4 sm:$0xff]   ;;  %v7055_v20 = vld [vmem:[#allocation5 + $0x62c] ss:$48 sps:$4 sm:$0xff]  }
 0x18c   : > { %2945 = vmatprep.subr.bf16.mxu0 %v6923_v19  ;;  %3027 = vmatprep.subr.bf16.mxu1 %v6965_v21  ;;  %v6980_v19 = vld [vmem:[#allocation5 + $0x624] ss:$48 sps:$4 sm:$0xff]   ;;  %v6978_v21 = vld [vmem:[#allocation5 + $0x620] ss:$48 sps:$4 sm:$0xff]  }
 0x18d   : > { %2975 = vmatprep.mubr.bf16.mxu0 %v7808_v48  ;;  %3057 = vmatprep.mubr.bf16.mxu1 %v7808_v48  ;;  %v6933_v48 = vld [vmem:[#allocation5 + $0x200] ss:$48 sps:$4 sm:$0xff]  }
 0x18f   : > { %2946 = vmatpush1.bf16.msra.mxu0 %v6921_v22  ;;  %3028 = vmatpush1.bf16.msra.mxu1 %v6963_v23  ;;  %v7053_v22 = vld [vmem:[#allocation5 + $0x628] ss:$48 sps:$4 sm:$0xff]   ;;  %v6986_v23 = vld [vmem:[#allocation5 + $0x684] ss:$48 sps:$4 sm:$0xff]  }
 0x190   : > { %2947 = vmatprep.subr.bf16.mxu0 %v6926_v24  ;;  %3029 = vmatprep.subr.bf16.mxu1 %v6971_v25  ;;  %v7061_v24 = vld [vmem:[#allocation5 + $0x68c] ss:$48 sps:$4 sm:$0xff]   ;;  %v6984_v25 = vld [vmem:[#allocation5 + $0x680] ss:$48 sps:$4 sm:$0xff]  }
 0x193   : > { %2948 = vmatpush1.bf16.msra.mxu0 %v6924_v26  ;;  %3030 = vmatpush1.bf16.msra.mxu1 %v6969_v27  ;;  %v7059_v26 = vld [vmem:[#allocation5 + $0x688] ss:$48 sps:$4 sm:$0xff]   ;;  %v6992_v27 = vld [vmem:[#allocation5 + $0x6e4] ss:$48 sps:$4 sm:$0xff]  }
 0x194   : > { %2949 = vmatprep.subr.bf16.mxu0 %v6929_v28  ;;  %3031 = vmatprep.subr.bf16.mxu1 %v6977_v29  ;;  %v7067_v28 = vld [vmem:[#allocation5 + $0x6ec] ss:$48 sps:$4 sm:$0xff]   ;;  %v6990_v29 = vld [vmem:[#allocation5 + $0x6e0] ss:$48 sps:$4 sm:$0xff]  }
 0x197   : > { %2950 = vmatpush1.bf16.msra.mxu0 %v6927_v31  ;;  %3032 = vmatpush1.bf16.msra.mxu1 %v6975_v32  ;;  %v7065_v31 = vld [vmem:[#allocation5 + $0x6e8] ss:$48 sps:$4 sm:$0xff]   ;;  %v6998_v32 = vld [vmem:[#allocation5 + $0x744] ss:$48 sps:$4 sm:$0xff]  }
 0x198   : > { %2951 = vmatprep.subr.bf16.mxu0 %v6932_v33  ;;  %3033 = vmatprep.subr.bf16.mxu1 %v6983_v34  ;;  %v6996_v33 = vld [vmem:[#allocation5 + $0x740] ss:$48 sps:$4 sm:$0xff]   ;;  %v7071_v34 = vld [vmem:[#allocation5 + $0x748] ss:$48 sps:$4 sm:$0xff]  }
 0x19b   : > { %2952 = vmatpush1.bf16.msra.mxu0 %v6930_v35  ;;  %3034 = vmatpush1.bf16.msra.mxu1 %v6981_v36  ;;  %v7004_v35 = vld [vmem:[#allocation5 + $0x7a4] ss:$48 sps:$4 sm:$0xff]   ;;  %v7076_v36 = vld [vmem:[#allocation5 + $0x7ac] ss:$48 sps:$4 sm:$0xff]  }
 0x19c   : > { %2953 = vmatprep.subr.bf16.mxu0 %v6935_v37  ;;  %3035 = vmatprep.subr.bf16.mxu1 %v6989_v38  ;;  %v7002_v37 = vld [vmem:[#allocation5 + $0x7a0] ss:$48 sps:$4 sm:$0xff]   ;;  %v7010_v38 = vld [vmem:[#allocation5 + $0x804] ss:$48 sps:$4 sm:$0xff]  }
 0x19f   : > { %2954 = vmatpush1.bf16.msra.mxu0 %v6933_v48  ;;  %3036 = vmatpush1.bf16.msra.mxu1 %v6987_v39  ;;  %v7008_v48 = vld [vmem:[#allocation5 + $0x800] ss:$48 sps:$4 sm:$0xff]   ;;  %v7016_v39 = vld [vmem:[#allocation5 + $0x864] ss:$48 sps:$4 sm:$0xff]  }
 0x1a0   : > { %2955 = vmatprep.subr.bf16.mxu0 %v6938_v40  ;;  %3037 = vmatprep.subr.bf16.mxu1 %v6995_v41 }
 0x1a3   : > { %2956 = vmatpush1.bf16.msra.mxu0 %v6936_v42  ;;  %3038 = vmatpush1.bf16.msra.mxu1 %v6993_v43 }
 0x1a4   : > { %2957 = vmatprep.subr.bf16.mxu0 %v6941_v44  ;;  %3039 = vmatprep.subr.bf16.mxu1 %v7001_v45  ;;  %v7079_v44 = vld [vmem:[#allocation5 + $0x80c] ss:$48 sps:$4 sm:$0xff]  }
 0x1a7   : > { %2958 = vmatpush1.bf16.msra.mxu0 %v6939_v46  ;;  %3040 = vmatpush1.bf16.msra.mxu1 %v6999_v47  ;;  %v7014_v47 = vld [vmem:[#allocation5 + $0x860] ss:$48 sps:$4 sm:$0xff]  }
 0x1a8   : > { %2959 = vmatprep.subr.bf16.mxu0 %v6944_v49  ;;  %3041 = vmatprep.subr.bf16.mxu1 %v7007_v50  ;;  %v7077_v49 = vld [vmem:[#allocation5 + $0x808] ss:$48 sps:$4 sm:$0xff]  }
 0x1ab   : > { %2960 = vmatpush1.bf16.msra.mxu0 %v6942_v51  ;;  %3042 = vmatpush1.bf16.msra.mxu1 %v7005_v52  ;;  %v7022_v52 = vld [vmem:[#allocation5 + $0x8c4] ss:$48 sps:$4 sm:$0xff]  }
 0x1ac   : > { %2961 = vmatprep.subr.bf16.mxu0 %v6947_v53  ;;  %3043 = vmatprep.subr.bf16.mxu1 %v7013_v54  ;;  %v7082_v53 = vld [vmem:[#allocation5 + $0x86c] ss:$48 sps:$4 sm:$0xff]   ;;  %v7020_v54 = vld [vmem:[#allocation5 + $0x8c0] ss:$48 sps:$4 sm:$0xff]  }
 0x1af   : > { %2962 = vmatpush1.bf16.msra.mxu0 %v6945_v55  ;;  %3044 = vmatpush1.bf16.msra.mxu1 %v7011_v56  ;;  %v7080_v55 = vld [vmem:[#allocation5 + $0x868] ss:$48 sps:$4 sm:$0xff]   ;;  %v7028_v56 = vld [vmem:[#allocation5 + $0x924] ss:$48 sps:$4 sm:$0xff]  }
 0x1b0   : > { %2963 = vmatprep.subr.bf16.mxu0 %v6950_v57  ;;  %3045 = vmatprep.subr.bf16.mxu1 %v7019_v58  ;;  %v7085_v57 = vld [vmem:[#allocation5 + $0x8cc] ss:$48 sps:$4 sm:$0xff]   ;;  %v7026_v58 = vld [vmem:[#allocation5 + $0x920] ss:$48 sps:$4 sm:$0xff]  }
 0x1b3   : > { %2964 = vmatpush1.bf16.msra.mxu0 %v6948_v59  ;;  %3046 = vmatpush1.bf16.msra.mxu1 %v7017_v60  ;;  %v7083_v59 = vld [vmem:[#allocation5 + $0x8c8] ss:$48 sps:$4 sm:$0xff]   ;;  %v7034_v60 = vld [vmem:[#allocation5 + $0x984] ss:$48 sps:$4 sm:$0xff]  }
 0x1b4   : > { %2965 = vmatprep.subr.bf16.mxu0 %v6953_v61  ;;  %3047 = vmatprep.subr.bf16.mxu1 %v7025_v62  ;;  %v7088_v61 = vld [vmem:[#allocation5 + $0x92c] ss:$48 sps:$4 sm:$0xff]   ;;  %v7032_v62 = vld [vmem:[#allocation5 + $0x980] ss:$48 sps:$4 sm:$0xff]  }
 0x1b7   : > { %2966 = vmatpush1.bf16.msra.mxu0 %v6951_v63  ;;  %3048 = vmatpush1.bf16.msra.mxu1 %v7023_v0  ;;  %v7086_v63 = vld [vmem:[#allocation5 + $0x928] ss:$48 sps:$4 sm:$0xff]   ;;  %v7091_v0 = vld [vmem:[#allocation5 + $0x98c] ss:$48 sps:$4 sm:$0xff]  }
 0x1b8   : > { %2967 = vmatprep.subr.bf16.mxu0 %v6956_v1  ;;  %3049 = vmatprep.subr.bf16.mxu1 %v7031_v2  ;;  %v7040_v1 = vld [vmem:[#allocation5 + $0x9e4] ss:$48 sps:$4 sm:$0xff]   ;;  %v7089_v2 = vld [vmem:[#allocation5 + $0x988] ss:$48 sps:$4 sm:$0xff]  }
 0x1bb   : > { %2968 = vmatpush1.bf16.msra.mxu0 %v6954_v3  ;;  %3050 = vmatpush1.bf16.msra.mxu1 %v7029_v4  ;;  %v7038_v3 = vld [vmem:[#allocation5 + $0x9e0] ss:$48 sps:$4 sm:$0xff]   ;;  %v7046_v4 = vld [vmem:[#allocation5 + $0xa44] ss:$48 sps:$4 sm:$0xff]  }
 0x1bc   : > { %2969 = vmatprep.subr.bf16.mxu0 %v6962_v6  ;;  %3051 = vmatprep.subr.bf16.mxu1 %v7037_v7  ;;  %v7092_v6 = vld [vmem:[#allocation5 + $0x9e8] ss:$48 sps:$4 sm:$0xff]   ;;  %v7094_v7 = vld [vmem:[#allocation5 + $0x9ec] ss:$48 sps:$4 sm:$0xff]  }
 0x1bf   : > { %2970 = vmatpush1.bf16.msra.mxu0 %v6960_v8  ;;  %3052 = vmatpush1.bf16.msra.mxu1 %v7035_v10  ;;  %v7097_v8 = vld [vmem:[#allocation5 + $0xa4c] ss:$48 sps:$4 sm:$0xff]   ;;  %v7044_v10 = vld [vmem:[#allocation5 + $0xa40] ss:$48 sps:$4 sm:$0xff]  }
 0x1c0   : > { %2971 = vmatprep.subr.bf16.mxu0 %v6968_v11  ;;  %3053 = vmatprep.subr.bf16.mxu1 %v7043_v12  ;;  %v7052_v11 = vld [vmem:[#allocation5 + $0xaa4] ss:$48 sps:$4 sm:$0xff]   ;;  %v7095_v12 = vld [vmem:[#allocation5 + $0xa48] ss:$48 sps:$4 sm:$0xff]  }
 0x1c3   : > { %2972 = vmatpush1.bf16.msra.mxu0 %v6966_v13  ;;  %3054 = vmatpush1.bf16.msra.mxu1 %v7041_v14  ;;  %v7050_v13 = vld [vmem:[#allocation5 + $0xaa0] ss:$48 sps:$4 sm:$0xff]   ;;  %v7058_v14 = vld [vmem:[#allocation5 + $0xb04] ss:$48 sps:$4 sm:$0xff]  }
 0x1c4   : > { %2973 = vmatprep.subr.bf16.mxu0 %v6974_v15  ;;  %3055 = vmatprep.subr.bf16.mxu1 %v7049_v16  ;;  %v7098_v15 = vld [vmem:[#allocation5 + $0xaa8] ss:$48 sps:$4 sm:$0xff]   ;;  %v7100_v16 = vld [vmem:[#allocation5 + $0xaac] ss:$48 sps:$4 sm:$0xff]  }
 0x1c7   : > { %2974 = vmatpush1.bf16.msra.mxu0 %v6972_v17  ;;  %3056 = vmatpush1.bf16.msra.mxu1 %v7047_v18  ;;  %v7103_v17 = vld [vmem:[#allocation5 + $0xb0c] ss:$48 sps:$4 sm:$0xff]   ;;  %v7056_v18 = vld [vmem:[#allocation5 + $0xb00] ss:$48 sps:$4 sm:$0xff]  }
 0x1c8   : > { %2984 = vmatprep.subr.bf16.mxu0 %v6980_v19  ;;  %3066 = vmatprep.subr.bf16.mxu1 %v7055_v20  ;;  %v7064_v19 = vld [vmem:[#allocation5 + $0xb64] ss:$48 sps:$4 sm:$0xff]   ;;  %v7101_v20 = vld [vmem:[#allocation5 + $0xb08] ss:$48 sps:$4 sm:$0xff]  }
 0x1ca   : > { %2976 = vmatmul.mubr.bf16.vlgmr.msra.gmra.mrb[8].mxu0 %v7812_v5  ;;  %3058 = vmatmul.mubr.bf16.vlgmr.msra.gmra.mrb[8].mxu1 %v7812_v5  ;;  %v7073_v5 = vld [vmem:[#allocation5 + $0x74c] ss:$48 sps:$4 sm:$0xff]  }
 0x1cb   : > { %2985 = vmatpush1.bf16.msra.mxu0 %v6978_v21  ;;  %3067 = vmatpush1.bf16.msra.mxu1 %v7053_v22  ;;  %v7062_v21 = vld [vmem:[#allocation5 + $0xb60] ss:$48 sps:$4 sm:$0xff]   ;;  %v7070_v22 = vld [vmem:[#allocation5 + $0xbc4] ss:$48 sps:$4 sm:$0xff]  }
 0x1cc   : > { %2986 = vmatprep.subr.bf16.mxu0 %v6986_v23  ;;  %3068 = vmatprep.subr.bf16.mxu1 %v7061_v24  ;;  %v7106_v23 = vld [vmem:[#allocation5 + $0xb6c] ss:$48 sps:$4 sm:$0xff]   ;;  %v7104_v24 = vld [vmem:[#allocation5 + $0xb68] ss:$48 sps:$4 sm:$0xff]  }
 0x1cd   : > { %3016 = vmatprep.mubr.bf16.mxu0 %v7821_v30  ;;  %3098 = vmatprep.mubr.bf16.mxu1 %v7821_v30  ;;  %v7074_v30 = vld [vmem:[#allocation5 + $0x7a8] ss:$48 sps:$4 sm:$0xff]  }
 0x1cf   : > { %2987 = vmatpush1.bf16.msra.mxu0 %v6984_v25  ;;  %3069 = vmatpush1.bf16.msra.mxu1 %v7059_v26  ;;  %v7109_v25 = vld [vmem:[#allocation5 + $0xbcc] ss:$48 sps:$4 sm:$0xff]   ;;  %v7068_v26 = vld [vmem:[#allocation5 + $0xbc0] ss:$48 sps:$4 sm:$0xff]  }
 0x1d0   : > { %2988 = vmatprep.subr.bf16.mxu0 %v6992_v27  ;;  %3070 = vmatprep.subr.bf16.mxu1 %v7067_v28  ;;  %v7107_v27 = vld [vmem:[#allocation5 + $0xbc8] ss:$48 sps:$4 sm:$0xff]   ;;  %v7564_v28 = vmov 0.0  }
 0x1d3   : > { %2989 = vmatpush1.bf16.msra.mxu0 %v6990_v29  ;;  %3071 = vmatpush1.bf16.msra.mxu1 %v7065_v31 }
 0x1d4   : > { %2990 = vmatprep.subr.bf16.mxu0 %v6998_v32  ;;  %3072 = vmatprep.subr.bf16.mxu1 %v7073_v5 }
 0x1d7   : > { %2991 = vmatpush1.bf16.msra.mxu0 %v6996_v33  ;;  %3073 = vmatpush1.bf16.msra.mxu1 %v7071_v34 }
 0x1d8   : > { %2992 = vmatprep.subr.bf16.mxu0 %v7004_v35  ;;  %3074 = vmatprep.subr.bf16.mxu1 %v7076_v36 }
 0x1db   : > { %2993 = vmatpush1.bf16.msra.mxu0 %v7002_v37  ;;  %3075 = vmatpush1.bf16.msra.mxu1 %v7074_v30 }
 0x1dc   : > { %2994 = vmatprep.subr.bf16.mxu0 %v7010_v38  ;;  %3076 = vmatprep.subr.bf16.mxu1 %v7079_v44 }
 0x1dd   : > { %v7845_v40 = vpop.f32.mrb[0].mxu0  ;;  %v7847_v41 = vpop.f32.mrb[0].mxu1 }
 0x1de   : > { %v7849_v42 = vpop.f32.mrb[1].mxu0  ;;  %v7851_v43 = vpop.f32.mrb[1].mxu1  ;;  %v3123_v30 = vmul.f32 0.125, %v7845_v40 }
 0x1df   : > { %v2694_v45 = vpop.f32.mrb[2].mxu0  ;;  %v2776_v46 = vpop.f32.mrb[2].mxu1  ;;  %2995 = vmatpush1.bf16.msra.mxu0 %v7008_v48  ;;  %3077 = vmatpush1.bf16.msra.mxu1 %v7077_v49 }
 0x1e0   : > { %v2695_v50 = vpop.f32.mrb[3].mxu0  ;;  %v2777_v51 = vpop.f32.mrb[3].mxu1  ;;  %2996 = vmatprep.subr.bf16.mxu0 %v7016_v39  ;;  %3078 = vmatprep.subr.bf16.mxu1 %v7082_v53  ;;  %v3131_v48 = vpack.c.bf16 %v3123_v30, %v3123_v30 }
 0x1e1   : > { %v3129_v51 = vmul.f32 0.125, %v7851_v43 }
 0x1e3   : > { %2997 = vmatpush1.bf16.msra.mxu0 %v7014_v47  ;;  %3079 = vmatpush1.bf16.msra.mxu1 %v7080_v55  ;;  %v3127_v47 = vmul.f32 0.125, %v7847_v41 }
 0x1e4   : > { %2998 = vmatprep.subr.bf16.mxu0 %v7022_v52  ;;  %3080 = vmatprep.subr.bf16.mxu1 %v7085_v57  ;;  %v3137_v52 = vpack.c.bf16 %v3129_v51, %v3129_v51 }
 0x1e5   : > { %v3135_v49 = vpack.c.bf16 %v3127_v47, %v3127_v47 }
 0x1e7   : > { %2999 = vmatpush1.bf16.msra.mxu0 %v7020_v54  ;;  %3081 = vmatpush1.bf16.msra.mxu1 %v7083_v59 }
 0x1e8   : > { %3000 = vmatprep.subr.bf16.mxu0 %v7028_v56  ;;  %3082 = vmatprep.subr.bf16.mxu1 %v7088_v61 }
 0x1eb   : > { %3001 = vmatpush1.bf16.msra.mxu0 %v7026_v58  ;;  %3083 = vmatpush1.bf16.msra.mxu1 %v7086_v63 }
 0x1ec   : > { %3002 = vmatprep.subr.bf16.mxu0 %v7034_v60  ;;  %3084 = vmatprep.subr.bf16.mxu1 %v7091_v0 }
 0x1ef   : > { %3003 = vmatpush1.bf16.msra.mxu0 %v7032_v62  ;;  %3085 = vmatpush1.bf16.msra.mxu1 %v7089_v2 }
 0x1f0   : > { %3004 = vmatprep.subr.bf16.mxu0 %v7040_v1  ;;  %3086 = vmatprep.subr.bf16.mxu1 %v7094_v7 }
 0x1f3   : > { %3005 = vmatpush1.bf16.msra.mxu0 %v7038_v3  ;;  %3087 = vmatpush1.bf16.msra.mxu1 %v7092_v6 }
 0x1f4   : > { %3006 = vmatprep.subr.bf16.mxu0 %v7046_v4  ;;  %3088 = vmatprep.subr.bf16.mxu1 %v7097_v8 }
 0x1f7   : > { %3007 = vmatpush1.bf16.msra.mxu0 %v7044_v10  ;;  %3089 = vmatpush1.bf16.msra.mxu1 %v7095_v12 }
 0x1f8   : > { %3008 = vmatprep.subr.bf16.mxu0 %v7052_v11  ;;  %3090 = vmatprep.subr.bf16.mxu1 %v7100_v16 }
 0x1fb   : > { %3009 = vmatpush1.bf16.msra.mxu0 %v7050_v13  ;;  %3091 = vmatpush1.bf16.msra.mxu1 %v7098_v15 }
 0x1fc   : > { %3010 = vmatprep.subr.bf16.mxu0 %v7058_v14  ;;  %3092 = vmatprep.subr.bf16.mxu1 %v7103_v17 }
 0x1ff   : > { %3011 = vmatpush1.bf16.msra.mxu0 %v7056_v18  ;;  %3093 = vmatpush1.bf16.msra.mxu1 %v7101_v20 }
 0x200   : > { %3012 = vmatprep.subr.bf16.mxu0 %v7064_v19  ;;  %3094 = vmatprep.subr.bf16.mxu1 %v7106_v23 }
 0x203   : > { %3013 = vmatpush1.bf16.msra.mxu0 %v7062_v21  ;;  %3095 = vmatpush1.bf16.msra.mxu1 %v7104_v24 }
 0x204   : > { %3014 = vmatprep.subr.bf16.mxu0 %v7070_v22  ;;  %3096 = vmatprep.subr.bf16.mxu1 %v7109_v25 }
 0x207   : > { %3015 = vmatpush1.bf16.msra.mxu0 %v7068_v26  ;;  %3097 = vmatpush1.bf16.msra.mxu1 %v7107_v27 }
 0x208   : > { %6318 = vmatprep.subr.bf16.mxu0 %v7564_v28  ;;  %6324 = vmatprep.subr.bf16.mxu1 %v7564_v28 }
 0x20a   : > { %3017 = vmatmul.mubr.bf16.vlgmr.msra.gmra.mrb[8].mxu0 %v7827_v9  ;;  %3099 = vmatmul.mubr.bf16.vlgmr.msra.gmra.mrb[8].mxu1 %v7827_v9 }
 0x20b   : > { %6320 = vmatprep.mubr.msk.bf16.mxu0 %vm7565_vm0, %v7564_v28  ;;  %6326 = vmatprep.mubr.msk.bf16.mxu1 %vm7565_vm0, %v7564_v28 }
 0x25d   : > { %v2854_v29 = vpop.f32.mrb[4].mxu0  ;;  %v2936_v31 = vpop.f32.mrb[4].mxu1 }
 0x25e   : > { %v3155_v32 = vpack.c.bf16 %v2854_v29, %v2854_v29  ;;  %v2938_v5 = vpop.f32.mrb[5].mxu1  ;;  %3140 = vrot.lane.b32.xlu0 %v2854_v29, %s7566_s24  ;;  %v2856_v33 = vpop.f32.mrb[5].mxu0  ;;  %v3159_v44 = vpack.c.bf16 %v2936_v31, %v2936_v31 }
 0x25f   : > { %v2940_v34 = vpop.f32.mrb[6].mxu1  ;;  %3144 = vrot.lane.b32.xlu1 %v2856_v33, %s7566_s24  ;;  %v2858_v35 = vpop.f32.mrb[6].mxu0  ;;  %v3157_v38 = vpack.c.bf16 %v2856_v33, %v2856_v33 }
 0x260   : > { %v2859_v36 = vpop.f32.mrb[7].mxu0  ;;  %v2941_v37 = vpop.f32.mrb[7].mxu1  ;;  %v3192_v9 = vsel %vm3187_vm1, %v3155_v32, 0  ;;  %v3376_v46 = vsel %vm3187_vm1, %v3159_v44, 0 }
 0x261   : > { %6319 = vmatpush3.bf16.xpose.msra.mxu0 %v3192_v9  ;;  %v3284_v39 = vsel %vm3187_vm1, %v3157_v38, 0 }
 0x262   : > { %3108 = vrot.lane.b32.xlu0 %v7845_v40, %s7566_s24  ;;  %6330 = vmatprep.subr.bf16.mxu0 %v7564_v28  ;;  %v3125_v40 = vmul.f32 0.125, %v7849_v42 }
 0x263   : > { %3112 = vrot.lane.b32.xlu1 %v7849_v42, %s7566_s24  ;;  %v3161_v42 = vpack.c.bf16 %v2938_v5, %v2938_v5 }
 0x264   : > { %v3133_v45 = vpack.c.bf16 %v3125_v40, %v3125_v40 }
 0x265   : > { %v3468_v50 = vsel %vm3187_vm1, %v3161_v42, 0 }
 0x266   : > { %3148 = vrot.lane.b32.xlu0 %v2936_v31, %s7566_s24 }
 0x267   : > { %3116 = vrot.lane.b32.xlu1 %v7847_v41, %s7566_s24 }
 0x268   : > { %6321 = vmatmul.mubr.msk.bf16.vlgmr.msra.gmra.mrb[12].mxu0 %vm3187_vm1, %v3131_v48 }
 0x269   : > { %6331 = vmatpush3.bf16.xpose.msra.mxu0 %v3284_v39  ;;  %6332 = vmatprep.mubr.msk.bf16.mxu0 %vm7565_vm0, %v7564_v28 }
 0x26a   : > { %3152 = vrot.lane.b32.xlu0 %v2938_v5, %s7566_s24  ;;  %6342 = vmatprep.subr.bf16.mxu0 %v7564_v28 }
 0x26b   : > { %3120 = vrot.lane.b32.xlu1 %v7851_v43, %s7566_s24 }
 0x270   : > { %6333 = vmatmul.mubr.msk.bf16.vlgmr.msra.gmra.mrb[16].mxu0 %vm3187_vm1, %v3133_v45 }
 0x271   : > { %6343 = vmatpush3.bf16.xpose.msra.mxu0 %v3376_v46  ;;  %6344 = vmatprep.mubr.msk.bf16.mxu0 %vm7565_vm0, %v7564_v28 }
 0x272   : > { %6354 = vmatprep.subr.bf16.mxu0 %v7564_v28 }
 0x278   : > { %6345 = vmatmul.mubr.msk.bf16.vlgmr.msra.gmra.mrb[20].mxu0 %vm3187_vm1, %v3135_v49 }
 0x279   : > { %6355 = vmatpush3.bf16.xpose.msra.mxu0 %v3468_v50  ;;  %6356 = vmatprep.mubr.msk.bf16.mxu0 %vm7565_vm0, %v7564_v28 }
 0x27a   : > { %6366 = vmatprep.subr.bf16.mxu0 %v7564_v28 }
 0x280   : > { %6357 = vmatmul.mubr.msk.bf16.vlgmr.msra.gmra.mrb[24].mxu0 %vm3187_vm1, %v3137_v52 }
 0x281   : > { %6368 = vmatprep.mubr.msk.bf16.mxu0 %vm7565_vm0, %v7564_v28 }
 0x2d0   : > { %v3141_v41 = vpop.permute.xlu0 %3140 }
 0x2d1   : > { %v3156_v53 = vpack.c.bf16 %v3141_v41, %v3141_v41  ;;  %v3145_v55 = vpop.permute.xlu1 %3144 }
 0x2d2   : > { %v3158_v58 = vpack.c.bf16 %v3145_v55, %v3145_v55 }
 0x2d3   : > { %v3238_v54 = vsel %vm3187_vm1, %v3156_v53, 0 }
 0x2d4   : > { %6325 = vmatpush3.bf16.xpose.msra.mxu1 %v3238_v54  ;;  %v3109_v56 = vpop.permute.xlu0 %3108  ;;  %v3330_v60 = vsel %vm3187_vm1, %v3158_v58, 0 }
 0x2d5   : > { %v3124_v57 = vmul.f32 0.125, %v3109_v56  ;;  %6336 = vmatprep.subr.bf16.mxu1 %v7564_v28  ;;  %v3113_v59 = vpop.permute.xlu1 %3112 }
 0x2d6   : > { %v3126_v62 = vmul.f32 0.125, %v3113_v59 }
 0x2d7   : > { %v3132_v43 = vpack.c.bf16 %v3124_v57, %v3124_v57 }
 0x2d8   : > { %v3149_v61 = vpop.permute.xlu0 %3148  ;;  %v3134_v10 = vpack.c.bf16 %v3126_v62, %v3126_v62 }
 0x2d9   : > { %v3160_v2 = vpack.c.bf16 %v3149_v61, %v3149_v61  ;;  %v3117_v12 = vpop.permute.xlu1 %3116 }
 0x2da   : > { %v3128_v16 = vmul.f32 0.125, %v3117_v12 }
 0x2db   : > { %6327 = vmatmul.mubr.msk.bf16.vlgmr.msra.gmra.mrb[12].mxu1 %vm3187_vm1, %v3132_v43  ;;  %v3422_v14 = vsel %vm3187_vm1, %v3160_v2, 0 }
 0x2dc   : > { %6337 = vmatpush3.bf16.xpose.msra.mxu1 %v3330_v60  ;;  %6338 = vmatprep.mubr.msk.bf16.mxu1 %vm7565_vm0, %v7564_v28  ;;  %v3153_v15 = vpop.permute.xlu0 %3152  ;;  %v3136_v18 = vpack.c.bf16 %v3128_v16, %v3128_v16 }
 0x2dd   : > { %6348 = vmatprep.subr.bf16.mxu1 %v7564_v28  ;;  %v7904_v63 = vpop.f32.mrb[8].mxu0  ;;  %v7910_v4 = vpop.f32.mrb[8].mxu1  ;;  %v3162_v17 = vpack.c.bf16 %v3153_v15, %v3153_v15 }
 0x2de   : > { %v3179_v0 = vpack.c.bf16 %v7904_v63, %v7904_v63  ;;  %v7908_v1 = vpop.f32.mrb[9].mxu0  ;;  %v7913_v8 = vpop.f32.mrb[9].mxu1 }
 0x2df   : > { %v3022_v3 = vpop.f32.mrb[10].mxu0  ;;  %v3104_v11 = vpop.f32.mrb[10].mxu1  ;;  %v3514_v20 = vsel %vm3187_vm1, %v3162_v17, 0 }
 0x2e0   : > { %v3023_v6 = vpop.f32.mrb[11].mxu0  ;;  %v3666_v7 = vsel %vm3664_vm2, %v3179_v0, 0  ;;  %v3105_v13 = vpop.f32.mrb[11].mxu1 }
 0x2e1   : > { %6367 = vmatpush3.bf16.msra.mxu0 %v3666_v7  ;;  %v3121_v19 = vpop.permute.xlu1 %3120 }
 0x2e2   : > { %6378 = vmatprep.subr.bf16.mxu0 %v7564_v28  ;;  %v3130_v21 = vmul.f32 0.125, %v3121_v19 }
 0x2e3   : > { %6339 = vmatmul.mubr.msk.bf16.vlgmr.msra.gmra.mrb[16].mxu1 %vm3187_vm1, %v3134_v10 }
 0x2e4   : > { %6349 = vmatpush3.bf16.xpose.msra.mxu1 %v3422_v14  ;;  %6350 = vmatprep.mubr.msk.bf16.mxu1 %vm7565_vm0, %v7564_v28  ;;  %v3138_v22 = vpack.c.bf16 %v3130_v21, %v3130_v21 }
 0x2e5   : > { %6360 = vmatprep.subr.bf16.mxu1 %v7564_v28 }
 0x2eb   : > { %6351 = vmatmul.mubr.msk.bf16.vlgmr.msra.gmra.mrb[20].mxu1 %vm3187_vm1, %v3136_v18 }
 0x2ec   : > { %6361 = vmatpush3.bf16.xpose.msra.mxu1 %v3514_v20  ;;  %6362 = vmatprep.mubr.msk.bf16.mxu1 %vm7565_vm0, %v7564_v28 }
 0x2ed   : > { %6372 = vmatprep.subr.bf16.mxu1 %v7564_v28 }
 0x2f3   : > { %6363 = vmatmul.mubr.msk.bf16.vlgmr.msra.gmra.mrb[24].mxu1 %vm3187_vm1, %v3138_v22 }
 0x2f4   : > { %6374 = vmatprep.mubr.msk.bf16.mxu1 %vm7565_vm0, %v7564_v28 }
 0x33b   : > { %v3228_v23 = vpop.f32.mrb[12].mxu0 }
 0x33c   : > { %v6322_v24 = vpop.f32.mrb[13].mxu0  ;;  %v3557_v25 = vsel %vm3556_vm3, %v3228_v23, -inf }
 0x33d   : > { %3558 = vmax.xlane.f32.xlu0 %v3557_v25  ;;  %v3231_v26 = vpop.f32.mrb[14].mxu0 }
 0x33e   : > { %v6323_v27 = vpop.f32.mrb[15].mxu0 }
 0x343   : > { %v3320_v29 = vpop.f32.mrb[16].mxu0 }
 0x344   : > { %v6334_v31 = vpop.f32.mrb[17].mxu0  ;;  %v3563_v32 = vsel %vm3556_vm3, %v3320_v29, -inf }
 0x345   : > { %3564 = vmax.xlane.f32.xlu0 %v3563_v32  ;;  %v3323_v5 = vpop.f32.mrb[18].mxu0 }
 0x346   : > { %v6335_v33 = vpop.f32.mrb[19].mxu0 }
 0x34b   : > { %v3412_v34 = vpop.f32.mrb[20].mxu0 }
 0x34c   : > { %v6346_v35 = vpop.f32.mrb[21].mxu0  ;;  %v3569_v47 = vsel %vm3556_vm3, %v3412_v34, -inf }
 0x34d   : > { %v3415_v36 = vpop.f32.mrb[22].mxu0 }
 0x34e   : > { %v6347_v37 = vpop.f32.mrb[23].mxu0 }
 0x353   : > { %v7931_v9 = vpop.f32.mrb[24].mxu0 }
 0x354   : > { %v6358_v30 = vpop.f32.mrb[25].mxu0  ;;  %v3575_v57 = vsel %vm3556_vm3, %v7931_v9, -inf }
 0x355   : > { %v3507_v38 = vpop.f32.mrb[26].mxu0 }
 0x356   : > { %v6359_v48 = vpop.f32.mrb[27].mxu0 }
 0x3ae   : > { %v3274_v39 = vpop.f32.mrb[12].mxu1 }
 0x3af   : > { %v6328_v40 = vpop.f32.mrb[13].mxu1  ;;  %v3560_v44 = vsel %vm3556_vm3, %v3274_v39, -inf }
 0x3b0   : > { %v3277_v45 = vpop.f32.mrb[14].mxu1  ;;  %3561 = vmax.xlane.f32.xlu1 %v3560_v44 }
 0x3b1   : > { %v6329_v46 = vpop.f32.mrb[15].mxu1 }
 0x3b4   : > { %3570 = vmax.xlane.f32.xlu1 %v3569_v47 }
 0x3b6   : > { %v3366_v42 = vpop.f32.mrb[16].mxu1 }
 0x3b7   : > { %v6340_v49 = vpop.f32.mrb[17].mxu1  ;;  %v3566_v50 = vsel %vm3556_vm3, %v3366_v42, -inf }
 0x3b8   : > { %v3369_v51 = vpop.f32.mrb[18].mxu1  ;;  %3567 = vmax.xlane.f32.xlu0 %v3566_v50 }
 0x3b9   : > { %v6341_v52 = vpop.f32.mrb[19].mxu1 }
 0x3be   : > { %v3458_v41 = vpop.f32.mrb[20].mxu1 }
 0x3bf   : > { %v6352_v53 = vpop.f32.mrb[21].mxu1  ;;  %v3572_v54 = vsel %vm3556_vm3, %v3458_v41, -inf }
 0x3c0   : > { %v3461_v55 = vpop.f32.mrb[22].mxu1  ;;  %3573 = vmax.xlane.f32.xlu0 %v3572_v54 }
 0x3c1   : > { %v6353_v56 = vpop.f32.mrb[23].mxu1 }
 0x3c4   : > { %3576 = vmax.xlane.f32.xlu0 %v3575_v57 }
 0x3c6   : > { %v7939_v58 = vpop.f32.mrb[24].mxu1 }
 0x3c7   : > { %v6364_v43 = vpop.f32.mrb[25].mxu1  ;;  %v3578_v59 = vsel %vm3556_vm3, %v7939_v58, -inf }
 0x3c8   : > { %v3553_v60 = vpop.f32.mrb[26].mxu1  ;;  %3579 = vmax.xlane.f32.xlu0 %v3578_v59  ;;  %v3183_v43 = vpack.c.bf16 %v7910_v4, %v7910_v4 }
 0x3c9   : > { %v6365_v61 = vpop.f32.mrb[27].mxu1 }
 0x3ca   : > { %v3559_v62 = vpop.xlane.xlu0 %3558 }
 0x3cb   : > { %v3581_v0 = vsub.f32 %v3228_v23, %v3559_v62 }
 0x3cd   : > { %v3589_v2 = vmul.f32 1.442695, %v3581_v0 }
 0x3cf   : > { %7302 = vpow2.f32 %v3589_v2 }
 0x3d2   : > { %v3565_v7 = vpop.xlane.xlu0 %3564 }
 0x3d3   : > { %v3583_v10 = vsub.f32 %v3320_v29, %v3565_v7 }
 0x3d5   : > { %v3593_v13 = vmul.f32 1.442695, %v3583_v10 }
 0x3d9   : > { %v7303_v3 = vpop.eup %7302 }
 0x3da   : > { %v3605_v6 = vsel %vm3556_vm3, %v7303_v3, 0.0 }
 0x3db   : > { %3606 = vadd.xlane.f32.xlu1 %v3605_v6  ;;  %v3850_v6 = vsel %vm3664_vm2, %v3183_v43, 0  ;;  %v7151_v43 = vld [vmem:[#allocation7 + $0xcc] ss:$16 sps:$4 sm:$0xff]  }
 0x3de   : > { %3164 = vrot.lane.b32.xlu0 %v7904_v63, %s7566_s24 }
 0x43d   : > { %v3562_v11 = vpop.xlane.xlu1 %3561 }
 0x43e   : > { %v3582_v12 = vsub.f32 %v3274_v39, %v3562_v11  ;;  %v3181_v39 = vpack.c.bf16 %v7908_v1, %v7908_v1  ;;  %v3185_v11 = vpack.c.bf16 %v7913_v8, %v7913_v8 }
 0x440   : > { %v3591_v14 = vmul.f32 1.442695, %v3582_v12  ;;  %v3758_v45 = vsel %vm3664_vm2, %v3181_v39, 0  ;;  %v7127_v39 = vld [vmem:[#allocation7 + $0x4c] ss:$16 sps:$4 sm:$0xff]  }
 0x441   : > { %v3571_v15 = vpop.xlane.xlu1 %3570 }
 0x442   : > { %7304 = vpow2.f32 %v3591_v14  ;;  %v3585_v16 = vsub.f32 %v3412_v34, %v3571_v15 }
 0x443   : > { %7306 = vpow2.f32 %v3593_v13 }
 0x444   : > { %v3597_v17 = vmul.f32 1.442695, %v3585_v16 }
 0x445   : > { %v3568_v18 = vpop.xlane.xlu0 %3567 }
 0x446   : > { %v3584_v19 = vsub.f32 %v3366_v42, %v3568_v18  ;;  %7308 = vpow2.f32 %v3597_v17  ;;  %v7112_v17 = vld [vmem:[#allocation7 + $0x4] ss:$16 sps:$4 sm:$0xff]  }
 0x448   : > { %v3595_v20 = vmul.f32 1.442695, %v3584_v19 }
 0x44a   : > { %7310 = vpow2.f32 %v3595_v20  ;;  %v3942_v20 = vsel %vm3664_vm2, %v3185_v11, 0 }
 0x44c   : > { %v7946_v21 = vpop.eup %7304 }
 0x44d   : > { %v3574_v22 = vpop.xlane.xlu0 %3573  ;;  %v3608_v63 = vsel %vm3556_vm3, %v7946_v21, 0.0  ;;  %v7950_v23 = vpop.eup %7306 }
 0x44e   : > { %v3586_v24 = vsub.f32 %v3458_v41, %v3574_v22  ;;  %3609 = vadd.xlane.f32.xlu1 %v3608_v63  ;;  %v3611_v27 = vsel %vm3556_vm3, %v7950_v23, 0.0 }
 0x450   : > { %v3599_v25 = vmul.f32 1.442695, %v3586_v24  ;;  %v7954_v29 = vpop.eup %7308  ;;  %v7115_v24 = vld [vmem:[#allocation7 + $0xc] ss:$16 sps:$4 sm:$0xff]  }
 0x451   : > { %v3577_v26 = vpop.xlane.xlu0 %3576  ;;  %v3617_v32 = vsel %vm3556_vm3, %v7954_v29, 0.0 }
 0x452   : > { %7312 = vpow2.f32 %v3599_v25  ;;  %3612 = vadd.xlane.f32.xlu1 %v3611_v27  ;;  %v3587_v46 = vsub.f32 %v7931_v9, %v3577_v26 }
 0x454   : > { %v7958_v5 = vpop.eup %7310 }
 0x455   : > { %v3580_v31 = vpop.xlane.xlu0 %3579  ;;  %v3614_v34 = vsel %vm3556_vm3, %v7958_v5, 0.0 }
 0x456   : > { %3618 = vadd.xlane.f32.xlu1 %v3617_v32  ;;  %v3588_v47 = vsub.f32 %v7939_v58, %v3580_v31 }
 0x458   : > { %v3603_v42 = vmul.f32 1.442695, %v3588_v47  ;;  %v7131_v47 = vld [vmem:[#allocation7 + $0x68] ss:$16 sps:$4 sm:$0xff]  }
 0x459   : > { %v3165_v33 = vpop.permute.xlu0 %3164 }
 0x45a   : > { %v3180_v35 = vpack.c.bf16 %v3165_v33, %v3165_v33  ;;  %3615 = vadd.xlane.f32.xlu1 %v3614_v34  ;;  %v7113_v33 = vld [vmem:[#allocation7 + $0x8] ss:$16 sps:$4 sm:$0xff]   ;;  %v7116_v34 = vld [vmem:[#allocation7 + $0x20] ss:$16 sps:$4 sm:$0xff]  }
 0x45c   : > { %v7962_v36 = vpop.eup %7312  ;;  %v3712_v37 = vsel %vm3664_vm2, %v3180_v35, 0  ;;  %v7567_v35 = vmov 0  }
 0x45d   : > { %6373 = vmatpush3.bf16.msra.mxu1 %v3712_v37  ;;  %v3620_v30 = vsel %vm3556_vm3, %v7962_v36, 0.0  ;;  %v7121_v37 = vld [vmem:[#allocation7 + $0x2c] ss:$16 sps:$4 sm:$0xff]  }
 0x45e   : > { %3621 = vadd.xlane.f32.xlu0 %v3620_v30  ;;  %6384 = vmatprep.subr.bf16.mxu1 %v7564_v28  ;;  %v7124_v30 = vld [vmem:[#allocation7 + $0x44] ss:$16 sps:$4 sm:$0xff]  }
 0x468   : > { %v3607_v38 = vpop.xlane.xlu1 %3606 }
 0x469   : > { %7314 = vrcp.f32 %v3607_v38  ;;  %v7119_v38 = vld [vmem:[#allocation7 + $0x28] ss:$16 sps:$4 sm:$0xff]  }
 0x46b   : > { %3168 = vrot.lane.b32.xlu1 %v7908_v1, %s7566_s24  ;;  %v3601_v1 = vmul.f32 1.442695, %v3587_v46  ;;  %v7133_v46 = vld [vmem:[#allocation7 + $0x6c] ss:$16 sps:$4 sm:$0xff]  }
 0x46d   : > { %7316 = vpow2.f32 %v3601_v1  ;;  %v7136_v1 = vld [vmem:[#allocation7 + $0x84] ss:$16 sps:$4 sm:$0xff]  }
 0x46e   : > { %7318 = vpow2.f32 %v3603_v42  ;;  %v7139_v42 = vld [vmem:[#allocation7 + $0x8c] ss:$16 sps:$4 sm:$0xff]  }
 0x473   : > { %v7315_v48 = vpop.eup %7314 }
 0x474   : > { %v3637_v40 = vmul.f32 %v7315_v48, %v7303_v3  ;;  %3172 = vrot.lane.b32.xlu0 %v7910_v4, %s7566_s24  ;;  %v7122_v48 = vld [vmem:[#allocation7 + $0x40] ss:$16 sps:$4 sm:$0xff]  }
 0x476   : > { %3645 = vst.msk [vmem:[%s7975_s27] sm:$0xff] %vm3556_vm3, %v3637_v40  ;;  %v3653_v44 = vpack.c.bf16 %v3637_v40, %v3637_v40  ;;  %v7130_v40 = vld [vmem:[#allocation7 + $0x64] ss:$16 sps:$4 sm:$0xff]  }
 0x477   : > { %v7986_v49 = vpop.eup %7316 }
 0x478   : > { %6369 = vmatmul.mubr.msk.bf16.vlgmr.msra.gmra.mrb[28].mxu0 %vm3556_vm3, %v3653_v44  ;;  %v3623_v50 = vsel %vm3556_vm3, %v7986_v49, 0.0  ;;  %v7990_v51 = vpop.eup %7318  ;;  %v7125_v44 = vld [vmem:[#allocation7 + $0x48] ss:$16 sps:$4 sm:$0xff]  }
 0x479   : > { %6379 = vmatpush3.bf16.msra.mxu0 %v3758_v45  ;;  %6380 = vmatprep.mubr.msk.bf16.mxu0 %vm7565_vm0, %v7564_v28  ;;  %v3626_v9 = vsel %vm3556_vm3, %v7990_v51, 0.0  ;;  %v7128_v45 = vld [vmem:[#allocation7 + $0x60] ss:$16 sps:$4 sm:$0xff]  }
 0x47a   : > { %6390 = vmatprep.subr.bf16.mxu0 %v7564_v28 }
 0x48f   : > { %3624 = vadd.xlane.f32.xlu1 %v3623_v50  ;;  %v7134_v50 = vld [vmem:[#allocation7 + $0x80] ss:$16 sps:$4 sm:$0xff]  }
 0x493   : > { %3627 = vadd.xlane.f32.xlu1 %v3626_v9 }
 0x4a4   : > { %3176 = vrot.lane.b32.xlu1 %v7913_v8, %s7566_s24 }
 0x4db   : > { %v3610_v52 = vpop.xlane.xlu1 %3609 }
 0x4dc   : > { %7320 = vrcp.f32 %v3610_v52 }
 0x4df   : > { %v3613_v41 = vpop.xlane.xlu1 %3612 }
 0x4e0   : > { %7322 = vrcp.f32 %v3613_v41  ;;  %v7142_v41 = vld [vmem:[#allocation7 + $0xa4] ss:$16 sps:$4 sm:$0xff]  }
 0x4e3   : > { %v3619_v53 = vpop.xlane.xlu1 %3618 }
 0x4e4   : > { %7324 = vrcp.f32 %v3619_v53  ;;  %v7145_v53 = vld [vmem:[#allocation7 + $0xac] ss:$16 sps:$4 sm:$0xff]  }
 0x4e6   : > { %v7321_v54 = vpop.eup %7320 }
 0x4e7   : > { %v3638_v55 = vmul.f32 %v7321_v54, %v7946_v21  ;;  %v3616_v56 = vpop.xlane.xlu1 %3615 }
 0x4e8   : > { %7326 = vrcp.f32 %v3616_v56  ;;  %v7140_v56 = vld [vmem:[#allocation7 + $0xa0] ss:$16 sps:$4 sm:$0xff]  }
 0x4e9   : > { %3646 = vst.msk [vmem:[%s7975_s27 + $0x8] sm:$0xff] %vm3556_vm3, %v3638_v55  ;;  %v3654_v57 = vpack.c.bf16 %v3638_v55, %v3638_v55 }
 0x4ea   : > { %v7323_v58 = vpop.eup %7322 }
 0x4eb   : > { %v3639_v59 = vmul.f32 %v7323_v58, %v7950_v23  ;;  %v3169_v60 = vpop.permute.xlu1 %3168  ;;  %6375 = vmatmul.mubr.msk.bf16.vlgmr.msra.gmra.mrb[28].mxu1 %vm3556_vm3, %v3654_v57  ;;  %v3622_v61 = vpop.xlane.xlu0 %3621  ;;  %v7143_v57 = vld [vmem:[#allocation7 + $0xa8] ss:$16 sps:$4 sm:$0xff]   ;;  %v7148_v58 = vld [vmem:[#allocation7 + $0xc4] ss:$16 sps:$4 sm:$0xff]  }
 0x4ec   : > { %v3182_v62 = vpack.c.bf16 %v3169_v60, %v3169_v60  ;;  %7328 = vrcp.f32 %v3622_v61  ;;  %6386 = vmatprep.mubr.msk.bf16.mxu1 %vm7565_vm0, %v7564_v28  ;;  %v7149_v60 = vld [vmem:[#allocation7 + $0xc8] ss:$16 sps:$4 sm:$0xff]   ;;  %v7154_v61 = vld [vmem:[#allocation7 + $0xe4] ss:$16 sps:$4 sm:$0xff]  }
 0x4ed   : > { %3647 = vst.msk [vmem:[%s7975_s27 + $0x10] sm:$0xff] %vm3556_vm3, %v3639_v59  ;;  %v3655_v0 = vpack.c.bf16 %v3639_v59, %v3639_v59  ;;  %v7146_v59 = vld [vmem:[#allocation7 + $0xc0] ss:$16 sps:$4 sm:$0xff]  }
 0x4ee   : > { %v7325_v2 = vpop.eup %7324  ;;  %v3804_v3 = vsel %vm3664_vm2, %v3182_v62, 0  ;;  %v7157_v62 = vld [vmem:[#allocation7 + $0xec] ss:$16 sps:$4 sm:$0xff]  }
 0x4ef   : > { %v3641_v4 = vmul.f32 %v7325_v2, %v7954_v29  ;;  %6381 = vmatmul.mubr.msk.bf16.vlgmr.msra.gmra.mrb[32].mxu0 %vm3556_vm3, %v3655_v0  ;;  %6385 = vmatpush3.bf16.msra.mxu1 %v3804_v3  ;;  %v3173_v7 = vpop.permute.xlu0 %3172  ;;  %v7110_v29 = vld [vmem:[#allocation7] ss:$16 sps:$4 sm:$0xff]   ;;  %v7155_v2 = vld [vmem:[#allocation7 + $0xe8] ss:$16 sps:$4 sm:$0xff]   ;;  %v7160_v3 = vld [vmem:[#allocation7 + $0x104] ss:$16 sps:$4 sm:$0xff]  }
 0x4f0   : > { %6391 = vmatpush3.bf16.msra.mxu0 %v3850_v6  ;;  %6392 = vmatprep.mubr.msk.bf16.mxu0 %vm7565_vm0, %v7564_v28  ;;  %v3184_v13 = vpack.c.bf16 %v3173_v7, %v3173_v7  ;;  %v7152_v0 = vld [vmem:[#allocation7 + $0xe0] ss:$16 sps:$4 sm:$0xff]  }
 0x4f1   : > { %3649 = vst.msk [vmem:[%s7975_s27 + $0x20] sm:$0xff] %vm3556_vm3, %v3641_v4  ;;  %6396 = vmatprep.subr.bf16.mxu1 %v7564_v28  ;;  %6402 = vmatprep.subr.bf16.mxu0 %v7564_v28  ;;  %v3657_v15 = vpack.c.bf16 %v3641_v4, %v3641_v4  ;;  %v7163_v4 = vld [vmem:[#allocation7 + $0x10c] ss:$16 sps:$4 sm:$0xff]   ;;  %v7158_v7 = vld [vmem:[#allocation7 + $0x100] ss:$16 sps:$4 sm:$0xff]  }
 0x4f2   : > { %v7327_v10 = vpop.eup %7326  ;;  %v3896_v19 = vsel %vm3664_vm2, %v3184_v13, 0  ;;  %v7166_v13 = vld [vmem:[#allocation7 + $0x124] ss:$16 sps:$4 sm:$0xff]  }
 0x4f3   : > { %v3640_v12 = vmul.f32 %v7327_v10, %v7958_v5  ;;  %v7161_v10 = vld [vmem:[#allocation7 + $0x108] ss:$16 sps:$4 sm:$0xff]  }
 0x4f5   : > { %3648 = vst.msk [vmem:[%s7975_s27 + $0x18] sm:$0xff] %vm3556_vm3, %v3640_v12  ;;  %v3656_v14 = vpack.c.bf16 %v3640_v12, %v3640_v12 }
 0x4f6   : > { %v7329_v16 = vpop.eup %7328 }
 0x4f7   : > { %v3642_v18 = vmul.f32 %v7329_v16, %v7962_v36  ;;  %6387 = vmatmul.mubr.msk.bf16.vlgmr.msra.gmra.mrb[32].mxu1 %vm3556_vm3, %v3656_v14  ;;  %6393 = vmatmul.mubr.msk.bf16.vlgmr.msra.gmra.mrb[36].mxu0 %vm3556_vm3, %v3657_v15  ;;  %v7169_v14 = vld [vmem:[#allocation7 + $0x12c] ss:$16 sps:$4 sm:$0xff]  }
 0x4f8   : > { %6397 = vmatpush3.bf16.msra.mxu1 %v3896_v19  ;;  %6403 = vmatpush3.bf16.msra.mxu0 %v3942_v20  ;;  %v7167_v19 = vld [vmem:[#allocation7 + $0x128] ss:$16 sps:$4 sm:$0xff]  }
 0x4f9   : > { %3650 = vst.msk [vmem:[%s7975_s27 + $0x28] sm:$0xff] %vm3556_vm3, %v3642_v18  ;;  %6398 = vmatprep.mubr.msk.bf16.mxu1 %vm7565_vm0, %v7564_v28  ;;  %6408 = vmatprep.subr.bf16.mxu1 %v7564_v28  ;;  %v3658_v8 = vpack.c.bf16 %v3642_v18, %v3642_v18  ;;  %v7164_v18 = vld [vmem:[#allocation7 + $0x120] ss:$16 sps:$4 sm:$0xff]  }
 0x4fa   : > { %6404 = vmatprep.mubr.msk.bf16.mxu0 %vm7565_vm0, %v7564_v28  ;;  %4249 = vmatprep.subr.bf16.mxu0 %v7112_v17 }
 0x4ff   : > { %6399 = vmatmul.mubr.msk.bf16.vlgmr.msra.gmra.mrb[36].mxu1 %vm3556_vm3, %v3658_v8  ;;  %v7172_v8 = vld [vmem:[#allocation7 + $0x144] ss:$16 sps:$4 sm:$0xff]  }
 0x500   : > { %6410 = vmatprep.mubr.msk.bf16.mxu1 %vm7565_vm0, %v7564_v28  ;;  %v7118_v28 = vld [vmem:[#allocation7 + $0x24] ss:$16 sps:$4 sm:$0xff]  }
 0x51c   : > { %v3625_v21 = vpop.xlane.xlu1 %3624 }
 0x51d   : > { %7330 = vrcp.f32 %v3625_v21  ;;  %v7175_v21 = vld [vmem:[#allocation7 + $0x14c] ss:$16 sps:$4 sm:$0xff]  }
 0x520   : > { %v3628_v22 = vpop.xlane.xlu1 %3627 }
 0x521   : > { %7332 = vrcp.f32 %v3628_v22 }
 0x524   : > { %v3177_v63 = vpop.permute.xlu1 %3176 }
 0x525   : > { %v3186_v23 = vpack.c.bf16 %v3177_v63, %v3177_v63 }
 0x527   : > { %v7331_v25 = vpop.eup %7330  ;;  %v3988_v26 = vsel %vm3664_vm2, %v3186_v23, 0  ;;  %v7170_v23 = vld [vmem:[#allocation7 + $0x140] ss:$16 sps:$4 sm:$0xff]  }
 0x528   : > { %v3643_v27 = vmul.f32 %v7331_v25, %v7986_v49  ;;  %6409 = vmatpush3.bf16.msra.mxu1 %v3988_v26  ;;  %v7178_v25 = vld [vmem:[#allocation7 + $0x164] ss:$16 sps:$4 sm:$0xff]   ;;  %v7181_v26 = vld [vmem:[#allocation7 + $0x16c] ss:$16 sps:$4 sm:$0xff]  }
 0x529   : > { %4290 = vmatprep.subr.bf16.mxu1 %v7115_v24  ;;  %v7173_v24 = vld [vmem:[#allocation7 + $0x148] ss:$16 sps:$4 sm:$0xff]  }
 0x52a   : > { %3651 = vst.msk [vmem:[%s7975_s27 + $0x30] sm:$0xff] %vm3556_vm3, %v3643_v27  ;;  %v3659_v31 = vpack.c.bf16 %v3643_v27, %v3643_v27 }
 0x52b   : > { %v7333_v32 = vpop.eup %7332 }
 0x52c   : > { %v3644_v5 = vmul.f32 %v7333_v32, %v7990_v51  ;;  %6405 = vmatmul.mubr.msk.bf16.vlgmr.msra.gmra.mrb[40].mxu0 %vm3556_vm3, %v3659_v31  ;;  %v7137_v51 = vld [vmem:[#allocation7 + $0x88] ss:$16 sps:$4 sm:$0xff]   ;;  %v7176_v31 = vld [vmem:[#allocation7 + $0x160] ss:$16 sps:$4 sm:$0xff]  }
 0x52d   : > { %4250 = vmatpush1.bf16.msra.mxu0 %v7110_v29  ;;  %4281 = vmatprep.mubr.bf16.mxu0 %v7567_v35 }
 0x52e   : > { %3652 = vst.msk [vmem:[%s7975_s27 + $0x38] sm:$0xff] %vm3556_vm3, %v3644_v5  ;;  %v3660_v36 = vpack.c.bf16 %v3644_v5, %v3644_v5  ;;  %4251 = vmatprep.subr.bf16.mxu0 %v7118_v28  ;;  %v7179_v28 = vld [vmem:[#allocation7 + $0x168] ss:$16 sps:$4 sm:$0xff]  }
 0x530   : > { %6411 = vmatmul.mubr.msk.bf16.vlgmr.msra.gmra.mrb[40].mxu1 %vm3556_vm3, %v3660_v36 }
 0x531   : > { %4291 = vmatpush1.bf16.msra.mxu1 %v7113_v33  ;;  %4252 = vmatpush1.bf16.msra.mxu0 %v7116_v34  ;;  %v7184_v33 = vld [vmem:[#allocation7 + $0x184] ss:$16 sps:$4 sm:$0xff]   ;;  %v7187_v34 = vld [vmem:[#allocation7 + $0x18c] ss:$16 sps:$4 sm:$0xff]  }
 0x532   : > { %4292 = vmatprep.subr.bf16.mxu1 %v7121_v37  ;;  %4253 = vmatprep.subr.bf16.mxu0 %v7124_v30 }
 0x533   : > { %4322 = vmatprep.mubr.bf16.mxu1 %v7567_v35 }
 0x535   : > { %4293 = vmatpush1.bf16.msra.mxu1 %v7119_v38  ;;  %4254 = vmatpush1.bf16.msra.mxu0 %v7122_v48  ;;  %v7182_v48 = vld [vmem:[#allocation7 + $0x180] ss:$16 sps:$4 sm:$0xff]  }
 0x536   : > { %4294 = vmatprep.subr.bf16.mxu1 %v7127_v39  ;;  %4255 = vmatprep.subr.bf16.mxu0 %v7130_v40  ;;  %v7185_v39 = vld [vmem:[#allocation7 + $0x188] ss:$16 sps:$4 sm:$0xff]  }
 0x539   : > { %4295 = vmatpush1.bf16.msra.mxu1 %v7125_v44  ;;  %4256 = vmatpush1.bf16.msra.mxu0 %v7128_v45  ;;  %v7190_v44 = vld [vmem:[#allocation7 + $0x1a4] ss:$16 sps:$4 sm:$0xff]   ;;  %v7193_v45 = vld [vmem:[#allocation7 + $0x1ac] ss:$16 sps:$4 sm:$0xff]  }
 0x53a   : > { %4296 = vmatprep.subr.bf16.mxu1 %v7133_v46  ;;  %4414 = vmatprep.subr.bf16.mxu0 %v7136_v1  ;;  %v7188_v1 = vld [vmem:[#allocation7 + $0x1a0] ss:$16 sps:$4 sm:$0xff]  }
 0x53d   : > { %4297 = vmatpush1.bf16.msra.mxu1 %v7131_v47  ;;  %v7191_v47 = vld [vmem:[#allocation7 + $0x1a8] ss:$16 sps:$4 sm:$0xff]  }
 0x53e   : > { %4455 = vmatprep.subr.bf16.mxu1 %v7139_v42 }
 0x54b   : > { %v3702_v49 = vpop.f32.mrb[28].mxu0 }
 0x54c   : > { %v4030_v9 = vpack.c.bf16 %v3702_v49, %v3702_v49  ;;  %v6370_v52 = vpop.f32.mrb[29].mxu0  ;;  %v7196_v49 = vld [vmem:[#allocation7 + $0x1c4] ss:$16 sps:$4 sm:$0xff]  }
 0x54d   : > { %v3705_v54 = vpop.f32.mrb[30].mxu0  ;;  %v7194_v52 = vld [vmem:[#allocation7 + $0x1c0] ss:$16 sps:$4 sm:$0xff]  }
 0x54e   : > { %v6371_v55 = vpop.f32.mrb[31].mxu0  ;;  %6147 = vmatmul.mubr.msk.bf16.vlgmr.msra.gmra.mrb[44].mxu0 %vm3187_vm1, %v4030_v9  ;;  %6148 = vmatmul.mubr.msk.bf16.vlgmr.msra.gmra.mrb[44].mxu1 %vm3187_vm1, %v4030_v9  ;;  %v7205_v54 = vld [vmem:[#allocation7 + $0x1ec] ss:$16 sps:$4 sm:$0xff]  }
 0x54f   : > { %4415 = vmatpush1.bf16.msra.mxu0 %v7134_v50  ;;  %4456 = vmatpush1.bf16.msra.mxu1 %v7137_v51  ;;  %v7199_v50 = vld [vmem:[#allocation7 + $0x1cc] ss:$16 sps:$4 sm:$0xff]   ;;  %v7200_v55 = vld [vmem:[#allocation7 + $0x1e0] ss:$16 sps:$4 sm:$0xff]  }
 0x550   : > { %4416 = vmatprep.subr.bf16.mxu0 %v7142_v41  ;;  %4457 = vmatprep.subr.bf16.mxu1 %v7145_v53  ;;  %v7197_v41 = vld [vmem:[#allocation7 + $0x1c8] ss:$16 sps:$4 sm:$0xff]   ;;  %v7202_v53 = vld [vmem:[#allocation7 + $0x1e4] ss:$16 sps:$4 sm:$0xff]  }
 0x551   : > { %4446 = vmatprep.mubr.bf16.mxu0 %v7567_v35  ;;  %4487 = vmatprep.mubr.bf16.mxu1 %v7567_v35 }
 0x553   : > { %4417 = vmatpush1.bf16.msra.mxu0 %v7140_v56  ;;  %4458 = vmatpush1.bf16.msra.mxu1 %v7143_v57  ;;  %v7203_v56 = vld [vmem:[#allocation7 + $0x1e8] ss:$16 sps:$4 sm:$0xff]   ;;  %v7208_v57 = vld [vmem:[#allocation7 + $0x204] ss:$16 sps:$4 sm:$0xff]  }
 0x554   : > { %4418 = vmatprep.subr.bf16.mxu0 %v7148_v58  ;;  %4459 = vmatprep.subr.bf16.mxu1 %v7151_v43  ;;  %v7211_v58 = vld [vmem:[#allocation7 + $0x20c] ss:$16 sps:$4 sm:$0xff]   ;;  %v7206_v43 = vld [vmem:[#allocation7 + $0x200] ss:$16 sps:$4 sm:$0xff]  }
 0x557   : > { %4419 = vmatpush1.bf16.msra.mxu0 %v7146_v59  ;;  %4460 = vmatpush1.bf16.msra.mxu1 %v7149_v60  ;;  %v7209_v59 = vld [vmem:[#allocation7 + $0x208] ss:$16 sps:$4 sm:$0xff]  }
 0x558   : > { %4420 = vmatprep.subr.bf16.mxu0 %v7154_v61  ;;  %4461 = vmatprep.subr.bf16.mxu1 %v7157_v62  ;;  %v7214_v61 = vld [vmem:[#allocation7 + $0x224] ss:$16 sps:$4 sm:$0xff]   ;;  %v7217_v62 = vld [vmem:[#allocation7 + $0x22c] ss:$16 sps:$4 sm:$0xff]  }
 0x55b   : > { %4421 = vmatpush1.bf16.msra.mxu0 %v7152_v0  ;;  %4462 = vmatpush1.bf16.msra.mxu1 %v7155_v2  ;;  %v7212_v0 = vld [vmem:[#allocation7 + $0x220] ss:$16 sps:$4 sm:$0xff]   ;;  %v7215_v2 = vld [vmem:[#allocation7 + $0x228] ss:$16 sps:$4 sm:$0xff]  }
 0x55c   : > { %4579 = vmatprep.subr.bf16.mxu0 %v7160_v3  ;;  %4620 = vmatprep.subr.bf16.mxu1 %v7163_v4  ;;  %v7220_v3 = vld [vmem:[#allocation7 + $0x244] ss:$16 sps:$4 sm:$0xff]   ;;  %v7223_v4 = vld [vmem:[#allocation7 + $0x24c] ss:$16 sps:$4 sm:$0xff]  }
 0x5be   : > { %v3748_v6 = vpop.f32.mrb[28].mxu1 }
 0x5bf   : > { %v4031_v11 = vpack.c.bf16 %v3748_v6, %v3748_v6  ;;  %v6376_v12 = vpop.f32.mrb[29].mxu1  ;;  %v7218_v6 = vld [vmem:[#allocation7 + $0x240] ss:$16 sps:$4 sm:$0xff]  }
 0x5c0   : > { %v3751_v15 = vpop.f32.mrb[30].mxu1  ;;  %v7224_v12 = vld [vmem:[#allocation7 + $0x260] ss:$16 sps:$4 sm:$0xff]  }
 0x5c1   : > { %v6377_v16 = vpop.f32.mrb[31].mxu1  ;;  %6165 = vmatmul.mubr.msk.bf16.vlgmr.msra.gmra.mrb[48].mxu0 %vm3187_vm1, %v4031_v11  ;;  %6166 = vmatmul.mubr.msk.bf16.vlgmr.msra.gmra.mrb[48].mxu1 %vm3187_vm1, %v4031_v11  ;;  %v7229_v11 = vld [vmem:[#allocation7 + $0x26c] ss:$16 sps:$4 sm:$0xff]  }
 0x5c2   : > { %4580 = vmatpush1.bf16.msra.mxu0 %v7158_v7  ;;  %4621 = vmatpush1.bf16.msra.mxu1 %v7161_v10  ;;  %v3794_v17 = vpop.f32.mrb[32].mxu0  ;;  %v7221_v7 = vld [vmem:[#allocation7 + $0x248] ss:$16 sps:$4 sm:$0xff]   ;;  %v7226_v10 = vld [vmem:[#allocation7 + $0x264] ss:$16 sps:$4 sm:$0xff]  }
 0x5c3   : > { %v6382_v20 = vpop.f32.mrb[33].mxu0  ;;  %4581 = vmatprep.subr.bf16.mxu0 %v7166_v13  ;;  %4622 = vmatprep.subr.bf16.mxu1 %v7169_v14  ;;  %v4032_v40 = vpack.c.bf16 %v3794_v17, %v3794_v17  ;;  %v7227_v13 = vld [vmem:[#allocation7 + $0x268] ss:$16 sps:$4 sm:$0xff]   ;;  %v7232_v14 = vld [vmem:[#allocation7 + $0x284] ss:$16 sps:$4 sm:$0xff]  }
 0x5c4   : > { %v3797_v22 = vpop.f32.mrb[34].mxu0  ;;  %4611 = vmatprep.mubr.bf16.mxu0 %v7567_v35  ;;  %4652 = vmatprep.mubr.bf16.mxu1 %v7567_v35  ;;  %v7235_v15 = vld [vmem:[#allocation7 + $0x28c] ss:$16 sps:$4 sm:$0xff]   ;;  %v7230_v16 = vld [vmem:[#allocation7 + $0x280] ss:$16 sps:$4 sm:$0xff]  }
 0x5c5   : > { %v6383_v63 = vpop.f32.mrb[35].mxu0  ;;  %v7233_v17 = vld [vmem:[#allocation7 + $0x288] ss:$16 sps:$4 sm:$0xff]   ;;  %v7241_v20 = vld [vmem:[#allocation7 + $0x2ac] ss:$16 sps:$4 sm:$0xff]  }
 0x5c6   : > { %4582 = vmatpush1.bf16.msra.mxu0 %v7164_v18  ;;  %4623 = vmatpush1.bf16.msra.mxu1 %v7167_v19  ;;  %v7238_v19 = vld [vmem:[#allocation7 + $0x2a4] ss:$16 sps:$4 sm:$0xff]   ;;  %v7247_v63 = vld [vmem:[#allocation7 + $0x2cc] ss:$16 sps:$4 sm:$0xff]  }
 0x5c7   : > { %4583 = vmatprep.subr.bf16.mxu0 %v7172_v8  ;;  %4624 = vmatprep.subr.bf16.mxu1 %v7175_v21  ;;  %v7236_v8 = vld [vmem:[#allocation7 + $0x2a0] ss:$16 sps:$4 sm:$0xff]   ;;  %v7239_v21 = vld [vmem:[#allocation7 + $0x2a8] ss:$16 sps:$4 sm:$0xff]   ;;  %v7244_v22 = vld [vmem:[#allocation7 + $0x2c4] ss:$16 sps:$4 sm:$0xff]  }
 0x5ca   : > { %4584 = vmatpush1.bf16.msra.mxu0 %v7170_v23  ;;  %4625 = vmatpush1.bf16.msra.mxu1 %v7173_v24  ;;  %v3840_v27 = vpop.f32.mrb[32].mxu1  ;;  %v8056_v29 = vpop.f32.mrb[36].mxu0  ;;  %v7242_v23 = vld [vmem:[#allocation7 + $0x2c0] ss:$16 sps:$4 sm:$0xff]   ;;  %v7245_v24 = vld [vmem:[#allocation7 + $0x2c8] ss:$16 sps:$4 sm:$0xff]  }
 0x5cb   : > { %v6388_v32 = vpop.f32.mrb[33].mxu1  ;;  %v6394_v5 = vpop.f32.mrb[37].mxu0  ;;  %4585 = vmatprep.subr.bf16.mxu0 %v7178_v25  ;;  %4626 = vmatprep.subr.bf16.mxu1 %v7181_v26  ;;  %v4033_v60 = vpack.c.bf16 %v3840_v27, %v3840_v27  ;;  %v4034_v18 = vpack.c.bf16 %v8056_v29, %v8056_v29  ;;  %v7250_v25 = vld [vmem:[#allocation7 + $0x2e4] ss:$16 sps:$4 sm:$0xff]   ;;  %v7253_v26 = vld [vmem:[#allocation7 + $0x2ec] ss:$16 sps:$4 sm:$0xff]  }
 0x5cc   : > { %v3843_v36 = vpop.f32.mrb[34].mxu1  ;;  %v3889_v37 = vpop.f32.mrb[38].mxu0  ;;  %v7248_v27 = vld [vmem:[#allocation7 + $0x2e0] ss:$16 sps:$4 sm:$0xff]   ;;  %v7251_v29 = vld [vmem:[#allocation7 + $0x2e8] ss:$16 sps:$4 sm:$0xff]  }
 0x5cd   : > { %v6389_v30 = vpop.f32.mrb[35].mxu1  ;;  %v6395_v38 = vpop.f32.mrb[39].mxu0  ;;  %v7254_v32 = vld [vmem:[#allocation7 + $0x300] ss:$16 sps:$4 sm:$0xff]   ;;  %v7257_v5 = vld [vmem:[#allocation7 + $0x308] ss:$16 sps:$4 sm:$0xff]  }
 0x5ce   : > { %4586 = vmatpush1.bf16.msra.mxu0 %v7176_v31  ;;  %4627 = vmatpush1.bf16.msra.mxu1 %v7179_v28  ;;  %v7256_v31 = vld [vmem:[#allocation7 + $0x304] ss:$16 sps:$4 sm:$0xff]   ;;  %v7259_v28 = vld [vmem:[#allocation7 + $0x30c] ss:$16 sps:$4 sm:$0xff]  }
 0x5cf   : > { %4744 = vmatprep.subr.bf16.mxu0 %v7184_v33  ;;  %4785 = vmatprep.subr.bf16.mxu1 %v7187_v34  ;;  %v7262_v36 = vld [vmem:[#allocation7 + $0x324] ss:$16 sps:$4 sm:$0xff]   ;;  %v7265_v37 = vld [vmem:[#allocation7 + $0x32c] ss:$16 sps:$4 sm:$0xff]  }
 0x5d1   : > { %6183 = vmatmul.mubr.msk.bf16.vlgmr.msra.gmra.mrb[52].mxu0 %vm3187_vm1, %v4032_v40  ;;  %6184 = vmatmul.mubr.msk.bf16.vlgmr.msra.gmra.mrb[52].mxu1 %vm3187_vm1, %v4032_v40  ;;  %v7263_v40 = vld [vmem:[#allocation7 + $0x328] ss:$16 sps:$4 sm:$0xff]  }
 0x5d2   : > { %4745 = vmatpush1.bf16.msra.mxu0 %v7182_v48  ;;  %4786 = vmatpush1.bf16.msra.mxu1 %v7185_v39  ;;  %v8060_v46 = vpop.f32.mrb[36].mxu1  ;;  %v7260_v39 = vld [vmem:[#allocation7 + $0x320] ss:$16 sps:$4 sm:$0xff]  }
 0x5d3   : > { %v6400_v42 = vpop.f32.mrb[37].mxu1  ;;  %4746 = vmatprep.subr.bf16.mxu0 %v7190_v44  ;;  %4787 = vmatprep.subr.bf16.mxu1 %v7193_v45  ;;  %v4035_v33 = vpack.c.bf16 %v8060_v46, %v8060_v46  ;;  %v7268_v45 = vld [vmem:[#allocation7 + $0x344] ss:$16 sps:$4 sm:$0xff]   ;;  %v7271_v46 = vld [vmem:[#allocation7 + $0x34c] ss:$16 sps:$4 sm:$0xff]  }
 0x5d4   : > { %v3935_v51 = vpop.f32.mrb[38].mxu1  ;;  %4776 = vmatprep.mubr.bf16.mxu0 %v7567_v35  ;;  %4817 = vmatprep.mubr.bf16.mxu1 %v7567_v35 }
 0x5d5   : > { %v6401_v9 = vpop.f32.mrb[39].mxu1  ;;  %v7274_v51 = vld [vmem:[#allocation7 + $0x364] ss:$16 sps:$4 sm:$0xff]  }
 0x5d6   : > { %4747 = vmatpush1.bf16.msra.mxu0 %v7188_v1  ;;  %4788 = vmatpush1.bf16.msra.mxu1 %v7191_v47  ;;  %v7277_v9 = vld [vmem:[#allocation7 + $0x36c] ss:$16 sps:$4 sm:$0xff]  }
 0x5d7   : > { %4748 = vmatprep.subr.bf16.mxu0 %v7196_v49  ;;  %4789 = vmatprep.subr.bf16.mxu1 %v7199_v50  ;;  %v7266_v49 = vld [vmem:[#allocation7 + $0x340] ss:$16 sps:$4 sm:$0xff]   ;;  %v7269_v50 = vld [vmem:[#allocation7 + $0x348] ss:$16 sps:$4 sm:$0xff]  }
 0x5da   : > { %4749 = vmatpush1.bf16.msra.mxu0 %v7194_v52  ;;  %4790 = vmatpush1.bf16.msra.mxu1 %v7197_v41  ;;  %v7272_v52 = vld [vmem:[#allocation7 + $0x360] ss:$16 sps:$4 sm:$0xff]   ;;  %v7275_v41 = vld [vmem:[#allocation7 + $0x368] ss:$16 sps:$4 sm:$0xff]  }
 0x5db   : > { %4750 = vmatprep.subr.bf16.mxu0 %v7202_v53  ;;  %4791 = vmatprep.subr.bf16.mxu1 %v7205_v54  ;;  %v7280_v53 = vld [vmem:[#allocation7 + $0x384] ss:$16 sps:$4 sm:$0xff]   ;;  %v7283_v54 = vld [vmem:[#allocation7 + $0x38c] ss:$16 sps:$4 sm:$0xff]  }
 0x5de   : > { %4751 = vmatpush1.bf16.msra.mxu0 %v7200_v55  ;;  %4792 = vmatpush1.bf16.msra.mxu1 %v7203_v56  ;;  %v7278_v55 = vld [vmem:[#allocation7 + $0x380] ss:$16 sps:$4 sm:$0xff]   ;;  %v7281_v56 = vld [vmem:[#allocation7 + $0x388] ss:$16 sps:$4 sm:$0xff]  }
 0x5df   : > { %4909 = vmatprep.subr.bf16.mxu0 %v7208_v57  ;;  %4950 = vmatprep.subr.bf16.mxu1 %v7211_v58  ;;  %v7286_v58 = vld [vmem:[#allocation7 + $0x3a4] ss:$16 sps:$4 sm:$0xff]  }
 0x5e1   : > { %6201 = vmatmul.mubr.msk.bf16.vlgmr.msra.gmra.mrb[56].mxu0 %vm3187_vm1, %v4033_v60  ;;  %6202 = vmatmul.mubr.msk.bf16.vlgmr.msra.gmra.mrb[56].mxu1 %vm3187_vm1, %v4033_v60  ;;  %v7287_v60 = vld [vmem:[#allocation7 + $0x3a8] ss:$16 sps:$4 sm:$0xff]  }
 0x5e2   : > { %4910 = vmatpush1.bf16.msra.mxu0 %v7206_v43  ;;  %4951 = vmatpush1.bf16.msra.mxu1 %v7209_v59  ;;  %v7289_v43 = vld [vmem:[#allocation7 + $0x3ac] ss:$16 sps:$4 sm:$0xff]   ;;  %v7284_v59 = vld [vmem:[#allocation7 + $0x3a0] ss:$16 sps:$4 sm:$0xff]  }
 0x5e3   : > { %4911 = vmatprep.subr.bf16.mxu0 %v7214_v61  ;;  %4952 = vmatprep.subr.bf16.mxu1 %v7217_v62  ;;  %v7292_v61 = vld [vmem:[#allocation7 + $0x3c4] ss:$16 sps:$4 sm:$0xff]   ;;  %v7295_v62 = vld [vmem:[#allocation7 + $0x3cc] ss:$16 sps:$4 sm:$0xff]  }
 0x5e4   : > { %4941 = vmatprep.mubr.bf16.mxu0 %v7567_v35  ;;  %4982 = vmatprep.mubr.bf16.mxu1 %v7567_v35 }
 0x5e6   : > { %4912 = vmatpush1.bf16.msra.mxu0 %v7212_v0  ;;  %4953 = vmatpush1.bf16.msra.mxu1 %v7215_v2  ;;  %v7290_v0 = vld [vmem:[#allocation7 + $0x3c0] ss:$16 sps:$4 sm:$0xff]   ;;  %v7293_v2 = vld [vmem:[#allocation7 + $0x3c8] ss:$16 sps:$4 sm:$0xff]  }
 0x5e7   : > { %4913 = vmatprep.subr.bf16.mxu0 %v7220_v3  ;;  %4954 = vmatprep.subr.bf16.mxu1 %v7223_v4  ;;  %v7298_v3 = vld [vmem:[#allocation7 + $0x3e4] ss:$16 sps:$4 sm:$0xff]   ;;  %v7301_v4 = vld [vmem:[#allocation7 + $0x3ec] ss:$16 sps:$4 sm:$0xff]  }
 0x5ea   : > { %4914 = vmatpush1.bf16.msra.mxu0 %v7218_v6  ;;  %4955 = vmatpush1.bf16.msra.mxu1 %v7221_v7  ;;  %v7296_v6 = vld [vmem:[#allocation7 + $0x3e0] ss:$16 sps:$4 sm:$0xff]   ;;  %v7299_v7 = vld [vmem:[#allocation7 + $0x3e8] ss:$16 sps:$4 sm:$0xff]  }
 0x5eb   : > { %4915 = vmatprep.subr.bf16.mxu0 %v7226_v10  ;;  %4956 = vmatprep.subr.bf16.mxu1 %v7229_v11 }
 0x5ee   : > { %4916 = vmatpush1.bf16.msra.mxu0 %v7224_v12  ;;  %4957 = vmatpush1.bf16.msra.mxu1 %v7227_v13 }
 0x5ef   : > { %5074 = vmatprep.subr.bf16.mxu0 %v7232_v14  ;;  %5115 = vmatprep.subr.bf16.mxu1 %v7235_v15 }
 0x5f1   : > { %6219 = vmatmul.mubr.msk.bf16.vlgmr.msra.gmra.mrb[60].mxu0 %vm3187_vm1, %v4034_v18  ;;  %6220 = vmatmul.mubr.msk.bf16.vlgmr.msra.gmra.mrb[60].mxu1 %vm3187_vm1, %v4034_v18 }
 0x5f2   : > { %5075 = vmatpush1.bf16.msra.mxu0 %v7230_v16  ;;  %5116 = vmatpush1.bf16.msra.mxu1 %v7233_v17 }
 0x5f3   : > { %5076 = vmatprep.subr.bf16.mxu0 %v7238_v19  ;;  %5117 = vmatprep.subr.bf16.mxu1 %v7241_v20 }
 0x5f4   : > { %5106 = vmatprep.mubr.bf16.mxu0 %v7567_v35  ;;  %5147 = vmatprep.mubr.bf16.mxu1 %v7567_v35 }
 0x5f6   : > { %5077 = vmatpush1.bf16.msra.mxu0 %v7236_v8  ;;  %5118 = vmatpush1.bf16.msra.mxu1 %v7239_v21 }
 0x5f7   : > { %5078 = vmatprep.subr.bf16.mxu0 %v7244_v22  ;;  %5119 = vmatprep.subr.bf16.mxu1 %v7247_v63 }
 0x5fa   : > { %5079 = vmatpush1.bf16.msra.mxu0 %v7242_v23  ;;  %5120 = vmatpush1.bf16.msra.mxu1 %v7245_v24 }
 0x5fb   : > { %5080 = vmatprep.subr.bf16.mxu0 %v7250_v25  ;;  %5121 = vmatprep.subr.bf16.mxu1 %v7253_v26 }
 0x5fe   : > { %5081 = vmatpush1.bf16.msra.mxu0 %v7248_v27  ;;  %5122 = vmatpush1.bf16.msra.mxu1 %v7251_v29 }
 0x5ff   : > { %v3978_v34 = vpop.f32.mrb[40].mxu0  ;;  %5239 = vmatprep.subr.bf16.mxu0 %v7256_v31  ;;  %5280 = vmatprep.subr.bf16.mxu1 %v7259_v28 }
 0x600   : > { %v6406_v30 = vpop.f32.mrb[41].mxu0  ;;  %v4036_v57 = vpack.c.bf16 %v3978_v34, %v3978_v34 }
 0x601   : > { %6237 = vmatmul.mubr.msk.bf16.vlgmr.msra.gmra.mrb[64].mxu0 %vm3187_vm1, %v4035_v33  ;;  %6238 = vmatmul.mubr.msk.bf16.vlgmr.msra.gmra.mrb[64].mxu1 %vm3187_vm1, %v4035_v33  ;;  %v3981_v38 = vpop.f32.mrb[42].mxu0 }
 0x602   : > { %5240 = vmatpush1.bf16.msra.mxu0 %v7254_v32  ;;  %5281 = vmatpush1.bf16.msra.mxu1 %v7257_v5  ;;  %v6407_v48 = vpop.f32.mrb[43].mxu0 }
 0x603   : > { %v4024_v44 = vpop.f32.mrb[40].mxu1  ;;  %5241 = vmatprep.subr.bf16.mxu0 %v7262_v36  ;;  %5282 = vmatprep.subr.bf16.mxu1 %v7265_v37 }
 0x604   : > { %v6412_v1 = vpop.f32.mrb[41].mxu1  ;;  %5271 = vmatprep.mubr.bf16.mxu0 %v7567_v35  ;;  %5312 = vmatprep.mubr.bf16.mxu1 %v7567_v35 }
 0x605   : > { %v4027_v47 = vpop.f32.mrb[42].mxu1 }
 0x606   : > { %5242 = vmatpush1.bf16.msra.mxu0 %v7260_v39  ;;  %5283 = vmatpush1.bf16.msra.mxu1 %v7263_v40  ;;  %v6413_v42 = vpop.f32.mrb[43].mxu1 }
 0x607   : > { %5243 = vmatprep.subr.bf16.mxu0 %v7268_v45  ;;  %5284 = vmatprep.subr.bf16.mxu1 %v7271_v46 }
 0x60a   : > { %5244 = vmatpush1.bf16.msra.mxu0 %v7266_v49  ;;  %5285 = vmatpush1.bf16.msra.mxu1 %v7269_v50 }
 0x60b   : > { %5245 = vmatprep.subr.bf16.mxu0 %v7274_v51  ;;  %5286 = vmatprep.subr.bf16.mxu1 %v7277_v9 }
 0x60e   : > { %5246 = vmatpush1.bf16.msra.mxu0 %v7272_v52  ;;  %5287 = vmatpush1.bf16.msra.mxu1 %v7275_v41 }
 0x60f   : > { %5404 = vmatprep.subr.bf16.mxu0 %v7280_v53  ;;  %5445 = vmatprep.subr.bf16.mxu1 %v7283_v54 }
 0x611   : > { %6255 = vmatmul.mubr.msk.bf16.vlgmr.msra.gmra.mrb[68].mxu0 %vm3187_vm1, %v4036_v57  ;;  %6256 = vmatmul.mubr.msk.bf16.vlgmr.msra.gmra.mrb[68].mxu1 %vm3187_vm1, %v4036_v57 }
 0x612   : > { %5405 = vmatpush1.bf16.msra.mxu0 %v7278_v55  ;;  %5446 = vmatpush1.bf16.msra.mxu1 %v7281_v56 }
 0x613   : > { %5406 = vmatprep.subr.bf16.mxu0 %v7286_v58  ;;  %5447 = vmatprep.subr.bf16.mxu1 %v7289_v43 }
 0x614   : > { %5436 = vmatprep.mubr.bf16.mxu0 %v7567_v35  ;;  %5477 = vmatprep.mubr.bf16.mxu1 %v7567_v35  ;;  %v4037_v35 = vpack.c.bf16 %v4024_v44, %v4024_v44 }
 0x616   : > { %5407 = vmatpush1.bf16.msra.mxu0 %v7284_v59  ;;  %5448 = vmatpush1.bf16.msra.mxu1 %v7287_v60 }
 0x617   : > { %5408 = vmatprep.subr.bf16.mxu0 %v7292_v61  ;;  %5449 = vmatprep.subr.bf16.mxu1 %v7295_v62 }
 0x61a   : > { %5409 = vmatpush1.bf16.msra.mxu0 %v7290_v0  ;;  %5450 = vmatpush1.bf16.msra.mxu1 %v7293_v2 }
 0x61b   : > { %5410 = vmatprep.subr.bf16.mxu0 %v7298_v3  ;;  %5451 = vmatprep.subr.bf16.mxu1 %v7301_v4 }
 0x61e   : > { %5411 = vmatpush1.bf16.msra.mxu0 %v7296_v6  ;;  %5452 = vmatpush1.bf16.msra.mxu1 %v7299_v7 }
 0x621   : > { %6273 = vmatmul.mubr.msk.bf16.vlgmr.msra.gmra.mrb[72].mxu0 %vm3187_vm1, %v4037_v35  ;;  %6274 = vmatmul.mubr.msk.bf16.vlgmr.msra.gmra.mrb[72].mxu1 %vm3187_vm1, %v4037_v35  ;;  %v4283_v10 = vpop.f32.mrb[44].mxu0  ;;  %v4324_v11 = vpop.f32.mrb[44].mxu1 }
 0x622   : > { %v4285_v12 = vpop.f32.mrb[45].mxu0  ;;  %v4326_v13 = vpop.f32.mrb[45].mxu1 }
 0x623   : > { %v4287_v14 = vpop.f32.mrb[46].mxu0  ;;  %v4328_v15 = vpop.f32.mrb[46].mxu1 }
 0x624   : > { %v4288_v16 = vpop.f32.mrb[47].mxu0  ;;  %v4329_v17 = vpop.f32.mrb[47].mxu1 }
 0x625   : > { %7461 = shalt.err (!%p7458_p4)
}
 0x626   : > { %s7462_s12 = scalar_lea.hbm %s8091_s8, 1024  ;;  %s7466_s26 = scalar_lea.hbm %s8173_s5, 2048 }
 0x627   : > { %p7463_p0 = scmp.ne.s32.totalorder %s8091_s8, %s7462_s12  ;;  %p7467_p8 = scmp.lt.u32.totalorder %s8091_s8, %s8173_s5 }
 0x628   : > { %p7468_p13 = scmp.lt.u32.totalorder %s7466_s26, %s7462_s12  ;;  %p7470_p10 = scmp.lt.u32.totalorder %s7462_s12, %s8091_s8 }
 0x629   : > { %p7464_p9 = pnand %p7463_p0, %p7744_p5 }
 0x62a   : > { %p7469_p6 = por %p7468_p13, %p7467_p8 }
 0x62b   : > { %p7465_p11 = pneg %p7464_p9 }
 0x62c   : > { %p7471_p3 = por %p7470_p10, %p7469_p6 }
 0x62e   : > { %p7472_p7 = pnand %p7471_p3, %p7465_p11 }
 0x630   : > { %7475 = shalt.err (!%p7472_p7)
}
 0x631   : > { %s7569_s6 = smov 128   ;;  %s7570_s7 = smov 8  }
 0x632   : > { %6453 = dma.vmem_to_hbm [thread:$0]  (%p7744_p5), %s8093_s28, 1024, %s8091_s8, %s5550_s23, %s7569_s6, %s7569_s6, %s7570_s7  }
 0x633   : > { %s5725_s28 = sshll.u32 %s7789_s14, 5  ;;  %s6284_s8 = sshll.u32 %s7623_s22, 9 }
 0x634   : > { %s286_s23 = scalar_lea.vmem [#allocation10], %s5725_s28  ;;  %s8124_s15 = scalar_lea.hbm %s8172_s4, %s6284_s8 }
 0x635   : > { %s5564_s9 = sshll.u32 %s286_s23, 4  ;;  %s5545_s22 = scalar_lea.sflag [#allocation4], %s7789_s14  ;;  %s8126_s9 = int_to_ptr.vmem [resolvable:$true] %s5564_s9 }
 0x636   : > { %s7476_s12 = scalar_lea.vmem %s8126_s9, 512  ;;  %s7571_s16 = smov [#allocation10]  }
 0x637   : > { %p7477_p12 = scmp.ne.s32.totalorder %s8126_s9, %s7476_s12  ;;  %s7480_s24 = sshll.u32 %s7571_s16, 4  ;;  %s7481_s24 = int_to_ptr.vmem [resolvable:$false] %s7480_s24 }
 0x638   : > { %s7482_s26 = scalar_lea.vmem %s7481_s24, 1024  ;;  %p7483_p4 = scmp.lt.s32.totalorder %s8126_s9, %s7481_s24 }
 0x639   : > { %p7478_p2 = pnand %p7477_p12, %p7744_p5  ;;  %p7484_p0 = scmp.lt.s32.totalorder %s7482_s26, %s7476_s12 }
 0x63b   : > { %p7479_p1 = pneg %p7478_p2  ;;  %p7485_p9 = por %p7484_p0, %p7483_p4 }
 0x63d   : > { %p7486_p11 = pnand %p7485_p9, %p7479_p1 }
 0x694   : > { %v4448_v18 = vpop.f32.mrb[48].mxu0  ;;  %v4489_v19 = vpop.f32.mrb[48].mxu1 }
 0x695   : > { %v5486_v20 = vadd.f32 %v4448_v18, %v4283_v10  ;;  %v5500_v8 = vadd.f32 %v4489_v19, %v4324_v11  ;;  %v4450_v21 = vpop.f32.mrb[49].mxu0  ;;  %v4491_v22 = vpop.f32.mrb[49].mxu1 }
 0x696   : > { %v5493_v63 = vadd.f32 %v4450_v21, %v4285_v12  ;;  %v5507_v23 = vadd.f32 %v4491_v22, %v4326_v13  ;;  %v4452_v24 = vpop.f32.mrb[50].mxu0  ;;  %v4493_v25 = vpop.f32.mrb[50].mxu1 }
 0x697   : > { %v4453_v26 = vpop.f32.mrb[51].mxu0  ;;  %v4494_v27 = vpop.f32.mrb[51].mxu1  ;;  %v5516_v24 = vlaneseq }
 0x699   : > { %v5517_v25 = vshrl.u32 %v5516_v24, 7 }
 0x69b   : > { %v5518_v26 = vsub.s32 0, %v5517_v25  ;;  %v5526_v27 = vsub.s32 2, %v5517_v25 }
 0x6a4   : > { %v4613_v29 = vpop.f32.mrb[52].mxu0  ;;  %v4654_v31 = vpop.f32.mrb[52].mxu1 }
 0x6a5   : > { %v5487_v28 = vadd.f32 %v5486_v20, %v4613_v29  ;;  %v5501_v32 = vadd.f32 %v5500_v8, %v4654_v31  ;;  %v4615_v5 = vpop.f32.mrb[53].mxu0  ;;  %v4656_v33 = vpop.f32.mrb[53].mxu1  ;;  %v5514_v29 = vld [vmem:[#allocation8] sm:$0xf]  ;;  %v5522_v31 = vsub.s32 1, %v5517_v25 }
 0x6a6   : > { %v5494_v34 = vadd.f32 %v5493_v63, %v4615_v5  ;;  %v5508_v36 = vadd.f32 %v5507_v23, %v4656_v33  ;;  %v4617_v37 = vpop.f32.mrb[54].mxu0  ;;  %v4658_v30 = vpop.f32.mrb[54].mxu1  ;;  %v5527_v5 = vrot.slane %v5514_v29, %v5526_v27 }
 0x6a7   : > { %v4618_v38 = vpop.f32.mrb[55].mxu0  ;;  %v4659_v48 = vpop.f32.mrb[55].mxu1 }
 0x6b4   : > { %v4778_v39 = vpop.f32.mrb[56].mxu0  ;;  %v4819_v40 = vpop.f32.mrb[56].mxu1 }
 0x6b5   : > { %v5488_v44 = vadd.f32 %v5487_v28, %v4778_v39  ;;  %v5502_v45 = vadd.f32 %v5501_v32, %v4819_v40  ;;  %v4780_v46 = vpop.f32.mrb[57].mxu0  ;;  %v4821_v1 = vpop.f32.mrb[57].mxu1  ;;  %v5530_v28 = vsub.s32 3, %v5517_v25  ;;  %v5519_v32 = vrot.slane %v5514_v29, %v5518_v26 }
 0x6b6   : > { %v5495_v47 = vadd.f32 %v5494_v34, %v4780_v46  ;;  %v5509_v42 = vadd.f32 %v5508_v36, %v4821_v1  ;;  %v4782_v49 = vpop.f32.mrb[58].mxu0  ;;  %v4823_v50 = vpop.f32.mrb[58].mxu1  ;;  %v5523_v36 = vrot.slane %v5514_v29, %v5522_v31 }
 0x6b7   : > { %v4783_v51 = vpop.f32.mrb[59].mxu0  ;;  %v4824_v9 = vpop.f32.mrb[59].mxu1  ;;  %v5531_v37 = vrot.slane %v5514_v29, %v5530_v28 }
 0x6c4   : > { %v4943_v52 = vpop.f32.mrb[60].mxu0  ;;  %v4984_v41 = vpop.f32.mrb[60].mxu1 }
 0x6c5   : > { %v5489_v53 = vadd.f32 %v5488_v44, %v4943_v52  ;;  %v5503_v54 = vadd.f32 %v5502_v45, %v4984_v41  ;;  %v4945_v55 = vpop.f32.mrb[61].mxu0  ;;  %v4986_v56 = vpop.f32.mrb[61].mxu1 }
 0x6c6   : > { %v5496_v57 = vadd.f32 %v5495_v47, %v4945_v55  ;;  %v5510_v58 = vadd.f32 %v5509_v42, %v4986_v56  ;;  %v4947_v43 = vpop.f32.mrb[62].mxu0  ;;  %v4988_v59 = vpop.f32.mrb[62].mxu1 }
 0x6c7   : > { %v4948_v60 = vpop.f32.mrb[63].mxu0  ;;  %v4989_v61 = vpop.f32.mrb[63].mxu1 }
 0x6d4   : > { %v5108_v62 = vpop.f32.mrb[64].mxu0  ;;  %v5149_v0 = vpop.f32.mrb[64].mxu1 }
 0x6d5   : > { %v5490_v2 = vadd.f32 %v5489_v53, %v5108_v62  ;;  %v5504_v3 = vadd.f32 %v5503_v54, %v5149_v0  ;;  %v5110_v4 = vpop.f32.mrb[65].mxu0  ;;  %v5151_v6 = vpop.f32.mrb[65].mxu1 }
 0x6d6   : > { %v5497_v7 = vadd.f32 %v5496_v57, %v5110_v4  ;;  %v5511_v35 = vadd.f32 %v5510_v58, %v5151_v6  ;;  %v5112_v10 = vpop.f32.mrb[66].mxu0  ;;  %v5153_v11 = vpop.f32.mrb[66].mxu1 }
 0x6d7   : > { %v5113_v12 = vpop.f32.mrb[67].mxu0  ;;  %v5154_v13 = vpop.f32.mrb[67].mxu1 }
 0x6e4   : > { %v5273_v14 = vpop.f32.mrb[68].mxu0  ;;  %v5314_v15 = vpop.f32.mrb[68].mxu1 }
 0x6e5   : > { %v5491_v16 = vadd.f32 %v5490_v2, %v5273_v14  ;;  %v5505_v17 = vadd.f32 %v5504_v3, %v5314_v15  ;;  %v5275_v18 = vpop.f32.mrb[69].mxu0  ;;  %v5316_v19 = vpop.f32.mrb[69].mxu1 }
 0x6e6   : > { %v5498_v20 = vadd.f32 %v5497_v7, %v5275_v18  ;;  %v5512_v8 = vadd.f32 %v5511_v35, %v5316_v19  ;;  %v5277_v21 = vpop.f32.mrb[70].mxu0  ;;  %v5318_v22 = vpop.f32.mrb[70].mxu1 }
 0x6e7   : > { %v5278_v63 = vpop.f32.mrb[71].mxu0  ;;  %v5319_v23 = vpop.f32.mrb[71].mxu1 }
 0x6f4   : > { %v5438_v33 = vpop.f32.mrb[72].mxu0  ;;  %v5479_v34 = vpop.f32.mrb[72].mxu1 }
 0x6f5   : > { %v5492_v30 = vadd.f32 %v5491_v16, %v5438_v33  ;;  %v5506_v38 = vadd.f32 %v5505_v17, %v5479_v34  ;;  %v5440_v48 = vpop.f32.mrb[73].mxu0  ;;  %v5481_v39 = vpop.f32.mrb[73].mxu1 }
 0x6f6   : > { %v5499_v40 = vadd.f32 %v5498_v20, %v5440_v48  ;;  %v5513_v44 = vadd.f32 %v5512_v8, %v5481_v39  ;;  %v5442_v45 = vpop.f32.mrb[74].mxu0  ;;  %v5483_v46 = vpop.f32.mrb[74].mxu1 }
 0x6f7   : > { %v5536_v1 = vadd.f32 %v5519_v32, %v5492_v30  ;;  %v5538_v47 = vadd.f32 %v5527_v5, %v5506_v38  ;;  %v5443_v42 = vpop.f32.mrb[75].mxu0  ;;  %v5484_v49 = vpop.f32.mrb[75].mxu1 }
 0x6f8   : > { %v5537_v50 = vadd.f32 %v5523_v36, %v5499_v40  ;;  %v5539_v51 = vadd.f32 %v5531_v37, %v5513_v44 }
 0x6f9   : > { %5540 = vst [vmem:[%s286_s23] sm:$0xff] %v5536_v1  ;;  %5542 = vst [vmem:[%s286_s23 + $0x10] sm:$0xff] %v5538_v47 }
 0x6fa   : > { %5541 = vst [vmem:[%s286_s23 + $0x8] sm:$0xff] %v5537_v50  ;;  %5543 = vst [vmem:[%s286_s23 + $0x18] sm:$0xff] %v5539_v51 }
 0x6fb   : > { %7489 = shalt.err (!%p7486_p11)
}
 0x6fc   : > { %s7490_s14 = scalar_lea.hbm %s8124_s15, 512  ;;  %s7494_s6 = scalar_lea.hbm %s8172_s4, 1024 }
 0x6fd   : > { %p7491_p8 = scmp.ne.s32.totalorder %s8124_s15, %s7490_s14  ;;  %p7495_p10 = scmp.lt.u32.totalorder %s8124_s15, %s8172_s4 }
 0x6fe   : > { %p7496_p3 = scmp.lt.u32.totalorder %s7494_s6, %s7490_s14  ;;  %p7498_p12 = scmp.lt.u32.totalorder %s7490_s14, %s8124_s15 }
 0x6ff   : > { %p7492_p13 = pnand %p7491_p8, %p7744_p5 }
 0x700   : > { %p7497_p7 = por %p7496_p3, %p7495_p10 }
 0x701   : > { %p7493_p6 = pneg %p7492_p13 }
 0x702   : > { %p7499_p2 = por %p7498_p12, %p7497_p7 }
 0x704   : > { %p7500_p1 = pnand %p7499_p2, %p7493_p6 }
 0x706   : > { %7503 = shalt.err (!%p7500_p1)
}
 0x707   : > { %6452 = dma.vmem_to_hbm [thread:$0]  (%p7744_p5), %s8126_s9, 512, %s8124_s15, %s5545_s22  }
 0x708 PF: > { %s5592_s8 = sand.u32 1, %s7542_s18   ;;  %p8191_p4 = scmp.ne.s32.totalorder %s8178_s25, 0 }
 0x709   : > { %p8192_p0 = scmp.ge.s32.totalorder %s7554_s21, 2  ;;  %s5593_s23 = scalar_lea.sflag [#allocation4], %s5592_s8 }
 0x70b   : > { %p6471_p9 = pnand %p8192_p0, %p8191_p4 }
 0x70d   : > { %7533 = dma.done.wait (!%p6471_p9), %s5593_s23, 512  }
 0x70e   : > { %7535 = vsyncadd (!%p6471_p9), %s5593_s23, 4294966784  ;;  %s5602_s10 = scalar_lea.sflag [#allocation12], %s5592_s8 }
 0x70f   : > { %7537 = dma.done.wait (!%p6471_p9), %s5602_s10, 1024  }
 0x710   : > { %7539 = vsyncadd (!%p6471_p9), %s5602_s10, 4294966272  ;;  %p24_p5 = scmp.ge.s32.totalorder %s7712_s30, 4   ;;  %s8193_s18 = smov %s7546_s19 }
 0x711   : > { %s8194_s19 = smov %s7550_s20  ;;  %s8195_s20 = smov %s7740_s29 }
 0x712   : > { %s8196_s21 = smov %s7712_s30  ;;  %26 = sbr.rel (!%p24_p5) target bundleno = 9 (0x9), region = 110 }
 0x719   :  { %5607 = vsyncpa [#allocation3], 1 }
 0x71a   :  { %5609 = vsyncpa [#allocation3 + $0x1], 1 }
 0x71b   :  { %5610 = vsyncpa [#allocation6], 1 }
 0x71c   :  { %5611 = vsyncpa [#allocation9], 1 }
 0x71d   :  { %5612 = vsyncpa [#allocation4], 1 }
 0x71e   :  { %5614 = vsyncpa [#allocation4 + $0x1], 1 }
 0x71f   :  { %5615 = vsyncpa [#allocation12], 1 }
 0x720   :  { %5617 = vsyncpa [#allocation12 + $0x1], 1 }

</bundles_post_ra>
